<compile_context>
chip_gen: v7x
topology: tpu7x:2x2x1
jax: 0.10.0
libtpu: 0.0.40
codegen_flags: <defaults>
</compile_context>

<pallas_src>
import functools
import math

import numpy as np
import jax
import jax.numpy as jnp
from jax import lax
from jax.experimental import pallas as pl
from jax.experimental.pallas import tpu as pltpu


# ---------------------------------------------------------------------------
# Trace-time constant builders (numpy)
# ---------------------------------------------------------------------------
def _gaussian_1d(window_size, sigma):
    """Matches torch `gaussian()`: normalized 1D gaussian centered at ws//2."""
    center = window_size // 2
    g = np.array(
        [math.exp(-((x - center) ** 2) / (2.0 * sigma ** 2)) for x in range(window_size)],
        dtype=np.float64,
    )
    return (g / g.sum()).astype(np.float32)


def _band_matrix(out_size, in_size, taps, pad):
    """T[o, i] = taps[i - o + pad]; conv(x) = T_h @ x @ T_w^T (F.conv2d, zero pad)."""
    ws = len(taps)
    T = np.zeros((out_size, in_size), dtype=np.float32)
    for o in range(out_size):
        for p in range(ws):
            i = o + p - pad
            if 0 <= i < in_size:
                T[o, i] = taps[p]
    return T


def _pool_matrix(out_size, in_size):
    """P[o, i] = 0.5 for i in {2o, 2o+1}: one axis of 2x2/stride-2 avg pooling."""
    P = np.zeros((out_size, in_size), dtype=np.float32)
    for o in range(out_size):
        P[o, 2 * o] = 0.5
        P[o, 2 * o + 1] = 0.5
    return P


def _block_diag(m, reps):
    r, c = m.shape
    out = np.zeros((r * reps, c * reps), dtype=np.float32)
    for g in range(reps):
        out[g * r:(g + 1) * r, g * c:(g + 1) * c] = m
    return out


def _level_params(H, W, levels):
    """Per-level window / band-matrix metadata (ws=min(h,w,11), sigma=1.5*ws/11)."""
    params = []
    h, w = H, W
    for _ in range(levels):
        ws = min(h, w, 11)
        sigma = 1.5 * ws / 11.0
        pad = ws // 2
        ho = h + 2 * pad - ws + 1
        wo = w + 2 * pad - ws + 1
        taps = _gaussian_1d(ws, sigma)
        params.append(dict(H=h, W=w, Ho=ho, Wo=wo,
                           th=_band_matrix(ho, h, taps, pad),
                           tw=_band_matrix(wo, w, taps, pad)))
        h //= 2
        w //= 2
    return params


def _pack_slab(mats):
    """Pack small matrices into one (rows, >=128) f32 slab; row offsets % 8 == 0."""
    maxc = max(m.shape[1] for _, m in mats)
    cols = max(128, ((maxc + 127) // 128) * 128)
    index, off = {}, 0
    for k, m in mats:
        index[k] = (off, m.shape[0], m.shape[1])
        off += ((m.shape[0] + 7) // 8) * 8
    slab = np.zeros((max(8, ((off + 7) // 8) * 8), cols), dtype=np.float32)
    for k, m in mats:
        o, r, c = index[k]
        slab[o:o + r, :c] = m
    return slab, index


def _choose_lane_pack(B, W):
    """Largest divisor G of B with G*W <= 128 (prefer exact 128-lane fill)."""
    divs = [d for d in range(1, B + 1) if B % d == 0]
    cand = [d for d in divs if d * W <= 128]
    if not cand:
        return 1
    exact = [d for d in cand if (d * W) % 128 == 0]
    return max(exact) if exact else max(cand)


def _num_cores_per_chip():
    try:
        d = jax.devices()[0]
        nc = getattr(d, "num_cores", None)
        if isinstance(nc, int) and nc >= 1:
            return nc
        kind = str(getattr(d, "device_kind", "")).lower()
        return 2 if "v7" in kind else 1
    except Exception:
        return 1


def _choose_group_block(NG, H, GW, n_cores, budget_bytes):
    """Largest group-block that fits the VMEM budget; keep an even #steps on 2-TC chips."""
    lanes = max(GW, 128)

    def est(bg):
        blk = 2 * bg * H * lanes * 4            # one (2, bg, H, GW) input block
        scr = 5 * bg * H * lanes * 4            # stacked-operand scratch
        tmp = 16 * bg * H * lanes * 4           # conv outputs + elementwise temporaries
        return 2 * blk + scr + tmp              # input is double-buffered

    divs = [d for d in range(1, NG + 1) if NG % d == 0]
    fit = [d for d in divs if est(d) <= budget_bytes] or [1]
    if n_cores >= 2:
        pref = [d for d in fit if (NG // d) % n_cores == 0]
        if pref:
            return max(pref)
    return max(fit)


# ---------------------------------------------------------------------------
# In-kernel separable transform
# ---------------------------------------------------------------------------
def _sep_transform(x3, col_m, row_m, fast):
    """Apply row transform then column transform to every (R, C) slice of x3.

    fast path : col_m is (Cin, C2), row_m is (R, R2)  -> flat 2-D MXU matmuls with
                a minor-dims swap in between (requires R, Cin, R2 multiples of 8).
    fallback  : col_m is (C2, Cin), row_m is (R2, R)  -> batched dot_general
                (tiny / unaligned deep levels; identical to the proven v1 path).
    Returns (g, R2, C2).
    """
    g, R, Cin = x3.shape
    if fast:
        R2 = row_m.shape[1]
        xt = jnp.swapaxes(x3, 1, 2)                                   # (g, Cin, R)
        y = jnp.dot(xt.reshape(g * Cin, R), row_m,
                    preferred_element_type=jnp.float32)               # (g*Cin, R2)
        yt = jnp.swapaxes(y.reshape(g, Cin, R2), 1, 2)                # (g, R2, Cin)
        z = jnp.dot(yt.reshape(g * R2, Cin), col_m,
                    preferred_element_type=jnp.float32)               # (g*R2, C2)
        return z.reshape(g, R2, col_m.shape[1])
    cm = jnp.broadcast_to(col_m[None], (g,) + col_m.shape)            # (g, C2, Cin)
    y = lax.dot_general(x3, cm, (((2,), (2,)), ((0,), (0,))),
                        preferred_element_type=jnp.float32)           # (g, R, C2)
    rm = jnp.broadcast_to(row_m[None], (g,) + row_m.shape)            # (g, R2, R)
    return lax.dot_general(rm, y, (((2,), (1,)), ((0,), (0,))),
                           preferred_element_type=jnp.float32)        # (g, R2, C2)


# ---------------------------------------------------------------------------
# MS-SSIM forward
# ---------------------------------------------------------------------------
def ms_ssim_loss(img1, img2, levels=5, max_val=1.0):
    """Forward of MSSSIMLoss: 1 - ms_ssim(img1, img2). Inputs are NCHW."""
    N, C, H, W = img1.shape
    B = N * C
    G = _choose_lane_pack(B, W)        # images packed along the lane dim
    NG = B // G
    GW = G * W

    x1 = img1.reshape(B, H, W).astype(jnp.float32)
    x2 = img2.reshape(B, H, W).astype(jnp.float32)
    if G > 1:
        x1 = x1.reshape(NG, G, H, W).transpose(0, 2, 1, 3).reshape(NG, H, GW)
        x2 = x2.reshape(NG, G, H, W).transpose(0, 2, 1, 3).reshape(NG, H, GW)
    X = jnp.stack([x1, x2], axis=0)    # (2, NG, H, GW): one input, one DMA per step

    lv = _level_params(H, W, levels)

    # Per-level fast-path eligibility + matrix slab (right-mul form when fast,
    # (out, in) form for the batched fallback).
    conv_fast, pool_fast, mats = [], [], []
    for l, p in enumerate(lv):
        Hl, Wl, Hol = p["H"], p["W"], p["Ho"]
        GWl = G * Wl
        cf = (Hl % 8 == 0) and (GWl % 8 == 0) and (Hol % 8 == 0)
        conv_fast.append(cf)
        twb = _block_diag(p["tw"], G)                       # (G*Wo, G*W)
        if cf:
            mats.append((("cr", l), p["th"].T.copy()))      # (H, Ho)
            mats.append((("cc", l), twb.T.copy()))          # (G*W, G*Wo)
        else:
            mats.append((("cr", l), p["th"]))               # (Ho, H)
            mats.append((("cc", l), twb))                   # (G*Wo, G*W)
        if l < levels - 1:
            pf = (Hl % 8 == 0) and (GWl % 8 == 0) and ((Hl // 2) % 8 == 0)
            pool_fast.append(pf)
            ph = _pool_matrix(Hl // 2, Hl)
            pwb = _block_diag(_pool_matrix(Wl // 2, Wl), G)
            if pf:
                mats.append((("pr", l), ph.T.copy()))       # (H, H/2)
                mats.append((("pc", l), pwb.T.copy()))      # (G*W, G*W/2)
            else:
                mats.append((("pr", l), ph))                # (H/2, H)
                mats.append((("pc", l), pwb))               # (G*W/2, G*W)
    slab_np, slab_idx = _pack_slab(mats)
    slab = jnp.asarray(slab_np)

    c1 = (0.01 * max_val) ** 2
    c2 = (0.03 * max_val) ** 2

    n_cores = _num_cores_per_chip()
    Bg = _choose_group_block(NG, H, GW, n_cores, budget_bytes=20 * 1024 * 1024)
    nb = NG // Bg

    # Generation-aware VMEM limit (physical: 64 MiB on v7x, 128 MiB on v5e/v6e).
    est = 2 * (2 * Bg * H * max(GW, 128) * 4) + 21 * Bg * H * max(GW, 128) * 4 \
        + 2 * slab_np.size * 4 + (1 << 20)
    vmem_limit = int(min(64 * (1 << 20), max(32 * (1 << 20), 2 * est)))

    def kernel(x_ref, slab_ref, out_ref, scr_ref):
        def mat(key):
            off, r, c = slab_idx[key]
            return slab_ref[off:off + r, :c]

        cur = x_ref[...].reshape(2 * Bg, H, GW)   # img1 groups [0:Bg], img2 [Bg:2Bg]
        row = lax.broadcasted_iota(jnp.int32, (2, 128), 0)

        for l in range(levels):
            Hl = lv[l]["H"]
            GWl = G * lv[l]["W"]

            a = cur[:Bg]
            b = cur[Bg:]
            # Stage the five conv operands into the persistent VMEM scratch
            # (slice stores instead of a per-level concatenate).
            scr_ref[0 * Bg:1 * Bg, :Hl, :GWl] = a
            scr_ref[1 * Bg:2 * Bg, :Hl, :GWl] = b
            scr_ref[2 * Bg:3 * Bg, :Hl, :GWl] = a * a
            scr_ref[3 * Bg:4 * Bg, :Hl, :GWl] = b * b
            scr_ref[4 * Bg:5 * Bg, :Hl, :GWl] = a * b

            P = scr_ref[:, :Hl, :GWl]                          # (5*Bg, Hl, GWl)
            conv = _sep_transform(P, mat(("cc", l)), mat(("cr", l)),
                                  conv_fast[l])                # (5*Bg, Ho, G*Wo)

            mu1 = conv[0 * Bg:1 * Bg]
            mu2 = conv[1 * Bg:2 * Bg]
            s11 = conv[2 * Bg:3 * Bg]
            s22 = conv[3 * Bg:4 * Bg]
            s12 = conv[4 * Bg:5 * Bg]

            # Short-live-range elementwise chain.
            mu1_sq = mu1 * mu1
            mu2_sq = mu2 * mu2
            mu1_mu2 = mu1 * mu2
            d1 = mu1_sq + mu2_sq + c1
            v2 = (s11 - mu1_sq) + (s22 - mu2_sq) + c2
            v1 = 2.0 * (s12 - mu1_mu2) + c2
            num1 = 2.0 * mu1_mu2 + c1

            # EUP approx reciprocal + one Newton step (~f32 accurate), reused.
            r2 = pl.reciprocal(v2, approx=True)
            r2 = r2 * (2.0 - v2 * r2)
            mcs_map = v1 * r2
            r1 = pl.reciprocal(d1, approx=True)
            r1 = r1 * (2.0 - d1 * r1)
            ssim_map = num1 * r1 * mcs_map

            # Per-block partial sums: row 0 = ssim, row 1 = mcs (lane 0 read back).
            out_ref[0, l] = jnp.where(row == 0, jnp.sum(ssim_map), jnp.sum(mcs_map))

            # 2x2 average pooling for the next level (final pool is unused).
            if l < levels - 1:
                cur = _sep_transform(cur, mat(("pc", l)), mat(("pr", l)),
                                     pool_fast[l])             # (2*Bg, H/2, GW/2)

    in_specs = [
        pl.BlockSpec((2, Bg, H, GW), lambda i: (0, i, 0, 0)),
        pl.BlockSpec(slab_np.shape, lambda i: (0, 0)),
    ]

    # Advisory cost estimate (logical flops; helps XLA overlap this small kernel).
    flops, transcend = 0, 0
    for l, p in enumerate(lv):
        Hl, Wl, Hol, Wol = p["H"], p["W"], p["Ho"], p["Wo"]
        flops += 2 * 5 * B * (Wl * Hl * Hol + Hol * Wl * Wol)
        flops += 30 * B * Hol * Wol
        transcend += 2 * B * Hol * Wol
        if l < levels - 1:
            flops += 2 * 2 * B * (Wl * Hl * (Hl // 2) + (Hl // 2) * Wl * (Wl // 2))
    cost = pl.CostEstimate(flops=int(flops), transcendentals=int(transcend),
                           bytes_accessed=int((2 * B * H * W + slab_np.size
                                               + nb * levels * 2 * 128) * 4))

    partials = pl.pallas_call(
        kernel,
        out_shape=jax.ShapeDtypeStruct((nb, levels, 2, 128), jnp.float32),
        grid=(nb,),
        in_specs=in_specs,
        out_specs=pl.BlockSpec((1, levels, 2, 128), lambda i: (i, 0, 0, 0)),
        scratch_shapes=[pltpu.VMEM((5 * Bg, H, GW), jnp.float32)],
        compiler_params=pltpu.CompilerParams(
            dimension_semantics=("parallel",),
            vmem_limit_bytes=vmem_limit,
        ),
        cost_estimate=cost,
    )(X, slab)

    # Scalar epilogue (weighted product of means) in plain JAX — trivial work.
    weights = [0.0448, 0.2856, 0.3001, 0.2363, 0.1333]
    value = jnp.float32(1.0)
    for l in range(levels):
        denom = float(B * lv[l]["Ho"] * lv[l]["Wo"])
        ssim_mean = jnp.sum(partials[:, l, 0, 0]) / denom
        mcs_mean = jnp.sum(partials[:, l, 1, 0]) / denom
        if l < levels - 1:
            value = value * mcs_mean ** weights[l]
        else:
            value = value * ssim_mean ** weights[l]
    return 1.0 - value


# ---------------------------------------------------------------------------
# Pure-JAX reference (lax.conv / reduce_window) for validation only.
# ---------------------------------------------------------------------------
def _ref_ms_ssim_loss(img1, img2, levels=5, max_val=1.0):
    c1 = (0.01 * max_val) ** 2
    c2 = (0.03 * max_val) ** 2
    weights = [0.0448, 0.2856, 0.3001, 0.2363, 0.1333]
    x1 = img1.astype(jnp.float32)
    x2 = img2.astype(jnp.float32)
    value = jnp.float32(1.0)
    for l in range(levels):
        _, c, h, w = x1.shape
        ws = min(h, w, 11)
        sigma = 1.5 * ws / 11.0
        pad = ws // 2
        g1d = _gaussian_1d(ws, sigma)
        win = jnp.asarray(np.tile(np.outer(g1d, g1d)[None, None], (c, 1, 1, 1)))

        def dwconv(x, win=win, pad=pad, c=c):
            return lax.conv_general_dilated(
                x, win, window_strides=(1, 1), padding=[(pad, pad), (pad, pad)],
                dimension_numbers=("NCHW", "OIHW", "NCHW"), feature_group_count=c)

        mu1, mu2 = dwconv(x1), dwconv(x2)
        mu1_sq, mu2_sq, mu1_mu2 = mu1 * mu1, mu2 * mu2, mu1 * mu2
        s1 = dwconv(x1 * x1) - mu1_sq
        s2 = dwconv(x2 * x2) - mu2_sq
        s12 = dwconv(x1 * x2) - mu1_mu2
        v1 = 2.0 * s12 + c2
        v2 = s1 + s2 + c2
        ssim = jnp.mean((2.0 * mu1_mu2 + c1) * v1 / ((mu1_sq + mu2_sq + c1) * v2))
        mcs = jnp.mean(v1 / v2)
        value = value * (ssim ** weights[l] if l == levels - 1 else mcs ** weights[l])
        x1 = lax.reduce_window(x1, 0.0, lax.add, (1, 1, 2, 2), (1, 1, 2, 2), "VALID") * 0.25
        x2 = lax.reduce_window(x2, 0.0, lax.add, (1, 1, 2, 2), (1, 1, 2, 2), "VALID") * 0.25
    return 1.0 - value


if __name__ == "__main__":
    # channel is hard-coded to 3 in the PyTorch module; spatial=32 so that all
    # 5 pyramid levels (32 -> 16 -> 8 -> 4 -> 2) are valid for the 2x2 avg-pool.
    key = jax.random.PRNGKey(0)
    k1, k2 = jax.random.split(key)
    img1 = jax.random.uniform(k1, (2, 3, 32, 32), dtype=jnp.float32)
    # Correlated second image (like a noisy reconstruction) keeps the
    # fractional-power bases positive, matching typical usage of this loss.
    img2 = jnp.clip(img1 + 0.05 * jax.random.normal(k2, img1.shape, jnp.float32), 0.0, 1.0)

    loss_fn = jax.jit(functools.partial(ms_ssim_loss, levels=5, max_val=1.0))
    loss = jax.block_until_ready(loss_fn(img1, img2))

    ref_fn = jax.jit(functools.partial(_ref_ms_ssim_loss, levels=5, max_val=1.0))
    ref = jax.block_until_ready(ref_fn(img1, img2))

    assert jnp.isfinite(loss), f"non-finite loss: {loss}"
    assert abs(float(loss) - float(ref)) < 2e-3, \
        f"mismatch vs reference: pallas={float(loss)} ref={float(ref)}"
    print("KERNEL_OK")
</pallas_src>

<mosaic_0001>
module attributes {stable_mosaic.version = 11 : i64} {
  func.func @kernel(%arg0: i32, %arg1: memref<2x2x32x96xf32, #tpu.memory_space<vmem>>, %arg2: memref<520x128xf32, #tpu.memory_space<vmem>>, %arg3: memref<1x5x2x128xf32, #tpu.memory_space<vmem>>, %arg4: memref<10x32x96xf32, #tpu.memory_space<vmem>>) attributes {dimension_semantics = [#tpu.dimension_semantics<parallel>], iteration_bounds = array<i64: 1>, scalar_prefetch = 0 : i64, scratch_operands = 1 : i64, tpu.core_type = #tpu.core_type<tc>, window_params = [{transform_indices = @transform_0, window_bounds = array<i64: 2, 2, 32, 96>}, {pipeline_mode = #tpu.pipeline_mode<synchronous>, transform_indices = @transform_1, window_bounds = array<i64: 520, 128>}, {transform_indices = @transform_2, window_bounds = array<i64: 1, 5, 2, 128>}]} {
    %c0 = arith.constant 0 : index
    %c0_0 = arith.constant 0 : index
    %c0_1 = arith.constant 0 : index
    %c0_2 = arith.constant 0 : index
    %0 = vector.load %arg1[%c0, %c0_0, %c0_1, %c0_2] : memref<2x2x32x96xf32, #tpu.memory_space<vmem>>, vector<2x2x32x96xf32>
    %1 = vector.shape_cast %0 : vector<2x2x32x96xf32> to vector<4x32x96xf32>
    %2 = tpu.iota {dimensions = array<i32: 0>} : vector<2x128xi32>
    %3 = vector.extract_strided_slice %1 {offsets = [0, 0, 0], sizes = [2, 32, 96], strides = [1, 1, 1]} : vector<4x32x96xf32> to vector<2x32x96xf32>
    %4 = vector.extract_strided_slice %1 {offsets = [2, 0, 0], sizes = [2, 32, 96], strides = [1, 1, 1]} : vector<4x32x96xf32> to vector<2x32x96xf32>
    %c0_3 = arith.constant 0 : index
    %c0_4 = arith.constant 0 : index
    %c0_5 = arith.constant 0 : index
    %5 = vector.load %arg4[%c0_3, %c0_4, %c0_5] : memref<10x32x96xf32, #tpu.memory_space<vmem>>, vector<2x32x96xf32>
    tpu.vector_store %arg4[%c0_3, %c0_4, %c0_5], %3 {strides = array<i32>} : memref<10x32x96xf32, #tpu.memory_space<vmem>>, vector<2x32x96xf32>,
    %c2 = arith.constant 2 : index
    %c0_6 = arith.constant 0 : index
    %c0_7 = arith.constant 0 : index
    %6 = vector.load %arg4[%c2, %c0_6, %c0_7] : memref<10x32x96xf32, #tpu.memory_space<vmem>>, vector<2x32x96xf32>
    tpu.vector_store %arg4[%c2, %c0_6, %c0_7], %4 {strides = array<i32>} : memref<10x32x96xf32, #tpu.memory_space<vmem>>, vector<2x32x96xf32>,
    %7 = arith.mulf %3, %3 : vector<2x32x96xf32>
    %c4 = arith.constant 4 : index
    %c0_8 = arith.constant 0 : index
    %c0_9 = arith.constant 0 : index
    %8 = vector.load %arg4[%c4, %c0_8, %c0_9] : memref<10x32x96xf32, #tpu.memory_space<vmem>>, vector<2x32x96xf32>
    tpu.vector_store %arg4[%c4, %c0_8, %c0_9], %7 {strides = array<i32>} : memref<10x32x96xf32, #tpu.memory_space<vmem>>, vector<2x32x96xf32>,
    %9 = arith.mulf %4, %4 : vector<2x32x96xf32>
    %c6 = arith.constant 6 : index
    %c0_10 = arith.constant 0 : index
    %c0_11 = arith.constant 0 : index
    %10 = vector.load %arg4[%c6, %c0_10, %c0_11] : memref<10x32x96xf32, #tpu.memory_space<vmem>>, vector<2x32x96xf32>
    tpu.vector_store %arg4[%c6, %c0_10, %c0_11], %9 {strides = array<i32>} : memref<10x32x96xf32, #tpu.memory_space<vmem>>, vector<2x32x96xf32>,
    %11 = arith.mulf %3, %4 : vector<2x32x96xf32>
    %c8 = arith.constant 8 : index
    %c0_12 = arith.constant 0 : index
    %c0_13 = arith.constant 0 : index
    %12 = vector.load %arg4[%c8, %c0_12, %c0_13] : memref<10x32x96xf32, #tpu.memory_space<vmem>>, vector<2x32x96xf32>
    tpu.vector_store %arg4[%c8, %c0_12, %c0_13], %11 {strides = array<i32>} : memref<10x32x96xf32, #tpu.memory_space<vmem>>, vector<2x32x96xf32>,
    %c0_14 = arith.constant 0 : index
    %c0_15 = arith.constant 0 : index
    %c0_16 = arith.constant 0 : index
    %13 = vector.load %arg4[%c0_14, %c0_15, %c0_16] : memref<10x32x96xf32, #tpu.memory_space<vmem>>, vector<10x32x96xf32>
    %c32 = arith.constant 32 : index
    %c0_17 = arith.constant 0 : index
    %14 = vector.load %arg2[%c32, %c0_17] : memref<520x128xf32, #tpu.memory_space<vmem>>, vector<96x96xf32>
    %c0_18 = arith.constant 0 : index
    %c0_19 = arith.constant 0 : index
    %15 = vector.load %arg2[%c0_18, %c0_19] : memref<520x128xf32, #tpu.memory_space<vmem>>, vector<32x32xf32>
    %16 = tpu.transpose %13, [0, 2, 1] : vector<10x32x96xf32> -> vector<10x96x32xf32>
    %17 = vector.shape_cast %16 : vector<10x96x32xf32> to vector<960x32xf32>
    %cst = arith.constant dense<0.000000e+00> : vector<960x32xf32>
    %18 = tpu.matmul %17, %15, %cst {dimension_numbers = #tpu.dot_dimension_numbers<[1], [0], [0], [1], [0, 0, 1, 1], [], []>} : vector<960x32xf32>, vector<32x32xf32>, vector<960x32xf32> -> vector<960x32xf32>
    %19 = vector.shape_cast %18 : vector<960x32xf32> to vector<10x96x32xf32>
    %20 = tpu.transpose %19, [0, 2, 1] : vector<10x96x32xf32> -> vector<10x32x96xf32>
    %21 = vector.shape_cast %20 : vector<10x32x96xf32> to vector<320x96xf32>
    %cst_20 = arith.constant dense<0.000000e+00> : vector<320x96xf32>
    %22 = tpu.matmul %21, %14, %cst_20 {dimension_numbers = #tpu.dot_dimension_numbers<[1], [0], [0], [1], [0, 0, 1, 1], [], []>} : vector<320x96xf32>, vector<96x96xf32>, vector<320x96xf32> -> vector<320x96xf32>
    %23 = vector.shape_cast %22 : vector<320x96xf32> to vector<10x32x96xf32>
    %24 = vector.extract_strided_slice %23 {offsets = [0, 0, 0], sizes = [2, 32, 96], strides = [1, 1, 1]} : vector<10x32x96xf32> to vector<2x32x96xf32>
    %25 = vector.extract_strided_slice %23 {offsets = [2, 0, 0], sizes = [2, 32, 96], strides = [1, 1, 1]} : vector<10x32x96xf32> to vector<2x32x96xf32>
    %26 = vector.extract_strided_slice %23 {offsets = [4, 0, 0], sizes = [2, 32, 96], strides = [1, 1, 1]} : vector<10x32x96xf32> to vector<2x32x96xf32>
    %27 = vector.extract_strided_slice %23 {offsets = [6, 0, 0], sizes = [2, 32, 96], strides = [1, 1, 1]} : vector<10x32x96xf32> to vector<2x32x96xf32>
    %28 = vector.extract_strided_slice %23 {offsets = [8, 0, 0], sizes = [2, 32, 96], strides = [1, 1, 1]} : vector<10x32x96xf32> to vector<2x32x96xf32>
    %29 = arith.mulf %24, %24 : vector<2x32x96xf32>
    %30 = arith.mulf %25, %25 : vector<2x32x96xf32>
    %31 = arith.mulf %24, %25 : vector<2x32x96xf32>
    %32 = arith.addf %29, %30 : vector<2x32x96xf32>
    %cst_21 = arith.constant 9.99999974E-5 : f32
    %33 = vector.broadcast %cst_21 : f32 to vector<2x32x96xf32>
    %34 = arith.addf %32, %33 : vector<2x32x96xf32>
    %35 = arith.subf %26, %29 : vector<2x32x96xf32>
    %36 = arith.subf %27, %30 : vector<2x32x96xf32>
    %37 = arith.addf %35, %36 : vector<2x32x96xf32>
    %cst_22 = arith.constant 8.99999984E-4 : f32
    %38 = vector.broadcast %cst_22 : f32 to vector<2x32x96xf32>
    %39 = arith.addf %37, %38 : vector<2x32x96xf32>
    %40 = arith.subf %28, %31 : vector<2x32x96xf32>
    %cst_23 = arith.constant 2.000000e+00 : f32
    %41 = vector.broadcast %cst_23 : f32 to vector<2x32x96xf32>
    %42 = arith.mulf %41, %40 : vector<2x32x96xf32>
    %cst_24 = arith.constant 8.99999984E-4 : f32
    %43 = vector.broadcast %cst_24 : f32 to vector<2x32x96xf32>
    %44 = arith.addf %42, %43 : vector<2x32x96xf32>
    %cst_25 = arith.constant 2.000000e+00 : f32
    %45 = vector.broadcast %cst_25 : f32 to vector<2x32x96xf32>
    %46 = arith.mulf %45, %31 : vector<2x32x96xf32>
    %cst_26 = arith.constant 9.99999974E-5 : f32
    %47 = vector.broadcast %cst_26 : f32 to vector<2x32x96xf32>
    %48 = arith.addf %46, %47 : vector<2x32x96xf32>
    %49 = tpu.reciprocal %39 {approx = true} : vector<2x32x96xf32> -> vector<2x32x96xf32>
    %50 = arith.mulf %39, %49 : vector<2x32x96xf32>
    %cst_27 = arith.constant 2.000000e+00 : f32
    %51 = vector.broadcast %cst_27 : f32 to vector<2x32x96xf32>
    %52 = arith.subf %51, %50 : vector<2x32x96xf32>
    %53 = arith.mulf %49, %52 : vector<2x32x96xf32>
    %54 = arith.mulf %44, %53 : vector<2x32x96xf32>
    %55 = tpu.reciprocal %34 {approx = true} : vector<2x32x96xf32> -> vector<2x32x96xf32>
    %56 = arith.mulf %34, %55 : vector<2x32x96xf32>
    %cst_28 = arith.constant 2.000000e+00 : f32
    %57 = vector.broadcast %cst_28 : f32 to vector<2x32x96xf32>
    %58 = arith.subf %57, %56 : vector<2x32x96xf32>
    %59 = arith.mulf %55, %58 : vector<2x32x96xf32>
    %60 = arith.mulf %48, %59 : vector<2x32x96xf32>
    %61 = arith.mulf %60, %54 : vector<2x32x96xf32>
    %c0_i32 = arith.constant 0 : i32
    %62 = vector.broadcast %c0_i32 : i32 to vector<2x128xi32>
    %63 = arith.cmpi eq, %2, %62 : vector<2x128xi32>
    %64 = vector.shape_cast %61 : vector<2x32x96xf32> to vector<1x2x32x96xf32>
    %cst_29 = arith.constant dense<0.000000e+00> : vector<1xf32>
    %65 = vector.multi_reduction <add>, %64, %cst_29 [1, 2, 3] : vector<1x2x32x96xf32> to vector<1xf32>
    %66 = vector.shape_cast %65 : vector<1xf32> to vector<1x1x1x1xf32>
    %67 = vector.extract %66[0, 0, 0, 0] : f32 from vector<1x1x1x1xf32>
    %68 = vector.shape_cast %54 : vector<2x32x96xf32> to vector<1x2x32x96xf32>
    %cst_30 = arith.constant dense<0.000000e+00> : vector<1xf32>
    %69 = vector.multi_reduction <add>, %68, %cst_30 [1, 2, 3] : vector<1x2x32x96xf32> to vector<1xf32>
    %70 = vector.shape_cast %69 : vector<1xf32> to vector<1x1x1x1xf32>
    %71 = vector.extract %70[0, 0, 0, 0] : f32 from vector<1x1x1x1xf32>
    %72 = vector.broadcast %67 : f32 to vector<2x128xf32>
    %73 = vector.broadcast %71 : f32 to vector<2x128xf32>
    %74 = arith.select %63, %72, %73 : vector<2x128xi1>, vector<2x128xf32>
    %c0_31 = arith.constant 0 : index
    %c0_32 = arith.constant 0 : index
    %c0_33 = arith.constant 0 : index
    %c0_34 = arith.constant 0 : index
    %75 = vector.load %arg3[%c0_31, %c0_32, %c0_33, %c0_34] : memref<1x5x2x128xf32, #tpu.memory_space<vmem>>, vector<1x1x2x128xf32>
    %76 = vector.shape_cast %75 : vector<1x1x2x128xf32> to vector<2x128xf32>
    %77 = vector.shape_cast %74 : vector<2x128xf32> to vector<1x1x2x128xf32>
    tpu.vector_store %arg3[%c0_31, %c0_32, %c0_33, %c0_34], %77 {strides = array<i32>} : memref<1x5x2x128xf32, #tpu.memory_space<vmem>>, vector<1x1x2x128xf32>,
    %c160 = arith.constant 160 : index
    %c0_35 = arith.constant 0 : index
    %78 = vector.load %arg2[%c160, %c0_35] : memref<520x128xf32, #tpu.memory_space<vmem>>, vector<96x48xf32>
    %c128 = arith.constant 128 : index
    %c0_36 = arith.constant 0 : index
    %79 = vector.load %arg2[%c128, %c0_36] : memref<520x128xf32, #tpu.memory_space<vmem>>, vector<32x16xf32>
    %80 = tpu.transpose %1, [0, 2, 1] : vector<4x32x96xf32> -> vector<4x96x32xf32>
    %81 = vector.shape_cast %80 : vector<4x96x32xf32> to vector<384x32xf32>
    %cst_37 = arith.constant dense<0.000000e+00> : vector<384x16xf32>
    %82 = tpu.matmul %81, %79, %cst_37 {dimension_numbers = #tpu.dot_dimension_numbers<[1], [0], [0], [1], [0, 0, 1, 1], [], []>} : vector<384x32xf32>, vector<32x16xf32>, vector<384x16xf32> -> vector<384x16xf32>
    %83 = vector.shape_cast %82 : vector<384x16xf32> to vector<4x96x16xf32>
    %84 = tpu.transpose %83, [0, 2, 1] : vector<4x96x16xf32> -> vector<4x16x96xf32>
    %85 = vector.shape_cast %84 : vector<4x16x96xf32> to vector<64x96xf32>
    %cst_38 = arith.constant dense<0.000000e+00> : vector<64x48xf32>
    %86 = tpu.matmul %85, %78, %cst_38 {dimension_numbers = #tpu.dot_dimension_numbers<[1], [0], [0], [1], [0, 0, 1, 1], [], []>} : vector<64x96xf32>, vector<96x48xf32>, vector<64x48xf32> -> vector<64x48xf32>
    %87 = vector.shape_cast %86 : vector<64x48xf32> to vector<4x16x48xf32>
    %88 = vector.extract_strided_slice %87 {offsets = [0, 0, 0], sizes = [2, 16, 48], strides = [1, 1, 1]} : vector<4x16x48xf32> to vector<2x16x48xf32>
    %89 = vector.extract_strided_slice %87 {offsets = [2, 0, 0], sizes = [2, 16, 48], strides = [1, 1, 1]} : vector<4x16x48xf32> to vector<2x16x48xf32>
    %c0_39 = arith.constant 0 : index
    %c0_40 = arith.constant 0 : index
    %c0_41 = arith.constant 0 : index
    %90 = vector.load %arg4[%c0_39, %c0_40, %c0_41] : memref<10x32x96xf32, #tpu.memory_space<vmem>>, vector<2x16x48xf32>
    tpu.vector_store %arg4[%c0_39, %c0_40, %c0_41], %88 {strides = array<i32>} : memref<10x32x96xf32, #tpu.memory_space<vmem>>, vector<2x16x48xf32>,
    %c2_42 = arith.constant 2 : index
    %c0_43 = arith.constant 0 : index
    %c0_44 = arith.constant 0 : index
    %91 = vector.load %arg4[%c2_42, %c0_43, %c0_44] : memref<10x32x96xf32, #tpu.memory_space<vmem>>, vector<2x16x48xf32>
    tpu.vector_store %arg4[%c2_42, %c0_43, %c0_44], %89 {strides = array<i32>} : memref<10x32x96xf32, #tpu.memory_space<vmem>>, vector<2x16x48xf32>,
    %92 = arith.mulf %88, %88 : vector<2x16x48xf32>
    %c4_45 = arith.constant 4 : index
    %c0_46 = arith.constant 0 : index
    %c0_47 = arith.constant 0 : index
    %93 = vector.load %arg4[%c4_45, %c0_46, %c0_47] : memref<10x32x96xf32, #tpu.memory_space<vmem>>, vector<2x16x48xf32>
    tpu.vector_store %arg4[%c4_45, %c0_46, %c0_47], %92 {strides = array<i32>} : memref<10x32x96xf32, #tpu.memory_space<vmem>>, vector<2x16x48xf32>,
    %94 = arith.mulf %89, %89 : vector<2x16x48xf32>
    %c6_48 = arith.constant 6 : index
    %c0_49 = arith.constant 0 : index
    %c0_50 = arith.constant 0 : index
    %95 = vector.load %arg4[%c6_48, %c0_49, %c0_50] : memref<10x32x96xf32, #tpu.memory_space<vmem>>, vector<2x16x48xf32>
    tpu.vector_store %arg4[%c6_48, %c0_49, %c0_50], %94 {strides = array<i32>} : memref<10x32x96xf32, #tpu.memory_space<vmem>>, vector<2x16x48xf32>,
    %96 = arith.mulf %88, %89 : vector<2x16x48xf32>
    %c8_51 = arith.constant 8 : index
    %c0_52 = arith.constant 0 : index
    %c0_53 = arith.constant 0 : index
    %97 = vector.load %arg4[%c8_51, %c0_52, %c0_53] : memref<10x32x96xf32, #tpu.memory_space<vmem>>, vector<2x16x48xf32>
    tpu.vector_store %arg4[%c8_51, %c0_52, %c0_53], %96 {strides = array<i32>} : memref<10x32x96xf32, #tpu.memory_space<vmem>>, vector<2x16x48xf32>,
    %c0_54 = arith.constant 0 : index
    %c0_55 = arith.constant 0 : index
    %c0_56 = arith.constant 0 : index
    %98 = vector.load %arg4[%c0_54, %c0_55, %c0_56] : memref<10x32x96xf32, #tpu.memory_space<vmem>>, vector<10x16x48xf32>
    %c272 = arith.constant 272 : index
    %c0_57 = arith.constant 0 : index
    %99 = vector.load %arg2[%c272, %c0_57] : memref<520x128xf32, #tpu.memory_space<vmem>>, vector<48x48xf32>
    %c256 = arith.constant 256 : index
    %c0_58 = arith.constant 0 : index
    %100 = vector.load %arg2[%c256, %c0_58] : memref<520x128xf32, #tpu.memory_space<vmem>>, vector<16x16xf32>
    %101 = tpu.transpose %98, [0, 2, 1] : vector<10x16x48xf32> -> vector<10x48x16xf32>
    %102 = vector.shape_cast %101 : vector<10x48x16xf32> to vector<480x16xf32>
    %cst_59 = arith.constant dense<0.000000e+00> : vector<480x16xf32>
    %103 = tpu.matmul %102, %100, %cst_59 {dimension_numbers = #tpu.dot_dimension_numbers<[1], [0], [0], [1], [0, 0, 1, 1], [], []>} : vector<480x16xf32>, vector<16x16xf32>, vector<480x16xf32> -> vector<480x16xf32>
    %104 = vector.shape_cast %103 : vector<480x16xf32> to vector<10x48x16xf32>
    %105 = tpu.transpose %104, [0, 2, 1] : vector<10x48x16xf32> -> vector<10x16x48xf32>
    %106 = vector.shape_cast %105 : vector<10x16x48xf32> to vector<160x48xf32>
    %cst_60 = arith.constant dense<0.000000e+00> : vector<160x48xf32>
    %107 = tpu.matmul %106, %99, %cst_60 {dimension_numbers = #tpu.dot_dimension_numbers<[1], [0], [0], [1], [0, 0, 1, 1], [], []>} : vector<160x48xf32>, vector<48x48xf32>, vector<160x48xf32> -> vector<160x48xf32>
    %108 = vector.shape_cast %107 : vector<160x48xf32> to vector<10x16x48xf32>
    %109 = vector.extract_strided_slice %108 {offsets = [0, 0, 0], sizes = [2, 16, 48], strides = [1, 1, 1]} : vector<10x16x48xf32> to vector<2x16x48xf32>
    %110 = vector.extract_strided_slice %108 {offsets = [2, 0, 0], sizes = [2, 16, 48], strides = [1, 1, 1]} : vector<10x16x48xf32> to vector<2x16x48xf32>
    %111 = vector.extract_strided_slice %108 {offsets = [4, 0, 0], sizes = [2, 16, 48], strides = [1, 1, 1]} : vector<10x16x48xf32> to vector<2x16x48xf32>
    %112 = vector.extract_strided_slice %108 {offsets = [6, 0, 0], sizes = [2, 16, 48], strides = [1, 1, 1]} : vector<10x16x48xf32> to vector<2x16x48xf32>
    %113 = vector.extract_strided_slice %108 {offsets = [8, 0, 0], sizes = [2, 16, 48], strides = [1, 1, 1]} : vector<10x16x48xf32> to vector<2x16x48xf32>
    %114 = arith.mulf %109, %109 : vector<2x16x48xf32>
    %115 = arith.mulf %110, %110 : vector<2x16x48xf32>
    %116 = arith.mulf %109, %110 : vector<2x16x48xf32>
    %117 = arith.addf %114, %115 : vector<2x16x48xf32>
    %cst_61 = arith.constant 9.99999974E-5 : f32
    %118 = vector.broadcast %cst_61 : f32 to vector<2x16x48xf32>
    %119 = arith.addf %117, %118 : vector<2x16x48xf32>
    %120 = arith.subf %111, %114 : vector<2x16x48xf32>
    %121 = arith.subf %112, %115 : vector<2x16x48xf32>
    %122 = arith.addf %120, %121 : vector<2x16x48xf32>
    %cst_62 = arith.constant 8.99999984E-4 : f32
    %123 = vector.broadcast %cst_62 : f32 to vector<2x16x48xf32>
    %124 = arith.addf %122, %123 : vector<2x16x48xf32>
    %125 = arith.subf %113, %116 : vector<2x16x48xf32>
    %cst_63 = arith.constant 2.000000e+00 : f32
    %126 = vector.broadcast %cst_63 : f32 to vector<2x16x48xf32>
    %127 = arith.mulf %126, %125 : vector<2x16x48xf32>
    %cst_64 = arith.constant 8.99999984E-4 : f32
    %128 = vector.broadcast %cst_64 : f32 to vector<2x16x48xf32>
    %129 = arith.addf %127, %128 : vector<2x16x48xf32>
    %cst_65 = arith.constant 2.000000e+00 : f32
    %130 = vector.broadcast %cst_65 : f32 to vector<2x16x48xf32>
    %131 = arith.mulf %130, %116 : vector<2x16x48xf32>
    %cst_66 = arith.constant 9.99999974E-5 : f32
    %132 = vector.broadcast %cst_66 : f32 to vector<2x16x48xf32>
    %133 = arith.addf %131, %132 : vector<2x16x48xf32>
    %134 = tpu.reciprocal %124 {approx = true} : vector<2x16x48xf32> -> vector<2x16x48xf32>
    %135 = arith.mulf %124, %134 : vector<2x16x48xf32>
    %cst_67 = arith.constant 2.000000e+00 : f32
    %136 = vector.broadcast %cst_67 : f32 to vector<2x16x48xf32>
    %137 = arith.subf %136, %135 : vector<2x16x48xf32>
    %138 = arith.mulf %134, %137 : vector<2x16x48xf32>
    %139 = arith.mulf %129, %138 : vector<2x16x48xf32>
    %140 = tpu.reciprocal %119 {approx = true} : vector<2x16x48xf32> -> vector<2x16x48xf32>
    %141 = arith.mulf %119, %140 : vector<2x16x48xf32>
    %cst_68 = arith.constant 2.000000e+00 : f32
    %142 = vector.broadcast %cst_68 : f32 to vector<2x16x48xf32>
    %143 = arith.subf %142, %141 : vector<2x16x48xf32>
    %144 = arith.mulf %140, %143 : vector<2x16x48xf32>
    %145 = arith.mulf %133, %144 : vector<2x16x48xf32>
    %146 = arith.mulf %145, %139 : vector<2x16x48xf32>
    %c0_i32_69 = arith.constant 0 : i32
    %147 = vector.broadcast %c0_i32_69 : i32 to vector<2x128xi32>
    %148 = arith.cmpi eq, %2, %147 : vector<2x128xi32>
    %149 = vector.shape_cast %146 : vector<2x16x48xf32> to vector<1x2x16x48xf32>
    %cst_70 = arith.constant dense<0.000000e+00> : vector<1xf32>
    %150 = vector.multi_reduction <add>, %149, %cst_70 [1, 2, 3] : vector<1x2x16x48xf32> to vector<1xf32>
    %151 = vector.shape_cast %150 : vector<1xf32> to vector<1x1x1x1xf32>
    %152 = vector.extract %151[0, 0, 0, 0] : f32 from vector<1x1x1x1xf32>
    %153 = vector.shape_cast %139 : vector<2x16x48xf32> to vector<1x2x16x48xf32>
    %cst_71 = arith.constant dense<0.000000e+00> : vector<1xf32>
    %154 = vector.multi_reduction <add>, %153, %cst_71 [1, 2, 3] : vector<1x2x16x48xf32> to vector<1xf32>
    %155 = vector.shape_cast %154 : vector<1xf32> to vector<1x1x1x1xf32>
    %156 = vector.extract %155[0, 0, 0, 0] : f32 from vector<1x1x1x1xf32>
    %157 = vector.broadcast %152 : f32 to vector<2x128xf32>
    %158 = vector.broadcast %156 : f32 to vector<2x128xf32>
    %159 = arith.select %148, %157, %158 : vector<2x128xi1>, vector<2x128xf32>
    %c0_72 = arith.constant 0 : index
    %c1 = arith.constant 1 : index
    %c0_73 = arith.constant 0 : index
    %c0_74 = arith.constant 0 : index
    %160 = vector.load %arg3[%c0_72, %c1, %c0_73, %c0_74] : memref<1x5x2x128xf32, #tpu.memory_space<vmem>>, vector<1x1x2x128xf32>
    %161 = vector.shape_cast %160 : vector<1x1x2x128xf32> to vector<2x128xf32>
    %162 = vector.shape_cast %159 : vector<2x128xf32> to vector<1x1x2x128xf32>
    tpu.vector_store %arg3[%c0_72, %c1, %c0_73, %c0_74], %162 {strides = array<i32>} : memref<1x5x2x128xf32, #tpu.memory_space<vmem>>, vector<1x1x2x128xf32>,
    %c336 = arith.constant 336 : index
    %c0_75 = arith.constant 0 : index
    %163 = vector.load %arg2[%c336, %c0_75] : memref<520x128xf32, #tpu.memory_space<vmem>>, vector<48x24xf32>
    %c320 = arith.constant 320 : index
    %c0_76 = arith.constant 0 : index
    %164 = vector.load %arg2[%c320, %c0_76] : memref<520x128xf32, #tpu.memory_space<vmem>>, vector<16x8xf32>
    %165 = tpu.transpose %87, [0, 2, 1] : vector<4x16x48xf32> -> vector<4x48x16xf32>
    %166 = vector.shape_cast %165 : vector<4x48x16xf32> to vector<192x16xf32>
    %cst_77 = arith.constant dense<0.000000e+00> : vector<192x8xf32>
    %167 = tpu.matmul %166, %164, %cst_77 {dimension_numbers = #tpu.dot_dimension_numbers<[1], [0], [0], [1], [0, 0, 1, 1], [], []>} : vector<192x16xf32>, vector<16x8xf32>, vector<192x8xf32> -> vector<192x8xf32>
    %168 = vector.shape_cast %167 : vector<192x8xf32> to vector<4x48x8xf32>
    %169 = tpu.transpose %168, [0, 2, 1] : vector<4x48x8xf32> -> vector<4x8x48xf32>
    %170 = vector.shape_cast %169 : vector<4x8x48xf32> to vector<32x48xf32>
    %cst_78 = arith.constant dense<0.000000e+00> : vector<32x24xf32>
    %171 = tpu.matmul %170, %163, %cst_78 {dimension_numbers = #tpu.dot_dimension_numbers<[1], [0], [0], [1], [0, 0, 1, 1], [], []>} : vector<32x48xf32>, vector<48x24xf32>, vector<32x24xf32> -> vector<32x24xf32>
    %172 = vector.shape_cast %171 : vector<32x24xf32> to vector<4x8x24xf32>
    %173 = vector.extract_strided_slice %172 {offsets = [0, 0, 0], sizes = [2, 8, 24], strides = [1, 1, 1]} : vector<4x8x24xf32> to vector<2x8x24xf32>
    %174 = vector.extract_strided_slice %172 {offsets = [2, 0, 0], sizes = [2, 8, 24], strides = [1, 1, 1]} : vector<4x8x24xf32> to vector<2x8x24xf32>
    %c0_79 = arith.constant 0 : index
    %c0_80 = arith.constant 0 : index
    %c0_81 = arith.constant 0 : index
    %175 = vector.load %arg4[%c0_79, %c0_80, %c0_81] : memref<10x32x96xf32, #tpu.memory_space<vmem>>, vector<2x8x24xf32>
    tpu.vector_store %arg4[%c0_79, %c0_80, %c0_81], %173 {strides = array<i32>} : memref<10x32x96xf32, #tpu.memory_space<vmem>>, vector<2x8x24xf32>,
    %c2_82 = arith.constant 2 : index
    %c0_83 = arith.constant 0 : index
    %c0_84 = arith.constant 0 : index
    %176 = vector.load %arg4[%c2_82, %c0_83, %c0_84] : memref<10x32x96xf32, #tpu.memory_space<vmem>>, vector<2x8x24xf32>
    tpu.vector_store %arg4[%c2_82, %c0_83, %c0_84], %174 {strides = array<i32>} : memref<10x32x96xf32, #tpu.memory_space<vmem>>, vector<2x8x24xf32>,
    %177 = arith.mulf %173, %173 : vector<2x8x24xf32>
    %c4_85 = arith.constant 4 : index
    %c0_86 = arith.constant 0 : index
    %c0_87 = arith.constant 0 : index
    %178 = vector.load %arg4[%c4_85, %c0_86, %c0_87] : memref<10x32x96xf32, #tpu.memory_space<vmem>>, vector<2x8x24xf32>
    tpu.vector_store %arg4[%c4_85, %c0_86, %c0_87], %177 {strides = array<i32>} : memref<10x32x96xf32, #tpu.memory_space<vmem>>, vector<2x8x24xf32>,
    %179 = arith.mulf %174, %174 : vector<2x8x24xf32>
    %c6_88 = arith.constant 6 : index
    %c0_89 = arith.constant 0 : index
    %c0_90 = arith.constant 0 : index
    %180 = vector.load %arg4[%c6_88, %c0_89, %c0_90] : memref<10x32x96xf32, #tpu.memory_space<vmem>>, vector<2x8x24xf32>
    tpu.vector_store %arg4[%c6_88, %c0_89, %c0_90], %179 {strides = array<i32>} : memref<10x32x96xf32, #tpu.memory_space<vmem>>, vector<2x8x24xf32>,
    %181 = arith.mulf %173, %174 : vector<2x8x24xf32>
    %c8_91 = arith.constant 8 : index
    %c0_92 = arith.constant 0 : index
    %c0_93 = arith.constant 0 : index
    %182 = vector.load %arg4[%c8_91, %c0_92, %c0_93] : memref<10x32x96xf32, #tpu.memory_space<vmem>>, vector<2x8x24xf32>
    tpu.vector_store %arg4[%c8_91, %c0_92, %c0_93], %181 {strides = array<i32>} : memref<10x32x96xf32, #tpu.memory_space<vmem>>, vector<2x8x24xf32>,
    %c0_94 = arith.constant 0 : index
    %c0_95 = arith.constant 0 : index
    %c0_96 = arith.constant 0 : index
    %183 = vector.load %arg4[%c0_94, %c0_95, %c0_96] : memref<10x32x96xf32, #tpu.memory_space<vmem>>, vector<10x8x24xf32>
    %c400 = arith.constant 400 : index
    %c0_97 = arith.constant 0 : index
    %184 = vector.load %arg2[%c400, %c0_97] : memref<520x128xf32, #tpu.memory_space<vmem>>, vector<27x24xf32>
    %c384 = arith.constant 384 : index
    %c0_98 = arith.constant 0 : index
    %185 = vector.load %arg2[%c384, %c0_98] : memref<520x128xf32, #tpu.memory_space<vmem>>, vector<9x8xf32>
    %186 = vector.shape_cast %184 : vector<27x24xf32> to vector<1x27x24xf32>
    %187 = vector.shape_cast %186 : vector<1x27x24xf32> to vector<1x27x24xf32>
    %188 = vector.broadcast %187 : vector<1x27x24xf32> to vector<10x27x24xf32>
    %cst_99 = arith.constant dense<0.000000e+00> : vector<10x8x27xf32>
    %189 = tpu.matmul %183, %188, %cst_99 {dimension_numbers = #tpu.dot_dimension_numbers<[2], [2], [1], [1], [0, 0, 0, 1, 1, 1], [0], [0]>} : vector<10x8x24xf32>, vector<10x27x24xf32>, vector<10x8x27xf32> -> vector<10x8x27xf32>
    %190 = vector.shape_cast %185 : vector<9x8xf32> to vector<1x9x8xf32>
    %191 = vector.shape_cast %190 : vector<1x9x8xf32> to vector<1x9x8xf32>
    %192 = vector.broadcast %191 : vector<1x9x8xf32> to vector<10x9x8xf32>
    %cst_100 = arith.constant dense<0.000000e+00> : vector<10x9x27xf32>
    %193 = tpu.matmul %192, %189, %cst_100 {dimension_numbers = #tpu.dot_dimension_numbers<[2], [1], [1], [2], [0, 0, 0, 1, 1, 2], [0], [0]>} : vector<10x9x8xf32>, vector<10x8x27xf32>, vector<10x9x27xf32> -> vector<10x9x27xf32>
    %194 = vector.extract_strided_slice %193 {offsets = [0, 0, 0], sizes = [2, 9, 27], strides = [1, 1, 1]} : vector<10x9x27xf32> to vector<2x9x27xf32>
    %195 = vector.extract_strided_slice %193 {offsets = [2, 0, 0], sizes = [2, 9, 27], strides = [1, 1, 1]} : vector<10x9x27xf32> to vector<2x9x27xf32>
    %196 = vector.extract_strided_slice %193 {offsets = [4, 0, 0], sizes = [2, 9, 27], strides = [1, 1, 1]} : vector<10x9x27xf32> to vector<2x9x27xf32>
    %197 = vector.extract_strided_slice %193 {offsets = [6, 0, 0], sizes = [2, 9, 27], strides = [1, 1, 1]} : vector<10x9x27xf32> to vector<2x9x27xf32>
    %198 = vector.extract_strided_slice %193 {offsets = [8, 0, 0], sizes = [2, 9, 27], strides = [1, 1, 1]} : vector<10x9x27xf32> to vector<2x9x27xf32>
    %199 = arith.mulf %194, %194 : vector<2x9x27xf32>
    %200 = arith.mulf %195, %195 : vector<2x9x27xf32>
    %201 = arith.mulf %194, %195 : vector<2x9x27xf32>
    %202 = arith.addf %199, %200 : vector<2x9x27xf32>
    %cst_101 = arith.constant 9.99999974E-5 : f32
    %203 = vector.broadcast %cst_101 : f32 to vector<2x9x27xf32>
    %204 = arith.addf %202, %203 : vector<2x9x27xf32>
    %205 = arith.subf %196, %199 : vector<2x9x27xf32>
    %206 = arith.subf %197, %200 : vector<2x9x27xf32>
    %207 = arith.addf %205, %206 : vector<2x9x27xf32>
    %cst_102 = arith.constant 8.99999984E-4 : f32
    %208 = vector.broadcast %cst_102 : f32 to vector<2x9x27xf32>
    %209 = arith.addf %207, %208 : vector<2x9x27xf32>
    %210 = arith.subf %198, %201 : vector<2x9x27xf32>
    %cst_103 = arith.constant 2.000000e+00 : f32
    %211 = vector.broadcast %cst_103 : f32 to vector<2x9x27xf32>
    %212 = arith.mulf %211, %210 : vector<2x9x27xf32>
    %cst_104 = arith.constant 8.99999984E-4 : f32
    %213 = vector.broadcast %cst_104 : f32 to vector<2x9x27xf32>
    %214 = arith.addf %212, %213 : vector<2x9x27xf32>
    %cst_105 = arith.constant 2.000000e+00 : f32
    %215 = vector.broadcast %cst_105 : f32 to vector<2x9x27xf32>
    %216 = arith.mulf %215, %201 : vector<2x9x27xf32>
    %cst_106 = arith.constant 9.99999974E-5 : f32
    %217 = vector.broadcast %cst_106 : f32 to vector<2x9x27xf32>
    %218 = arith.addf %216, %217 : vector<2x9x27xf32>
    %219 = tpu.reciprocal %209 {approx = true} : vector<2x9x27xf32> -> vector<2x9x27xf32>
    %220 = arith.mulf %209, %219 : vector<2x9x27xf32>
    %cst_107 = arith.constant 2.000000e+00 : f32
    %221 = vector.broadcast %cst_107 : f32 to vector<2x9x27xf32>
    %222 = arith.subf %221, %220 : vector<2x9x27xf32>
    %223 = arith.mulf %219, %222 : vector<2x9x27xf32>
    %224 = arith.mulf %214, %223 : vector<2x9x27xf32>
    %225 = tpu.reciprocal %204 {approx = true} : vector<2x9x27xf32> -> vector<2x9x27xf32>
    %226 = arith.mulf %204, %225 : vector<2x9x27xf32>
    %cst_108 = arith.constant 2.000000e+00 : f32
    %227 = vector.broadcast %cst_108 : f32 to vector<2x9x27xf32>
    %228 = arith.subf %227, %226 : vector<2x9x27xf32>
    %229 = arith.mulf %225, %228 : vector<2x9x27xf32>
    %230 = arith.mulf %218, %229 : vector<2x9x27xf32>
    %231 = arith.mulf %230, %224 : vector<2x9x27xf32>
    %c0_i32_109 = arith.constant 0 : i32
    %232 = vector.broadcast %c0_i32_109 : i32 to vector<2x128xi32>
    %233 = arith.cmpi eq, %2, %232 : vector<2x128xi32>
    %234 = vector.shape_cast %231 : vector<2x9x27xf32> to vector<1x2x9x27xf32>
    %cst_110 = arith.constant dense<0.000000e+00> : vector<1xf32>
    %235 = vector.multi_reduction <add>, %234, %cst_110 [1, 2, 3] : vector<1x2x9x27xf32> to vector<1xf32>
    %236 = vector.shape_cast %235 : vector<1xf32> to vector<1x1x1x1xf32>
    %237 = vector.extract %236[0, 0, 0, 0] : f32 from vector<1x1x1x1xf32>
    %238 = vector.shape_cast %224 : vector<2x9x27xf32> to vector<1x2x9x27xf32>
    %cst_111 = arith.constant dense<0.000000e+00> : vector<1xf32>
    %239 = vector.multi_reduction <add>, %238, %cst_111 [1, 2, 3] : vector<1x2x9x27xf32> to vector<1xf32>
    %240 = vector.shape_cast %239 : vector<1xf32> to vector<1x1x1x1xf32>
    %241 = vector.extract %240[0, 0, 0, 0] : f32 from vector<1x1x1x1xf32>
    %242 = vector.broadcast %237 : f32 to vector<2x128xf32>
    %243 = vector.broadcast %241 : f32 to vector<2x128xf32>
    %244 = arith.select %233, %242, %243 : vector<2x128xi1>, vector<2x128xf32>
    %c0_112 = arith.constant 0 : index
    %c2_113 = arith.constant 2 : index
    %c0_114 = arith.constant 0 : index
    %c0_115 = arith.constant 0 : index
    %245 = vector.load %arg3[%c0_112, %c2_113, %c0_114, %c0_115] : memref<1x5x2x128xf32, #tpu.memory_space<vmem>>, vector<1x1x2x128xf32>
    %246 = vector.shape_cast %245 : vector<1x1x2x128xf32> to vector<2x128xf32>
    %247 = vector.shape_cast %244 : vector<2x128xf32> to vector<1x1x2x128xf32>
    tpu.vector_store %arg3[%c0_112, %c2_113, %c0_114, %c0_115], %247 {strides = array<i32>} : memref<1x5x2x128xf32, #tpu.memory_space<vmem>>, vector<1x1x2x128xf32>,
    %c440 = arith.constant 440 : index
    %c0_116 = arith.constant 0 : index
    %248 = vector.load %arg2[%c440, %c0_116] : memref<520x128xf32, #tpu.memory_space<vmem>>, vector<12x24xf32>
    %c432 = arith.constant 432 : index
    %c0_117 = arith.constant 0 : index
    %249 = vector.load %arg2[%c432, %c0_117] : memref<520x128xf32, #tpu.memory_space<vmem>>, vector<4x8xf32>
    %250 = vector.shape_cast %248 : vector<12x24xf32> to vector<1x12x24xf32>
    %251 = vector.shape_cast %250 : vector<1x12x24xf32> to vector<1x12x24xf32>
    %252 = vector.broadcast %251 : vector<1x12x24xf32> to vector<4x12x24xf32>
    %cst_118 = arith.constant dense<0.000000e+00> : vector<4x8x12xf32>
    %253 = tpu.matmul %172, %252, %cst_118 {dimension_numbers = #tpu.dot_dimension_numbers<[2], [2], [1], [1], [0, 0, 0, 1, 1, 1], [0], [0]>} : vector<4x8x24xf32>, vector<4x12x24xf32>, vector<4x8x12xf32> -> vector<4x8x12xf32>
    %254 = vector.shape_cast %249 : vector<4x8xf32> to vector<1x4x8xf32>
    %255 = vector.shape_cast %254 : vector<1x4x8xf32> to vector<1x4x8xf32>
    %256 = vector.broadcast %255 : vector<1x4x8xf32> to vector<4x4x8xf32>
    %cst_119 = arith.constant dense<0.000000e+00> : vector<4x4x12xf32>
    %257 = tpu.matmul %256, %253, %cst_119 {dimension_numbers = #tpu.dot_dimension_numbers<[2], [1], [1], [2], [0, 0, 0, 1, 1, 2], [0], [0]>} : vector<4x4x8xf32>, vector<4x8x12xf32>, vector<4x4x12xf32> -> vector<4x4x12xf32>
    %258 = vector.extract_strided_slice %257 {offsets = [0, 0, 0], sizes = [2, 4, 12], strides = [1, 1, 1]} : vector<4x4x12xf32> to vector<2x4x12xf32>
    %259 = vector.extract_strided_slice %257 {offsets = [2, 0, 0], sizes = [2, 4, 12], strides = [1, 1, 1]} : vector<4x4x12xf32> to vector<2x4x12xf32>
    %c0_120 = arith.constant 0 : index
    %c0_121 = arith.constant 0 : index
    %c0_122 = arith.constant 0 : index
    %260 = vector.load %arg4[%c0_120, %c0_121, %c0_122] : memref<10x32x96xf32, #tpu.memory_space<vmem>>, vector<2x4x12xf32>
    tpu.vector_store %arg4[%c0_120, %c0_121, %c0_122], %258 {strides = array<i32>} : memref<10x32x96xf32, #tpu.memory_space<vmem>>, vector<2x4x12xf32>,
    %c2_123 = arith.constant 2 : index
    %c0_124 = arith.constant 0 : index
    %c0_125 = arith.constant 0 : index
    %261 = vector.load %arg4[%c2_123, %c0_124, %c0_125] : memref<10x32x96xf32, #tpu.memory_space<vmem>>, vector<2x4x12xf32>
    tpu.vector_store %arg4[%c2_123, %c0_124, %c0_125], %259 {strides = array<i32>} : memref<10x32x96xf32, #tpu.memory_space<vmem>>, vector<2x4x12xf32>,
    %262 = arith.mulf %258, %258 : vector<2x4x12xf32>
    %c4_126 = arith.constant 4 : index
    %c0_127 = arith.constant 0 : index
    %c0_128 = arith.constant 0 : index
    %263 = vector.load %arg4[%c4_126, %c0_127, %c0_128] : memref<10x32x96xf32, #tpu.memory_space<vmem>>, vector<2x4x12xf32>
    tpu.vector_store %arg4[%c4_126, %c0_127, %c0_128], %262 {strides = array<i32>} : memref<10x32x96xf32, #tpu.memory_space<vmem>>, vector<2x4x12xf32>,
    %264 = arith.mulf %259, %259 : vector<2x4x12xf32>
    %c6_129 = arith.constant 6 : index
    %c0_130 = arith.constant 0 : index
    %c0_131 = arith.constant 0 : index
    %265 = vector.load %arg4[%c6_129, %c0_130, %c0_131] : memref<10x32x96xf32, #tpu.memory_space<vmem>>, vector<2x4x12xf32>
    tpu.vector_store %arg4[%c6_129, %c0_130, %c0_131], %264 {strides = array<i32>} : memref<10x32x96xf32, #tpu.memory_space<vmem>>, vector<2x4x12xf32>,
    %266 = arith.mulf %258, %259 : vector<2x4x12xf32>
    %c8_132 = arith.constant 8 : index
    %c0_133 = arith.constant 0 : index
    %c0_134 = arith.constant 0 : index
    %267 = vector.load %arg4[%c8_132, %c0_133, %c0_134] : memref<10x32x96xf32, #tpu.memory_space<vmem>>, vector<2x4x12xf32>
    tpu.vector_store %arg4[%c8_132, %c0_133, %c0_134], %266 {strides = array<i32>} : memref<10x32x96xf32, #tpu.memory_space<vmem>>, vector<2x4x12xf32>,
    %c0_135 = arith.constant 0 : index
    %c0_136 = arith.constant 0 : index
    %c0_137 = arith.constant 0 : index
    %268 = vector.load %arg4[%c0_135, %c0_136, %c0_137] : memref<10x32x96xf32, #tpu.memory_space<vmem>>, vector<10x4x12xf32>
    %c464 = arith.constant 464 : index
    %c0_138 = arith.constant 0 : index
    %269 = vector.load %arg2[%c464, %c0_138] : memref<520x128xf32, #tpu.memory_space<vmem>>, vector<15x12xf32>
    %c456 = arith.constant 456 : index
    %c0_139 = arith.constant 0 : index
    %270 = vector.load %arg2[%c456, %c0_139] : memref<520x128xf32, #tpu.memory_space<vmem>>, vector<5x4xf32>
    %271 = vector.shape_cast %269 : vector<15x12xf32> to vector<1x15x12xf32>
    %272 = vector.shape_cast %271 : vector<1x15x12xf32> to vector<1x15x12xf32>
    %273 = vector.broadcast %272 : vector<1x15x12xf32> to vector<10x15x12xf32>
    %cst_140 = arith.constant dense<0.000000e+00> : vector<10x4x15xf32>
    %274 = tpu.matmul %268, %273, %cst_140 {dimension_numbers = #tpu.dot_dimension_numbers<[2], [2], [1], [1], [0, 0, 0, 1, 1, 1], [0], [0]>} : vector<10x4x12xf32>, vector<10x15x12xf32>, vector<10x4x15xf32> -> vector<10x4x15xf32>
    %275 = vector.shape_cast %270 : vector<5x4xf32> to vector<1x5x4xf32>
    %276 = vector.shape_cast %275 : vector<1x5x4xf32> to vector<1x5x4xf32>
    %277 = vector.broadcast %276 : vector<1x5x4xf32> to vector<10x5x4xf32>
    %cst_141 = arith.constant dense<0.000000e+00> : vector<10x5x15xf32>
    %278 = tpu.matmul %277, %274, %cst_141 {dimension_numbers = #tpu.dot_dimension_numbers<[2], [1], [1], [2], [0, 0, 0, 1, 1, 2], [0], [0]>} : vector<10x5x4xf32>, vector<10x4x15xf32>, vector<10x5x15xf32> -> vector<10x5x15xf32>
    %279 = vector.extract_strided_slice %278 {offsets = [0, 0, 0], sizes = [2, 5, 15], strides = [1, 1, 1]} : vector<10x5x15xf32> to vector<2x5x15xf32>
    %280 = vector.extract_strided_slice %278 {offsets = [2, 0, 0], sizes = [2, 5, 15], strides = [1, 1, 1]} : vector<10x5x15xf32> to vector<2x5x15xf32>
    %281 = vector.extract_strided_slice %278 {offsets = [4, 0, 0], sizes = [2, 5, 15], strides = [1, 1, 1]} : vector<10x5x15xf32> to vector<2x5x15xf32>
    %282 = vector.extract_strided_slice %278 {offsets = [6, 0, 0], sizes = [2, 5, 15], strides = [1, 1, 1]} : vector<10x5x15xf32> to vector<2x5x15xf32>
    %283 = vector.extract_strided_slice %278 {offsets = [8, 0, 0], sizes = [2, 5, 15], strides = [1, 1, 1]} : vector<10x5x15xf32> to vector<2x5x15xf32>
    %284 = arith.mulf %279, %279 : vector<2x5x15xf32>
    %285 = arith.mulf %280, %280 : vector<2x5x15xf32>
    %286 = arith.mulf %279, %280 : vector<2x5x15xf32>
    %287 = arith.addf %284, %285 : vector<2x5x15xf32>
    %cst_142 = arith.constant 9.99999974E-5 : f32
    %288 = vector.broadcast %cst_142 : f32 to vector<2x5x15xf32>
    %289 = arith.addf %287, %288 : vector<2x5x15xf32>
    %290 = arith.subf %281, %284 : vector<2x5x15xf32>
    %291 = arith.subf %282, %285 : vector<2x5x15xf32>
    %292 = arith.addf %290, %291 : vector<2x5x15xf32>
    %cst_143 = arith.constant 8.99999984E-4 : f32
    %293 = vector.broadcast %cst_143 : f32 to vector<2x5x15xf32>
    %294 = arith.addf %292, %293 : vector<2x5x15xf32>
    %295 = arith.subf %283, %286 : vector<2x5x15xf32>
    %cst_144 = arith.constant 2.000000e+00 : f32
    %296 = vector.broadcast %cst_144 : f32 to vector<2x5x15xf32>
    %297 = arith.mulf %296, %295 : vector<2x5x15xf32>
    %cst_145 = arith.constant 8.99999984E-4 : f32
    %298 = vector.broadcast %cst_145 : f32 to vector<2x5x15xf32>
    %299 = arith.addf %297, %298 : vector<2x5x15xf32>
    %cst_146 = arith.constant 2.000000e+00 : f32
    %300 = vector.broadcast %cst_146 : f32 to vector<2x5x15xf32>
    %301 = arith.mulf %300, %286 : vector<2x5x15xf32>
    %cst_147 = arith.constant 9.99999974E-5 : f32
    %302 = vector.broadcast %cst_147 : f32 to vector<2x5x15xf32>
    %303 = arith.addf %301, %302 : vector<2x5x15xf32>
    %304 = tpu.reciprocal %294 {approx = true} : vector<2x5x15xf32> -> vector<2x5x15xf32>
    %305 = arith.mulf %294, %304 : vector<2x5x15xf32>
    %cst_148 = arith.constant 2.000000e+00 : f32
    %306 = vector.broadcast %cst_148 : f32 to vector<2x5x15xf32>
    %307 = arith.subf %306, %305 : vector<2x5x15xf32>
    %308 = arith.mulf %304, %307 : vector<2x5x15xf32>
    %309 = arith.mulf %299, %308 : vector<2x5x15xf32>
    %310 = tpu.reciprocal %289 {approx = true} : vector<2x5x15xf32> -> vector<2x5x15xf32>
    %311 = arith.mulf %289, %310 : vector<2x5x15xf32>
    %cst_149 = arith.constant 2.000000e+00 : f32
    %312 = vector.broadcast %cst_149 : f32 to vector<2x5x15xf32>
    %313 = arith.subf %312, %311 : vector<2x5x15xf32>
    %314 = arith.mulf %310, %313 : vector<2x5x15xf32>
    %315 = arith.mulf %303, %314 : vector<2x5x15xf32>
    %316 = arith.mulf %315, %309 : vector<2x5x15xf32>
    %c0_i32_150 = arith.constant 0 : i32
    %317 = vector.broadcast %c0_i32_150 : i32 to vector<2x128xi32>
    %318 = arith.cmpi eq, %2, %317 : vector<2x128xi32>
    %319 = vector.shape_cast %316 : vector<2x5x15xf32> to vector<1x2x5x15xf32>
    %cst_151 = arith.constant dense<0.000000e+00> : vector<1xf32>
    %320 = vector.multi_reduction <add>, %319, %cst_151 [1, 2, 3] : vector<1x2x5x15xf32> to vector<1xf32>
    %321 = vector.shape_cast %320 : vector<1xf32> to vector<1x1x1x1xf32>
    %322 = vector.extract %321[0, 0, 0, 0] : f32 from vector<1x1x1x1xf32>
    %323 = vector.shape_cast %309 : vector<2x5x15xf32> to vector<1x2x5x15xf32>
    %cst_152 = arith.constant dense<0.000000e+00> : vector<1xf32>
    %324 = vector.multi_reduction <add>, %323, %cst_152 [1, 2, 3] : vector<1x2x5x15xf32> to vector<1xf32>
    %325 = vector.shape_cast %324 : vector<1xf32> to vector<1x1x1x1xf32>
    %326 = vector.extract %325[0, 0, 0, 0] : f32 from vector<1x1x1x1xf32>
    %327 = vector.broadcast %322 : f32 to vector<2x128xf32>
    %328 = vector.broadcast %326 : f32 to vector<2x128xf32>
    %329 = arith.select %318, %327, %328 : vector<2x128xi1>, vector<2x128xf32>
    %c0_153 = arith.constant 0 : index
    %c3 = arith.constant 3 : index
    %c0_154 = arith.constant 0 : index
    %c0_155 = arith.constant 0 : index
    %330 = vector.load %arg3[%c0_153, %c3, %c0_154, %c0_155] : memref<1x5x2x128xf32, #tpu.memory_space<vmem>>, vector<1x1x2x128xf32>
    %331 = vector.shape_cast %330 : vector<1x1x2x128xf32> to vector<2x128xf32>
    %332 = vector.shape_cast %329 : vector<2x128xf32> to vector<1x1x2x128xf32>
    tpu.vector_store %arg3[%c0_153, %c3, %c0_154, %c0_155], %332 {strides = array<i32>} : memref<1x5x2x128xf32, #tpu.memory_space<vmem>>, vector<1x1x2x128xf32>,
    %c488 = arith.constant 488 : index
    %c0_156 = arith.constant 0 : index
    %333 = vector.load %arg2[%c488, %c0_156] : memref<520x128xf32, #tpu.memory_space<vmem>>, vector<6x12xf32>
    %c480 = arith.constant 480 : index
    %c0_157 = arith.constant 0 : index
    %334 = vector.load %arg2[%c480, %c0_157] : memref<520x128xf32, #tpu.memory_space<vmem>>, vector<2x4xf32>
    %335 = vector.shape_cast %333 : vector<6x12xf32> to vector<1x6x12xf32>
    %336 = vector.shape_cast %335 : vector<1x6x12xf32> to vector<1x6x12xf32>
    %337 = vector.broadcast %336 : vector<1x6x12xf32> to vector<4x6x12xf32>
    %cst_158 = arith.constant dense<0.000000e+00> : vector<4x4x6xf32>
    %338 = tpu.matmul %257, %337, %cst_158 {dimension_numbers = #tpu.dot_dimension_numbers<[2], [2], [1], [1], [0, 0, 0, 1, 1, 1], [0], [0]>} : vector<4x4x12xf32>, vector<4x6x12xf32>, vector<4x4x6xf32> -> vector<4x4x6xf32>
    %339 = vector.shape_cast %334 : vector<2x4xf32> to vector<1x2x4xf32>
    %340 = vector.shape_cast %339 : vector<1x2x4xf32> to vector<1x2x4xf32>
    %341 = vector.broadcast %340 : vector<1x2x4xf32> to vector<4x2x4xf32>
    %cst_159 = arith.constant dense<0.000000e+00> : vector<4x2x6xf32>
    %342 = tpu.matmul %341, %338, %cst_159 {dimension_numbers = #tpu.dot_dimension_numbers<[2], [1], [1], [2], [0, 0, 0, 1, 1, 2], [0], [0]>} : vector<4x2x4xf32>, vector<4x4x6xf32>, vector<4x2x6xf32> -> vector<4x2x6xf32>
    %343 = vector.extract_strided_slice %342 {offsets = [0, 0, 0], sizes = [2, 2, 6], strides = [1, 1, 1]} : vector<4x2x6xf32> to vector<2x2x6xf32>
    %344 = vector.extract_strided_slice %342 {offsets = [2, 0, 0], sizes = [2, 2, 6], strides = [1, 1, 1]} : vector<4x2x6xf32> to vector<2x2x6xf32>
    %c0_160 = arith.constant 0 : index
    %c0_161 = arith.constant 0 : index
    %c0_162 = arith.constant 0 : index
    %345 = vector.load %arg4[%c0_160, %c0_161, %c0_162] : memref<10x32x96xf32, #tpu.memory_space<vmem>>, vector<2x2x6xf32>
    tpu.vector_store %arg4[%c0_160, %c0_161, %c0_162], %343 {strides = array<i32>} : memref<10x32x96xf32, #tpu.memory_space<vmem>>, vector<2x2x6xf32>,
    %c2_163 = arith.constant 2 : index
    %c0_164 = arith.constant 0 : index
    %c0_165 = arith.constant 0 : index
    %346 = vector.load %arg4[%c2_163, %c0_164, %c0_165] : memref<10x32x96xf32, #tpu.memory_space<vmem>>, vector<2x2x6xf32>
    tpu.vector_store %arg4[%c2_163, %c0_164, %c0_165], %344 {strides = array<i32>} : memref<10x32x96xf32, #tpu.memory_space<vmem>>, vector<2x2x6xf32>,
    %347 = arith.mulf %343, %343 : vector<2x2x6xf32>
    %c4_166 = arith.constant 4 : index
    %c0_167 = arith.constant 0 : index
    %c0_168 = arith.constant 0 : index
    %348 = vector.load %arg4[%c4_166, %c0_167, %c0_168] : memref<10x32x96xf32, #tpu.memory_space<vmem>>, vector<2x2x6xf32>
    tpu.vector_store %arg4[%c4_166, %c0_167, %c0_168], %347 {strides = array<i32>} : memref<10x32x96xf32, #tpu.memory_space<vmem>>, vector<2x2x6xf32>,
    %349 = arith.mulf %344, %344 : vector<2x2x6xf32>
    %c6_169 = arith.constant 6 : index
    %c0_170 = arith.constant 0 : index
    %c0_171 = arith.constant 0 : index
    %350 = vector.load %arg4[%c6_169, %c0_170, %c0_171] : memref<10x32x96xf32, #tpu.memory_space<vmem>>, vector<2x2x6xf32>
    tpu.vector_store %arg4[%c6_169, %c0_170, %c0_171], %349 {strides = array<i32>} : memref<10x32x96xf32, #tpu.memory_space<vmem>>, vector<2x2x6xf32>,
    %351 = arith.mulf %343, %344 : vector<2x2x6xf32>
    %c8_172 = arith.constant 8 : index
    %c0_173 = arith.constant 0 : index
    %c0_174 = arith.constant 0 : index
    %352 = vector.load %arg4[%c8_172, %c0_173, %c0_174] : memref<10x32x96xf32, #tpu.memory_space<vmem>>, vector<2x2x6xf32>
    tpu.vector_store %arg4[%c8_172, %c0_173, %c0_174], %351 {strides = array<i32>} : memref<10x32x96xf32, #tpu.memory_space<vmem>>, vector<2x2x6xf32>,
    %c0_175 = arith.constant 0 : index
    %c0_176 = arith.constant 0 : index
    %c0_177 = arith.constant 0 : index
    %353 = vector.load %arg4[%c0_175, %c0_176, %c0_177] : memref<10x32x96xf32, #tpu.memory_space<vmem>>, vector<10x2x6xf32>
    %c504 = arith.constant 504 : index
    %c0_178 = arith.constant 0 : index
    %354 = vector.load %arg2[%c504, %c0_178] : memref<520x128xf32, #tpu.memory_space<vmem>>, vector<9x6xf32>
    %c496 = arith.constant 496 : index
    %c0_179 = arith.constant 0 : index
    %355 = vector.load %arg2[%c496, %c0_179] : memref<520x128xf32, #tpu.memory_space<vmem>>, vector<3x2xf32>
    %356 = vector.shape_cast %354 : vector<9x6xf32> to vector<1x9x6xf32>
    %357 = vector.shape_cast %356 : vector<1x9x6xf32> to vector<1x9x6xf32>
    %358 = vector.broadcast %357 : vector<1x9x6xf32> to vector<10x9x6xf32>
    %cst_180 = arith.constant dense<0.000000e+00> : vector<10x2x9xf32>
    %359 = tpu.matmul %353, %358, %cst_180 {dimension_numbers = #tpu.dot_dimension_numbers<[2], [2], [1], [1], [0, 0, 0, 1, 1, 1], [0], [0]>} : vector<10x2x6xf32>, vector<10x9x6xf32>, vector<10x2x9xf32> -> vector<10x2x9xf32>
    %360 = vector.shape_cast %355 : vector<3x2xf32> to vector<1x3x2xf32>
    %361 = vector.shape_cast %360 : vector<1x3x2xf32> to vector<1x3x2xf32>
    %362 = vector.broadcast %361 : vector<1x3x2xf32> to vector<10x3x2xf32>
    %cst_181 = arith.constant dense<0.000000e+00> : vector<10x3x9xf32>
    %363 = tpu.matmul %362, %359, %cst_181 {dimension_numbers = #tpu.dot_dimension_numbers<[2], [1], [1], [2], [0, 0, 0, 1, 1, 2], [0], [0]>} : vector<10x3x2xf32>, vector<10x2x9xf32>, vector<10x3x9xf32> -> vector<10x3x9xf32>
    %364 = vector.extract_strided_slice %363 {offsets = [0, 0, 0], sizes = [2, 3, 9], strides = [1, 1, 1]} : vector<10x3x9xf32> to vector<2x3x9xf32>
    %365 = vector.extract_strided_slice %363 {offsets = [2, 0, 0], sizes = [2, 3, 9], strides = [1, 1, 1]} : vector<10x3x9xf32> to vector<2x3x9xf32>
    %366 = vector.extract_strided_slice %363 {offsets = [4, 0, 0], sizes = [2, 3, 9], strides = [1, 1, 1]} : vector<10x3x9xf32> to vector<2x3x9xf32>
    %367 = vector.extract_strided_slice %363 {offsets = [6, 0, 0], sizes = [2, 3, 9], strides = [1, 1, 1]} : vector<10x3x9xf32> to vector<2x3x9xf32>
    %368 = vector.extract_strided_slice %363 {offsets = [8, 0, 0], sizes = [2, 3, 9], strides = [1, 1, 1]} : vector<10x3x9xf32> to vector<2x3x9xf32>
    %369 = arith.mulf %364, %364 : vector<2x3x9xf32>
    %370 = arith.mulf %365, %365 : vector<2x3x9xf32>
    %371 = arith.mulf %364, %365 : vector<2x3x9xf32>
    %372 = arith.addf %369, %370 : vector<2x3x9xf32>
    %cst_182 = arith.constant 9.99999974E-5 : f32
    %373 = vector.broadcast %cst_182 : f32 to vector<2x3x9xf32>
    %374 = arith.addf %372, %373 : vector<2x3x9xf32>
    %375 = arith.subf %366, %369 : vector<2x3x9xf32>
    %376 = arith.subf %367, %370 : vector<2x3x9xf32>
    %377 = arith.addf %375, %376 : vector<2x3x9xf32>
    %cst_183 = arith.constant 8.99999984E-4 : f32
    %378 = vector.broadcast %cst_183 : f32 to vector<2x3x9xf32>
    %379 = arith.addf %377, %378 : vector<2x3x9xf32>
    %380 = arith.subf %368, %371 : vector<2x3x9xf32>
    %cst_184 = arith.constant 2.000000e+00 : f32
    %381 = vector.broadcast %cst_184 : f32 to vector<2x3x9xf32>
    %382 = arith.mulf %381, %380 : vector<2x3x9xf32>
    %cst_185 = arith.constant 8.99999984E-4 : f32
    %383 = vector.broadcast %cst_185 : f32 to vector<2x3x9xf32>
    %384 = arith.addf %382, %383 : vector<2x3x9xf32>
    %cst_186 = arith.constant 2.000000e+00 : f32
    %385 = vector.broadcast %cst_186 : f32 to vector<2x3x9xf32>
    %386 = arith.mulf %385, %371 : vector<2x3x9xf32>
    %cst_187 = arith.constant 9.99999974E-5 : f32
    %387 = vector.broadcast %cst_187 : f32 to vector<2x3x9xf32>
    %388 = arith.addf %386, %387 : vector<2x3x9xf32>
    %389 = tpu.reciprocal %379 {approx = true} : vector<2x3x9xf32> -> vector<2x3x9xf32>
    %390 = arith.mulf %379, %389 : vector<2x3x9xf32>
    %cst_188 = arith.constant 2.000000e+00 : f32
    %391 = vector.broadcast %cst_188 : f32 to vector<2x3x9xf32>
    %392 = arith.subf %391, %390 : vector<2x3x9xf32>
    %393 = arith.mulf %389, %392 : vector<2x3x9xf32>
    %394 = arith.mulf %384, %393 : vector<2x3x9xf32>
    %395 = tpu.reciprocal %374 {approx = true} : vector<2x3x9xf32> -> vector<2x3x9xf32>
    %396 = arith.mulf %374, %395 : vector<2x3x9xf32>
    %cst_189 = arith.constant 2.000000e+00 : f32
    %397 = vector.broadcast %cst_189 : f32 to vector<2x3x9xf32>
    %398 = arith.subf %397, %396 : vector<2x3x9xf32>
    %399 = arith.mulf %395, %398 : vector<2x3x9xf32>
    %400 = arith.mulf %388, %399 : vector<2x3x9xf32>
    %401 = arith.mulf %400, %394 : vector<2x3x9xf32>
    %c0_i32_190 = arith.constant 0 : i32
    %402 = vector.broadcast %c0_i32_190 : i32 to vector<2x128xi32>
    %403 = arith.cmpi eq, %2, %402 : vector<2x128xi32>
    %404 = vector.shape_cast %401 : vector<2x3x9xf32> to vector<1x2x3x9xf32>
    %cst_191 = arith.constant dense<0.000000e+00> : vector<1xf32>
    %405 = vector.multi_reduction <add>, %404, %cst_191 [1, 2, 3] : vector<1x2x3x9xf32> to vector<1xf32>
    %406 = vector.shape_cast %405 : vector<1xf32> to vector<1x1x1x1xf32>
    %407 = vector.extract %406[0, 0, 0, 0] : f32 from vector<1x1x1x1xf32>
    %408 = vector.shape_cast %394 : vector<2x3x9xf32> to vector<1x2x3x9xf32>
    %cst_192 = arith.constant dense<0.000000e+00> : vector<1xf32>
    %409 = vector.multi_reduction <add>, %408, %cst_192 [1, 2, 3] : vector<1x2x3x9xf32> to vector<1xf32>
    %410 = vector.shape_cast %409 : vector<1xf32> to vector<1x1x1x1xf32>
    %411 = vector.extract %410[0, 0, 0, 0] : f32 from vector<1x1x1x1xf32>
    %412 = vector.broadcast %407 : f32 to vector<2x128xf32>
    %413 = vector.broadcast %411 : f32 to vector<2x128xf32>
    %414 = arith.select %403, %412, %413 : vector<2x128xi1>, vector<2x128xf32>
    %c0_193 = arith.constant 0 : index
    %c4_194 = arith.constant 4 : index
    %c0_195 = arith.constant 0 : index
    %c0_196 = arith.constant 0 : index
    %415 = vector.load %arg3[%c0_193, %c4_194, %c0_195, %c0_196] : memref<1x5x2x128xf32, #tpu.memory_space<vmem>>, vector<1x1x2x128xf32>
    %416 = vector.shape_cast %415 : vector<1x1x2x128xf32> to vector<2x128xf32>
    %417 = vector.shape_cast %414 : vector<2x128xf32> to vector<1x1x2x128xf32>
    tpu.vector_store %arg3[%c0_193, %c4_194, %c0_195, %c0_196], %417 {strides = array<i32>} : memref<1x5x2x128xf32, #tpu.memory_space<vmem>>, vector<1x1x2x128xf32>,
    return
  }
  func.func @transform_0(%arg0: i32) -> (i32, i32, i32, i32) {
    %c0_i32 = arith.constant 0 : i32
    %c0_i32_0 = arith.constant 0 : i32
    %c0_i32_1 = arith.constant 0 : i32
    %c0_i32_2 = arith.constant 0 : i32
    return %c0_i32, %arg0, %c0_i32_0, %c0_i32_1 : i32, i32, i32, i32
  }
  func.func @transform_1(%arg0: i32) -> (i32, i32) {
    %c0_i32 = arith.constant 0 : i32
    %c0_i32_0 = arith.constant 0 : i32
    %c0_i32_1 = arith.constant 0 : i32
    return %c0_i32, %c0_i32_0 : i32, i32
  }
  func.func @transform_2(%arg0: i32) -> (i32, i32, i32, i32) {
    %c0_i32 = arith.constant 0 : i32
    %c0_i32_0 = arith.constant 0 : i32
    %c0_i32_1 = arith.constant 0 : i32
    %c0_i32_2 = arith.constant 0 : i32
    return %arg0, %c0_i32, %c0_i32_0, %c0_i32_1 : i32, i32, i32, i32
  }
}

</mosaic_0001>

<bundles_post_ra>
// kernel: ms_ssim_loss.1
= control target key start
LH: loop header
LB: loop body
LE: loop exit
PB: predicated region body
PF: predicated region fallthrough
CT: control target
= control target key end

     0   :  { %vm29_vm0 = vcmask 785408   ;;  %vm474_vm1 = vcmask 261120   ;;  %vm3308_vm2 = vcmask 392192   ;;  %vm3689_vm3 = vcmask 130048   ;;  %s15799_s0 = inlined_call_operand.vmem [shape: f32[2,2,32,96], index: 0, kind: input, shape index: {}]   ;;  %s15800_s1 = inlined_call_operand.vmem [shape: f32[520,128], index: 1, kind: input, shape index: {}]   ;;  %s15801_s2 = inlined_call_operand.vmem [shape: f32[1,5,2,128], index: 2, kind: output, shape index: {}]  }
   0x1   :  { %v14134_v0 = vld [vmem:[%s15799_s0] sm:$0xff]  ;;  %v14139_v1 = vld [vmem:[%s15799_s0 + $0x8] sm:$0xff]  ;;  %v14144_v2 = vld [vmem:[%s15799_s0 + $0x10] sm:$0xff]  ;;  %vm5535_vm4 = vcmask 195584   ;;  %vm14114_vm6 = vmmov 0   ;;  %vm6310_vm8 = vcmask 64512  }
   0x2   :  { %30 = vst.msk [vmem:[#allocation2] sm:$0xff] %vm29_vm0, %v14134_v0  ;;  %31 = vst.msk [vmem:[#allocation2 + $0x8] sm:$0xff] %vm29_vm0, %v14139_v1  ;;  %v14155_v3 = vld [vmem:[%s15799_s0 + $0x18] sm:$0xff]  ;;  %v14160_v4 = vld [vmem:[%s15799_s0 + $0x20] sm:$0xff]  ;;  %v47_v6 = vmul.f32 %v14134_v0, %v14134_v0  ;;  %v48_v7 = vmul.f32 %v14139_v1, %v14139_v1  ;;  %v49_v8 = vmul.f32 %v14144_v2, %v14144_v2  ;;  %vm7169_vm9 = vcmask 212992  }
   0x3   :  { %32 = vst.msk [vmem:[#allocation2 + $0x10] sm:$0xff] %vm29_vm0, %v14144_v2  ;;  %v14165_v5 = vld [vmem:[%s15799_s0 + $0x28] sm:$0xff]  ;;  %33 = vst.msk [vmem:[#allocation2 + $0x18] sm:$0xff] %vm29_vm0, %v14155_v3  ;;  %v14182_v9 = vld [vmem:[%s15799_s0 + $0x30] sm:$0xff]  ;;  %v50_v12 = vmul.f32 %v14155_v3, %v14155_v3  ;;  %v51_v13 = vmul.f32 %v14160_v4, %v14160_v4  ;;  %vm7167_vm10 = vcmask 220160   ;;  %vm7820_vm11 = vcmask 97280  }
   0x4   :  { %34 = vst.msk [vmem:[#allocation2 + $0x20] sm:$0xff] %vm29_vm0, %v14160_v4  ;;  %35 = vst.msk [vmem:[#allocation2 + $0x28] sm:$0xff] %vm29_vm0, %v14165_v5  ;;  %v14187_v10 = vld [vmem:[%s15799_s0 + $0x38] sm:$0xff]  ;;  %v14192_v11 = vld [vmem:[%s15799_s0 + $0x40] sm:$0xff]  ;;  %v52_v14 = vmul.f32 %v14165_v5, %v14165_v5  ;;  %v53_v18 = vmul.f32 %v14182_v9, %v14182_v9  ;;  %vm7790_vm13 = vcmask 93184   ;;  %vm8561_vm14 = vcmask 1043456  }
   0x5   :  { %36 = vst.msk [vmem:[#allocation2 + $0x30] sm:$0xff] %vm29_vm0, %v14182_v9  ;;  %37 = vst.msk [vmem:[#allocation2 + $0x38] sm:$0xff] %vm29_vm0, %v14187_v10  ;;  %v14209_v15 = vld [vmem:[%s15799_s0 + $0x48] sm:$0xff]  ;;  %v14214_v16 = vld [vmem:[%s15799_s0 + $0x50] sm:$0xff]  ;;  %v54_v19 = vmul.f32 %v14187_v10, %v14187_v10  ;;  %v64_v36 = vmul.f32 %v14192_v11, %v14192_v11  ;;  %v81_v53 = vmul.f32 %v14192_v11, %v14134_v0  ;;  %vm8557_vm15 = vcmask 31744  }
   0x6   :  { %39 = vst.msk [vmem:[#allocation2 + $0x40] sm:$0xff] %vm29_vm0, %v14192_v11  ;;  %v14219_v17 = vld [vmem:[%s15799_s0 + $0x58] sm:$0xff]  ;;  %56 = vst.msk [vmem:[#allocation2 + $0x80] sm:$0xff] %vm29_vm0, %v47_v6  ;;  %v14237_v20 = vld [vmem:[%s15799_s0 + $0x60] sm:$0xff]  ;;  %v65_v39 = vmul.f32 %v14209_v15, %v14209_v15  ;;  %v66_v40 = vmul.f32 %v14214_v16, %v14214_v16  ;;  %v82_v55 = vmul.f32 %v14209_v15, %v14139_v1 }
   0x7   :  { %57 = vst.msk [vmem:[#allocation2 + $0x88] sm:$0xff] %vm29_vm0, %v48_v7  ;;  %58 = vst.msk [vmem:[#allocation2 + $0x90] sm:$0xff] %vm29_vm0, %v49_v8  ;;  %v14242_v21 = vld [vmem:[%s15799_s0 + $0x68] sm:$0xff]  ;;  %v14247_v22 = vld [vmem:[%s15799_s0 + $0x70] sm:$0xff]  ;;  %v67_v41 = vmul.f32 %v14219_v17, %v14219_v17  ;;  %v68_v42 = vmul.f32 %v14237_v20, %v14237_v20  ;;  %v83_v56 = vmul.f32 %v14214_v16, %v14144_v2 }
   0x8   :  { %40 = vst.msk [vmem:[#allocation2 + $0x48] sm:$0xff] %vm29_vm0, %v14209_v15  ;;  %41 = vst.msk [vmem:[#allocation2 + $0x50] sm:$0xff] %vm29_vm0, %v14214_v16  ;;  %v14261_v23 = vld [vmem:[%s15799_s0 + $0x78] sm:$0xff]  ;;  %v150_v24 = vld [vmem:[%s15800_s1] sm:$0xff]  ;;  %v69_v43 = vmul.f32 %v14242_v21, %v14242_v21  ;;  %v70_v44 = vmul.f32 %v14247_v22, %v14247_v22  ;;  %v84_v57 = vmul.f32 %v14219_v17, %v14155_v3 }
   0x9   :  { %42 = vst.msk [vmem:[#allocation2 + $0x58] sm:$0xff] %vm29_vm0, %v14219_v17  ;;  %59 = vst.msk [vmem:[#allocation2 + $0x98] sm:$0xff] %vm29_vm0, %v50_v12  ;;  %v151_v25 = vld [vmem:[%s15800_s1 + $0x8] sm:$0xff]  ;;  %v152_v27 = vld [vmem:[%s15800_s1 + $0x10] sm:$0xff]  ;;  %v71_v46 = vmul.f32 %v14261_v23, %v14261_v23  ;;  %v85_v6 = vmul.f32 %v14237_v20, %v14160_v4  ;;  %v86_v12 = vmul.f32 %v14242_v21, %v14165_v5 }
   0xa   :  { %60 = vst.msk [vmem:[#allocation2 + $0xa0] sm:$0xff] %vm29_vm0, %v51_v13  ;;  %61 = vst.msk [vmem:[#allocation2 + $0xa8] sm:$0xff] %vm29_vm0, %v52_v14  ;;  %v13738_v26 = vpack.c.bf16 %v151_v25, %v150_v24  ;;  %v153_v28 = vld [vmem:[%s15800_s1 + $0x18] sm:$0xff]  ;;  %v98_v29 = vld [vmem:[#allocation2] sm:$0xff]  ;;  %v87_v13 = vmul.f32 %v14247_v22, %v14182_v9  ;;  %v88_v14 = vmul.f32 %v14261_v23, %v14187_v10 }
   0xb   :  { %43 = vst.msk [vmem:[#allocation2 + $0x60] sm:$0xff] %vm29_vm0, %v14237_v20  ;;  %44 = vst.msk [vmem:[#allocation2 + $0x68] sm:$0xff] %vm29_vm0, %v14242_v21  ;;  %v13742_v30 = vpack.c.bf16 %v153_v28, %v152_v27  ;;  %154 = vxpose.xlu0.b32.start [1/4] (short) (narrow) %v98_v29, 96  ;;  %v102_v31 = vld [vmem:[#allocation2 + $0x20] sm:$0xff]  ;;  %v99_v32 = vld [vmem:[#allocation2 + $0x8] sm:$0xff] }
   0xc   :  { %45 = vst.msk [vmem:[#allocation2 + $0x70] sm:$0xff] %vm29_vm0, %v14247_v22  ;;  %62 = vst.msk [vmem:[#allocation2 + $0xb0] sm:$0xff] %vm29_vm0, %v53_v18  ;;  %13739 = vmatprep.subr.bf16.mxu0 %v13738_v26  ;;  %186 = vxpose.xlu1.b32.start [1/4] (short) (narrow) %v102_v31, 96  ;;  %v103_v33 = vld [vmem:[#allocation2 + $0x28] sm:$0xff]  ;;  %v100_v34 = vld [vmem:[#allocation2 + $0x10] sm:$0xff] }
   0xd   :  { %63 = vst.msk [vmem:[#allocation2 + $0xb8] sm:$0xff] %vm29_vm0, %v54_v19  ;;  %46 = vst.msk [vmem:[#allocation2 + $0x78] sm:$0xff] %vm29_vm0, %v14261_v23  ;;  %13741 = vmatpush3.bf16.msra.mxu0 %v13738_v26  ;;  %v104_v35 = vld [vmem:[#allocation2 + $0x30] sm:$0xff]  ;;  %v101_v37 = vld [vmem:[#allocation2 + $0x18] sm:$0xff] }
   0xe   :  { %13743 = vmatprep.subr.bf16.mxu0 %v13742_v30  ;;  %73 = vst.msk [vmem:[#allocation2 + $0xc0] sm:$0xff] %vm29_vm0, %v64_v36  ;;  %v105_v38 = vld [vmem:[#allocation2 + $0x38] sm:$0xff]  ;;  %74 = vst.msk [vmem:[#allocation2 + $0xc8] sm:$0xff] %vm29_vm0, %v65_v39  ;;  %v106_v45 = vld [vmem:[#allocation2 + $0x40] sm:$0xff] }
   0xf   :  { %155 = vxpose.xlu0.b32.cont [2/4] (short) (narrow) %v99_v32, 96  ;;  %75 = vst.msk [vmem:[#allocation2 + $0xd0] sm:$0xff] %vm29_vm0, %v66_v40  ;;  %76 = vst.msk [vmem:[#allocation2 + $0xd8] sm:$0xff] %vm29_vm0, %v67_v41  ;;  %v107_v48 = vld [vmem:[#allocation2 + $0x48] sm:$0xff]  ;;  %v108_v50 = vld [vmem:[#allocation2 + $0x50] sm:$0xff] }
  0x10   :  { %187 = vxpose.xlu1.b32.cont [2/4] (short) (narrow) %v103_v33, 96  ;;  %77 = vst.msk [vmem:[#allocation2 + $0xe0] sm:$0xff] %vm29_vm0, %v68_v42  ;;  %78 = vst.msk [vmem:[#allocation2 + $0xe8] sm:$0xff] %vm29_vm0, %v69_v43  ;;  %v109_v52 = vld [vmem:[#allocation2 + $0x58] sm:$0xff]  ;;  %v114_v58 = vld [vmem:[#allocation2 + $0x80] sm:$0xff] }
  0x11   :  { %13745 = vmatpush3.bf16.msra.mxu0 %v13742_v30  ;;  %79 = vst.msk [vmem:[#allocation2 + $0xf0] sm:$0xff] %vm29_vm0, %v70_v44  ;;  %80 = vst.msk [vmem:[#allocation2 + $0xf8] sm:$0xff] %vm29_vm0, %v71_v46  ;;  %v118_v59 = vld [vmem:[#allocation2 + $0xa0] sm:$0xff]  ;;  %v115_v60 = vld [vmem:[#allocation2 + $0x88] sm:$0xff] }
  0x12   :  { %v110_v47 = vld [vmem:[#allocation2 + $0x60] sm:$0xff]  ;;  %v111_v49 = vld [vmem:[#allocation2 + $0x68] sm:$0xff]  ;;  %90 = vst.msk [vmem:[#allocation2 + $0x100] sm:$0xff] %vm29_vm0, %v81_v53  ;;  %91 = vst.msk [vmem:[#allocation2 + $0x108] sm:$0xff] %vm29_vm0, %v82_v55 }
  0x13   :  { %156 = vxpose.xlu0.b32.cont [3/4] (short) (narrow) %v100_v34, 96  ;;  %v112_v51 = vld [vmem:[#allocation2 + $0x70] sm:$0xff]  ;;  %92 = vst.msk [vmem:[#allocation2 + $0x110] sm:$0xff] %vm29_vm0, %v83_v56  ;;  %93 = vst.msk [vmem:[#allocation2 + $0x118] sm:$0xff] %vm29_vm0, %v84_v57  ;;  %v119_v61 = vld [vmem:[#allocation2 + $0xa8] sm:$0xff] }
  0x14   :  { %188 = vxpose.xlu1.b32.cont [3/4] (short) (narrow) %v104_v35, 96  ;;  %v113_v54 = vld [vmem:[#allocation2 + $0x78] sm:$0xff]  ;;  %v116_v62 = vld [vmem:[#allocation2 + $0x90] sm:$0xff]  ;;  %94 = vst.msk [vmem:[#allocation2 + $0x120] sm:$0xff] %vm29_vm0, %v85_v6  ;;  %95 = vst.msk [vmem:[#allocation2 + $0x128] sm:$0xff] %vm29_vm0, %v86_v12 }
  0x15   :  { %v120_v63 = vld [vmem:[#allocation2 + $0xb0] sm:$0xff]  ;;  %v117_v7 = vld [vmem:[#allocation2 + $0x98] sm:$0xff]  ;;  %96 = vst.msk [vmem:[#allocation2 + $0x130] sm:$0xff] %vm29_vm0, %v87_v13  ;;  %97 = vst.msk [vmem:[#allocation2 + $0x138] sm:$0xff] %vm29_vm0, %v88_v14 }
  0x16   :  { %v121_v8 = vld [vmem:[#allocation2 + $0xb8] sm:$0xff]  ;;  %v122_v25 = vld [vmem:[#allocation2 + $0xc0] sm:$0xff]  ;;  %v123_v29 = vld [vmem:[#allocation2 + $0xc8] sm:$0xff] }
  0x17   :  { %157 = vxpose.xlu0.b32.end [4/4] (short) (narrow) %v101_v37, 96  ;;  %v126_v27 = vld [vmem:[#allocation2 + $0xe0] sm:$0xff]  ;;  %v127_v31 = vld [vmem:[#allocation2 + $0xe8] sm:$0xff]  ;;  %v124_v33 = vld [vmem:[#allocation2 + $0xd0] sm:$0xff] }
  0x18   :  { %189 = vxpose.xlu1.b32.end [4/4] (short) (narrow) %v105_v38, 96  ;;  %v128_v35 = vld [vmem:[#allocation2 + $0xf0] sm:$0xff]  ;;  %v125_v37 = vld [vmem:[#allocation2 + $0xd8] sm:$0xff]  ;;  %vm15113_vm5 = vmpackc.low %vm5535_vm4, %vm5535_vm4 }
  0x19   :  { %v129_v39 = vld [vmem:[#allocation2 + $0xf8] sm:$0xff]  ;;  %v130_v55 = vld [vmem:[#allocation2 + $0x100] sm:$0xff]  ;;  %vm15432_vm12 = vmpackc.low %vm7820_vm11, %vm7820_vm11 }
  0x1a   :  { %v133_v12 = vld [vmem:[#allocation2 + $0x118] sm:$0xff] }
  0x1b   :  { %v134_v57 = vld [vmem:[#allocation2 + $0x120] sm:$0xff] }
  0x1c   :  { %v137_v14 = vld [vmem:[#allocation2 + $0x138] sm:$0xff] }
  0x38   :  { %218 = vxpose.xlu0.b32.start [1/4] (short) (narrow) %v106_v45, 96 }
  0x39   :  { %250 = vxpose.xlu1.b32.start [1/4] (short) (narrow) %v110_v47, 96 }
  0x3c   :  { %219 = vxpose.xlu0.b32.cont [2/4] (short) (narrow) %v107_v48, 96 }
  0x3d   :  { %251 = vxpose.xlu1.b32.cont [2/4] (short) (narrow) %v111_v49, 96 }
  0x40   :  { %220 = vxpose.xlu0.b32.cont [3/4] (short) (narrow) %v108_v50, 96 }
  0x41   :  { %252 = vxpose.xlu1.b32.cont [3/4] (short) (narrow) %v112_v51, 96 }
  0x44   :  { %221 = vxpose.xlu0.b32.end [4/4] (short) (narrow) %v109_v52, 96 }
  0x45   :  { %253 = vxpose.xlu1.b32.end [4/4] (short) (narrow) %v113_v54, 96 }
  0x65   :  { %282 = vxpose.xlu0.b32.start [1/4] (short) (narrow) %v114_v58, 96 }
  0x66   :  { %314 = vxpose.xlu1.b32.start [1/4] (short) (narrow) %v118_v59, 96  ;;  %v131_v59 = vld [vmem:[#allocation2 + $0x108] sm:$0xff] }
  0x69   :  { %283 = vxpose.xlu0.b32.cont [2/4] (short) (narrow) %v115_v60, 96 }
  0x6a   :  { %315 = vxpose.xlu1.b32.cont [2/4] (short) (narrow) %v119_v61, 96  ;;  %v135_v61 = vld [vmem:[#allocation2 + $0x128] sm:$0xff] }
  0x6d   :  { %284 = vxpose.xlu0.b32.cont [3/4] (short) (narrow) %v116_v62, 96 }
  0x6e   :  { %316 = vxpose.xlu1.b32.cont [3/4] (short) (narrow) %v120_v63, 96  ;;  %v132_v63 = vld [vmem:[#allocation2 + $0x110] sm:$0xff] }
  0x71   :  { %285 = vxpose.xlu0.b32.end [4/4] (short) (narrow) %v117_v7, 96  ;;  %v136_v7 = vld [vmem:[#allocation2 + $0x130] sm:$0xff] }
  0x72   :  { %317 = vxpose.xlu1.b32.end [4/4] (short) (narrow) %v121_v8, 96 }
  0x8b   :  { %v170_v18 = vpop.trf.xlu0 }
  0x8c   :  { %12676 = vmatprep.mubr.msk.f32.mxu0 %vm474_vm1, %v170_v18  ;;  %v202_v19 = vpop.trf.xlu1 }
  0x8f   :  { %v171_v24 = vpop.trf.xlu0 }
  0x90   :  { %12677 = vmatmul.mubr.msk.f32.vlgmr.msra.gmra.mrb[0].mxu0 %vm474_vm1, %v171_v24  ;;  %v203_v26 = vpop.trf.xlu1 }
  0x92   :  { %346 = vxpose.xlu0.b32.start [1/4] (short) (narrow) %v122_v25, 96 }
  0x93   :  { %v172_v28 = vpop.trf.xlu0  ;;  %378 = vxpose.xlu1.b32.start [1/4] (short) (narrow) %v126_v27, 96 }
  0x94   :  { %12679 = vmatprep.mubr.msk.f32.mxu0 %vm474_vm1, %v172_v28  ;;  %v204_v30 = vpop.trf.xlu1 }
  0x96   :  { %347 = vxpose.xlu0.b32.cont [2/4] (short) (narrow) %v123_v29, 96 }
  0x97   :  { %v173_v32 = vpop.trf.xlu0  ;;  %379 = vxpose.xlu1.b32.cont [2/4] (short) (narrow) %v127_v31, 96 }
  0x98   :  { %12680 = vmatmul.mubr.msk.f32.gmra.mrb[2].mxu0 %vm474_vm1, %v173_v32  ;;  %v205_v34 = vpop.trf.xlu1 }
  0x9a   :  { %348 = vxpose.xlu0.b32.cont [3/4] (short) (narrow) %v124_v33, 96 }
  0x9b   :  { %v174_v36 = vpop.trf.xlu0  ;;  %380 = vxpose.xlu1.b32.cont [3/4] (short) (narrow) %v128_v35, 96 }
  0x9c   :  { %12682 = vmatprep.mubr.msk.f32.mxu0 %vm474_vm1, %v174_v36  ;;  %v206_v38 = vpop.trf.xlu1 }
  0x9e   :  { %349 = vxpose.xlu0.b32.end [4/4] (short) (narrow) %v125_v37, 96 }
  0x9f   :  { %v175_v40 = vpop.trf.xlu0  ;;  %381 = vxpose.xlu1.b32.end [4/4] (short) (narrow) %v129_v39, 96 }
  0xa0   :  { %12683 = vmatmul.mubr.msk.f32.gmra.mrb[4].mxu0 %vm474_vm1, %v175_v40  ;;  %v207_v41 = vpop.trf.xlu1 }
  0xa3   :  { %v176_v42 = vpop.trf.xlu0 }
  0xa4   :  { %12685 = vmatprep.mubr.msk.f32.mxu0 %vm474_vm1, %v176_v42  ;;  %v208_v43 = vpop.trf.xlu1 }
  0xa7   :  { %v177_v44 = vpop.trf.xlu0 }
  0xa8   :  { %12686 = vmatmul.mubr.msk.f32.gmra.mrb[6].mxu0 %vm474_vm1, %v177_v44  ;;  %v209_v45 = vpop.trf.xlu1 }
  0xab   :  { %v178_v46 = vpop.trf.xlu0 }
  0xac   :  { %12688 = vmatprep.mubr.msk.f32.mxu0 %vm474_vm1, %v178_v46  ;;  %v210_v47 = vpop.trf.xlu1 }
  0xaf   :  { %v179_v48 = vpop.trf.xlu0 }
  0xb0   :  { %12689 = vmatmul.mubr.msk.f32.gmra.mrb[8].mxu0 %vm474_vm1, %v179_v48  ;;  %v211_v49 = vpop.trf.xlu1 }
  0xb3   :  { %v180_v50 = vpop.trf.xlu0 }
  0xb4   :  { %12691 = vmatprep.mubr.msk.f32.mxu0 %vm474_vm1, %v180_v50  ;;  %v212_v51 = vpop.trf.xlu1 }
  0xb7   :  { %v181_v52 = vpop.trf.xlu0 }
  0xb8   :  { %12692 = vmatmul.mubr.msk.f32.gmra.mrb[10].mxu0 %vm474_vm1, %v181_v52  ;;  %v213_v53 = vpop.trf.xlu1 }
  0xb9   :  { %12694 = vmatprep.mubr.msk.f32.mxu0 %vm474_vm1, %v202_v19 }
  0xbb   :  { %v234_v54 = vpop.trf.xlu0 }
  0xbc   :  { %12695 = vmatmul.mubr.msk.f32.gmra.mrb[12].mxu0 %vm474_vm1, %v203_v26  ;;  %v266_v56 = vpop.trf.xlu1 }
  0xbd   :  { %12697 = vmatprep.mubr.msk.f32.mxu0 %vm474_vm1, %v204_v30 }
  0xbf   :  { %v235_v58 = vpop.trf.xlu0  ;;  %410 = vxpose.xlu0.b32.start [1/4] (short) (narrow) %v130_v55, 96 }
  0xc0   :  { %12698 = vmatmul.mubr.msk.f32.gmra.mrb[14].mxu0 %vm474_vm1, %v205_v34  ;;  %v267_v60 = vpop.trf.xlu1  ;;  %442 = vxpose.xlu1.b32.start [1/4] (short) (narrow) %v134_v57, 96 }
  0xc1   :  { %12700 = vmatprep.mubr.msk.f32.mxu0 %vm474_vm1, %v206_v38 }
  0xc3   :  { %v236_v62 = vpop.trf.xlu0  ;;  %411 = vxpose.xlu0.b32.cont [2/4] (short) (narrow) %v131_v59, 96 }
  0xc4   :  { %12701 = vmatmul.mubr.msk.f32.gmra.mrb[16].mxu0 %vm474_vm1, %v207_v41  ;;  %v268_v6 = vpop.trf.xlu1  ;;  %443 = vxpose.xlu1.b32.cont [2/4] (short) (narrow) %v135_v61, 96 }
  0xc5   :  { %12703 = vmatprep.mubr.msk.f32.mxu0 %vm474_vm1, %v208_v43 }
  0xc7   :  { %v237_v8 = vpop.trf.xlu0  ;;  %412 = vxpose.xlu0.b32.cont [3/4] (short) (narrow) %v132_v63, 96 }
  0xc8   :  { %12704 = vmatmul.mubr.msk.f32.gmra.mrb[18].mxu0 %vm474_vm1, %v209_v45  ;;  %v269_v13 = vpop.trf.xlu1  ;;  %444 = vxpose.xlu1.b32.cont [3/4] (short) (narrow) %v136_v7, 96 }
  0xc9   :  { %12706 = vmatprep.mubr.msk.f32.mxu0 %vm474_vm1, %v210_v47 }
  0xcb   :  { %v238_v18 = vpop.trf.xlu0  ;;  %413 = vxpose.xlu0.b32.end [4/4] (short) (narrow) %v133_v12, 96 }
  0xcc   :  { %12707 = vmatmul.mubr.msk.f32.gmra.mrb[20].mxu0 %vm474_vm1, %v211_v49  ;;  %v270_v19 = vpop.trf.xlu1  ;;  %445 = vxpose.xlu1.b32.end [4/4] (short) (narrow) %v137_v14, 96 }
  0xcd   :  { %12709 = vmatprep.mubr.msk.f32.mxu0 %vm474_vm1, %v212_v51 }
  0xcf   :  { %v239_v24 = vpop.trf.xlu0 }
  0xd0   :  { %12710 = vmatmul.mubr.msk.f32.gmra.mrb[22].mxu0 %vm474_vm1, %v213_v53  ;;  %v271_v25 = vpop.trf.xlu1 }
  0xd1   :  { %12712 = vmatprep.mubr.msk.f32.mxu0 %vm474_vm1, %v234_v54 }
  0xd3   :  { %v240_v26 = vpop.trf.xlu0 }
  0xd4   :  { %12713 = vmatmul.mubr.msk.f32.gmra.mrb[24].mxu0 %vm474_vm1, %v235_v58  ;;  %v272_v27 = vpop.trf.xlu1 }
  0xd5   :  { %12715 = vmatprep.mubr.msk.f32.mxu0 %vm474_vm1, %v236_v62 }
  0xd7   :  { %v241_v28 = vpop.trf.xlu0 }
  0xd8   :  { %12716 = vmatmul.mubr.msk.f32.gmra.mrb[26].mxu0 %vm474_vm1, %v237_v8  ;;  %v273_v29 = vpop.trf.xlu1 }
  0xd9   :  { %12718 = vmatprep.mubr.msk.f32.mxu0 %vm474_vm1, %v238_v18 }
  0xdb   :  { %v242_v30 = vpop.trf.xlu0 }
  0xdc   :  { %12719 = vmatmul.mubr.msk.f32.gmra.mrb[28].mxu0 %vm474_vm1, %v239_v24  ;;  %v274_v31 = vpop.trf.xlu1 }
  0xdd   :  { %12721 = vmatprep.mubr.msk.f32.mxu0 %vm474_vm1, %v240_v26 }
  0xdf   :  { %v243_v32 = vpop.trf.xlu0 }
  0xe0   :  { %12722 = vmatmul.mubr.msk.f32.gmra.mrb[30].mxu0 %vm474_vm1, %v241_v28  ;;  %v275_v33 = vpop.trf.xlu1 }
  0xe1   :  { %12724 = vmatprep.mubr.msk.f32.mxu0 %vm474_vm1, %v242_v30 }
  0xe3   :  { %v244_v34 = vpop.trf.xlu0 }
  0xe4   :  { %12725 = vmatmul.mubr.msk.f32.gmra.mrb[32].mxu0 %vm474_vm1, %v243_v32  ;;  %v276_v35 = vpop.trf.xlu1 }
  0xe5   :  { %12727 = vmatprep.mubr.msk.f32.mxu0 %vm474_vm1, %v244_v34 }
  0xe7   :  { %v245_v36 = vpop.trf.xlu0 }
  0xe8   :  { %12728 = vmatmul.mubr.msk.f32.gmra.mrb[34].mxu0 %vm474_vm1, %v245_v36  ;;  %v277_v37 = vpop.trf.xlu1 }
  0xe9   :  { %12730 = vmatprep.mubr.msk.f32.mxu0 %vm474_vm1, %v266_v56 }
  0xeb   :  { %v298_v38 = vpop.trf.xlu0 }
  0xec   :  { %12731 = vmatmul.mubr.msk.f32.gmra.mrb[36].mxu0 %vm474_vm1, %v267_v60  ;;  %v330_v39 = vpop.trf.xlu1 }
  0xed   :  { %12733 = vmatprep.mubr.msk.f32.mxu0 %vm474_vm1, %v268_v6 }
  0xef   :  { %v299_v40 = vpop.trf.xlu0 }
  0xf0   :  { %12734 = vmatmul.mubr.msk.f32.gmra.mrb[38].mxu0 %vm474_vm1, %v269_v13  ;;  %v331_v41 = vpop.trf.xlu1 }
  0xf1   :  { %12736 = vmatprep.mubr.msk.f32.mxu0 %vm474_vm1, %v270_v19 }
  0xf3   :  { %v300_v42 = vpop.trf.xlu0 }
  0xf4   :  { %12737 = vmatmul.mubr.msk.f32.gmra.mrb[40].mxu0 %vm474_vm1, %v271_v25  ;;  %v332_v43 = vpop.trf.xlu1 }
  0xf5   :  { %12739 = vmatprep.mubr.msk.f32.mxu0 %vm474_vm1, %v272_v27 }
  0xf7   :  { %v301_v44 = vpop.trf.xlu0 }
  0xf8   :  { %12740 = vmatmul.mubr.msk.f32.gmra.mrb[42].mxu0 %vm474_vm1, %v273_v29  ;;  %v333_v45 = vpop.trf.xlu1 }
  0xf9   :  { %12742 = vmatprep.mubr.msk.f32.mxu0 %vm474_vm1, %v274_v31 }
  0xfb   :  { %v302_v46 = vpop.trf.xlu0 }
  0xfc   :  { %12743 = vmatmul.mubr.msk.f32.gmra.mrb[44].mxu0 %vm474_vm1, %v275_v33  ;;  %v334_v47 = vpop.trf.xlu1 }
  0xfd   :  { %12745 = vmatprep.mubr.msk.f32.mxu0 %vm474_vm1, %v276_v35 }
  0xff   :  { %v303_v48 = vpop.trf.xlu0 }
 0x100   :  { %12746 = vmatmul.mubr.msk.f32.gmra.mrb[46].mxu0 %vm474_vm1, %v277_v37  ;;  %v335_v49 = vpop.trf.xlu1 }
 0x101   :  { %12748 = vmatprep.mubr.msk.f32.mxu0 %vm474_vm1, %v298_v38 }
 0x103   :  { %v304_v50 = vpop.trf.xlu0 }
 0x104   :  { %12749 = vmatmul.mubr.msk.f32.gmra.mrb[48].mxu0 %vm474_vm1, %v299_v40  ;;  %v336_v51 = vpop.trf.xlu1 }
 0x105   :  { %12751 = vmatprep.mubr.msk.f32.mxu0 %vm474_vm1, %v300_v42 }
 0x107   :  { %v305_v52 = vpop.trf.xlu0 }
 0x108   :  { %12752 = vmatmul.mubr.msk.f32.gmra.mrb[50].mxu0 %vm474_vm1, %v301_v44  ;;  %v337_v53 = vpop.trf.xlu1 }
 0x109   :  { %12754 = vmatprep.mubr.msk.f32.mxu0 %vm474_vm1, %v302_v46 }
 0x10b   :  { %v306_v54 = vpop.trf.xlu0 }
 0x10c   :  { %12755 = vmatmul.mubr.msk.f32.gmra.mrb[52].mxu0 %vm474_vm1, %v303_v48  ;;  %v338_v55 = vpop.trf.xlu1 }
 0x10d   :  { %12757 = vmatprep.mubr.msk.f32.mxu0 %vm474_vm1, %v304_v50 }
 0x10f   :  { %v307_v56 = vpop.trf.xlu0 }
 0x110   :  { %12758 = vmatmul.mubr.msk.f32.gmra.mrb[54].mxu0 %vm474_vm1, %v305_v52  ;;  %v339_v57 = vpop.trf.xlu1 }
 0x111   :  { %12760 = vmatprep.mubr.msk.f32.mxu0 %vm474_vm1, %v306_v54 }
 0x113   :  { %v308_v58 = vpop.trf.xlu0 }
 0x114   :  { %12761 = vmatmul.mubr.msk.f32.gmra.mrb[56].mxu0 %vm474_vm1, %v307_v56  ;;  %v340_v59 = vpop.trf.xlu1 }
 0x115   :  { %12763 = vmatprep.mubr.msk.f32.mxu0 %vm474_vm1, %v308_v58 }
 0x117   :  { %v309_v60 = vpop.trf.xlu0 }
 0x118   :  { %12764 = vmatmul.mubr.msk.f32.gmra.mrb[58].mxu0 %vm474_vm1, %v309_v60  ;;  %v341_v61 = vpop.trf.xlu1 }
 0x119   :  { %12766 = vmatprep.mubr.msk.f32.mxu0 %vm474_vm1, %v330_v39 }
 0x11b   :  { %v362_v62 = vpop.trf.xlu0 }
 0x11c   :  { %12767 = vmatmul.mubr.msk.f32.gmra.mrb[60].mxu0 %vm474_vm1, %v331_v41  ;;  %v394_v63 = vpop.trf.xlu1 }
 0x11d   :  { %12769 = vmatprep.mubr.msk.f32.mxu0 %vm474_vm1, %v332_v43 }
 0x11f   :  { %v363_v6 = vpop.trf.xlu0 }
 0x120   :  { %12770 = vmatmul.mubr.msk.f32.gmra.mrb[62].mxu0 %vm474_vm1, %v333_v45  ;;  %v395_v7 = vpop.trf.xlu1 }
 0x121   :  { %12772 = vmatprep.mubr.msk.f32.mxu0 %vm474_vm1, %v334_v47 }
 0x123   :  { %v364_v8 = vpop.trf.xlu0 }
 0x124   :  { %12773 = vmatmul.mubr.msk.f32.gmra.mrb[64].mxu0 %vm474_vm1, %v335_v49  ;;  %v396_v12 = vpop.trf.xlu1 }
 0x125   :  { %12775 = vmatprep.mubr.msk.f32.mxu0 %vm474_vm1, %v336_v51 }
 0x127   :  { %v365_v13 = vpop.trf.xlu0 }
 0x128   :  { %12776 = vmatmul.mubr.msk.f32.gmra.mrb[66].mxu0 %vm474_vm1, %v337_v53  ;;  %v397_v14 = vpop.trf.xlu1 }
 0x129   :  { %12778 = vmatprep.mubr.msk.f32.mxu0 %vm474_vm1, %v338_v55 }
 0x12b   :  { %v366_v18 = vpop.trf.xlu0 }
 0x12c   :  { %12779 = vmatmul.mubr.msk.f32.gmra.mrb[68].mxu0 %vm474_vm1, %v339_v57  ;;  %v398_v19 = vpop.trf.xlu1 }
 0x12d   :  { %12781 = vmatprep.mubr.msk.f32.mxu0 %vm474_vm1, %v340_v59 }
 0x12f   :  { %v367_v24 = vpop.trf.xlu0 }
 0x130   :  { %12782 = vmatmul.mubr.msk.f32.gmra.mrb[70].mxu0 %vm474_vm1, %v341_v61  ;;  %v399_v25 = vpop.trf.xlu1 }
 0x131   :  { %12784 = vmatprep.mubr.msk.f32.mxu0 %vm474_vm1, %v362_v62 }
 0x133   :  { %v368_v26 = vpop.trf.xlu0 }
 0x134   :  { %12785 = vmatmul.mubr.msk.f32.gmra.mrb[72].mxu0 %vm474_vm1, %v363_v6  ;;  %v400_v27 = vpop.trf.xlu1 }
 0x135   :  { %12787 = vmatprep.mubr.msk.f32.mxu0 %vm474_vm1, %v364_v8 }
 0x137   :  { %v369_v28 = vpop.trf.xlu0 }
 0x138   :  { %12788 = vmatmul.mubr.msk.f32.gmra.mrb[74].mxu0 %vm474_vm1, %v365_v13  ;;  %v401_v29 = vpop.trf.xlu1 }
 0x139   :  { %12790 = vmatprep.mubr.msk.f32.mxu0 %vm474_vm1, %v366_v18 }
 0x13b   :  { %v370_v30 = vpop.trf.xlu0 }
 0x13c   :  { %12791 = vmatmul.mubr.msk.f32.gmra.mrb[76].mxu0 %vm474_vm1, %v367_v24  ;;  %v402_v31 = vpop.trf.xlu1 }
 0x13d   :  { %12793 = vmatprep.mubr.msk.f32.mxu0 %vm474_vm1, %v368_v26 }
 0x13f   :  { %v371_v32 = vpop.trf.xlu0 }
 0x140   :  { %12794 = vmatmul.mubr.msk.f32.gmra.mrb[78].mxu0 %vm474_vm1, %v369_v28  ;;  %v403_v33 = vpop.trf.xlu1 }
 0x141   :  { %12796 = vmatprep.mubr.msk.f32.mxu0 %vm474_vm1, %v370_v30 }
 0x143   :  { %v372_v34 = vpop.trf.xlu0 }
 0x144   :  { %12797 = vmatmul.mubr.msk.f32.gmra.mrb[80].mxu0 %vm474_vm1, %v371_v32  ;;  %v404_v35 = vpop.trf.xlu1 }
 0x145   :  { %12799 = vmatprep.mubr.msk.f32.mxu0 %vm474_vm1, %v372_v34 }
 0x147   :  { %v373_v36 = vpop.trf.xlu0 }
 0x148   :  { %12800 = vmatmul.mubr.msk.f32.gmra.mrb[82].mxu0 %vm474_vm1, %v373_v36  ;;  %v405_v37 = vpop.trf.xlu1 }
 0x149   :  { %12802 = vmatprep.mubr.msk.f32.mxu0 %vm474_vm1, %v394_v63 }
 0x14b   :  { %v426_v38 = vpop.trf.xlu0 }
 0x14c   :  { %12803 = vmatmul.mubr.msk.f32.gmra.mrb[84].mxu0 %vm474_vm1, %v395_v7  ;;  %v458_v39 = vpop.trf.xlu1 }
 0x14d   :  { %12805 = vmatprep.mubr.msk.f32.mxu0 %vm474_vm1, %v396_v12 }
 0x14f   :  { %v427_v40 = vpop.trf.xlu0 }
 0x150   :  { %12806 = vmatmul.mubr.msk.f32.gmra.mrb[86].mxu0 %vm474_vm1, %v397_v14  ;;  %v459_v41 = vpop.trf.xlu1 }
 0x151   :  { %12808 = vmatprep.mubr.msk.f32.mxu0 %vm474_vm1, %v398_v19 }
 0x153   :  { %v428_v42 = vpop.trf.xlu0 }
 0x154   :  { %12809 = vmatmul.mubr.msk.f32.gmra.mrb[88].mxu0 %vm474_vm1, %v399_v25  ;;  %v460_v43 = vpop.trf.xlu1 }
 0x155   :  { %12811 = vmatprep.mubr.msk.f32.mxu0 %vm474_vm1, %v400_v27 }
 0x157   :  { %v429_v44 = vpop.trf.xlu0 }
 0x158   :  { %12812 = vmatmul.mubr.msk.f32.gmra.mrb[90].mxu0 %vm474_vm1, %v401_v29  ;;  %v461_v46 = vpop.trf.xlu1 }
 0x159   :  { %12814 = vmatprep.mubr.msk.f32.mxu0 %vm474_vm1, %v402_v31 }
 0x15b   :  { %v430_v45 = vpop.trf.xlu0 }
 0x15c   :  { %12815 = vmatmul.mubr.msk.f32.gmra.mrb[92].mxu0 %vm474_vm1, %v403_v33  ;;  %v462_v48 = vpop.trf.xlu1 }
 0x15d   :  { %12817 = vmatprep.mubr.msk.f32.mxu0 %vm474_vm1, %v404_v35 }
 0x15f   :  { %v431_v47 = vpop.trf.xlu0 }
 0x160   :  { %12818 = vmatmul.mubr.msk.f32.gmra.mrb[94].mxu0 %vm474_vm1, %v405_v37  ;;  %v463_v53 = vpop.trf.xlu1 }
 0x161   :  { %12820 = vmatprep.mubr.msk.f32.mxu0 %vm474_vm1, %v426_v38 }
 0x163   :  { %v12678_v49 = vpop.f32.mrb[0].mxu0  ;;  %v432_v50 = vpop.trf.xlu0 }
 0x164   :  { %v901_v51 = vpop.f32.mrb[1].mxu0  ;;  %12821 = vmatmul.mubr.msk.f32.gmra.mrb[96].mxu0 %vm474_vm1, %v427_v40  ;;  %v464_v58 = vpop.trf.xlu1 }
 0x165   :  { %1500 = vxpose.xlu0.b32.start [1/12] (short) (narrow) %v901_v51, 32  ;;  %12823 = vmatprep.mubr.msk.f32.mxu0 %vm474_vm1, %v428_v42 }
 0x167   :  { %v433_v52 = vpop.trf.xlu0 }
 0x168   :  { %12824 = vmatmul.mubr.msk.f32.gmra.mrb[98].mxu0 %vm474_vm1, %v429_v44  ;;  %v465_v62 = vpop.trf.xlu1 }
 0x169   :  { %1501 = vxpose.xlu0.b32.cont [2/12] (short) (narrow) %v12678_v49, 32  ;;  %12826 = vmatprep.mubr.msk.f32.mxu0 %vm474_vm1, %v430_v45 }
 0x16b   :  { %v12681_v54 = vpop.f32.mrb[2].mxu0  ;;  %v434_v55 = vpop.trf.xlu0 }
 0x16c   :  { %v911_v56 = vpop.f32.mrb[3].mxu0  ;;  %12827 = vmatmul.mubr.msk.f32.gmra.mrb[100].mxu0 %vm474_vm1, %v431_v47  ;;  %v466_v7 = vpop.trf.xlu1 }
 0x16d   :  { %1502 = vxpose.xlu0.b32.cont [3/12] (short) (narrow) %v911_v56, 32  ;;  %12829 = vmatprep.mubr.msk.f32.mxu0 %vm474_vm1, %v432_v50  ;;  %v138_v56 = vld [vmem:[%s15800_s1 + $0x20] sm:$0xff] }
 0x16f   :  { %v435_v57 = vpop.trf.xlu0 }
 0x170   :  { %12830 = vmatmul.mubr.msk.f32.gmra.mrb[102].mxu0 %vm474_vm1, %v433_v52  ;;  %v467_v12 = vpop.trf.xlu1 }
 0x171   :  { %1503 = vxpose.xlu0.b32.cont [4/12] (short) (narrow) %v12681_v54, 32  ;;  %12832 = vmatprep.mubr.msk.f32.mxu0 %vm474_vm1, %v434_v55 }
 0x173   :  { %v12684_v59 = vpop.f32.mrb[4].mxu0  ;;  %v436_v60 = vpop.trf.xlu0 }
 0x174   :  { %v921_v61 = vpop.f32.mrb[5].mxu0  ;;  %12833 = vmatmul.mubr.msk.f32.gmra.mrb[104].mxu0 %vm474_vm1, %v435_v57  ;;  %v468_v18 = vpop.trf.xlu1  ;;  %v139_v57 = vld [vmem:[%s15800_s1 + $0x28] sm:$0xff] }
 0x175   :  { %1504 = vxpose.xlu0.b32.cont [5/12] (short) (narrow) %v921_v61, 32  ;;  %12835 = vmatprep.mubr.msk.f32.mxu0 %vm474_vm1, %v436_v60  ;;  %v140_v61 = vld [vmem:[%s15800_s1 + $0x30] sm:$0xff] }
 0x177   :  { %v437_v63 = vpop.trf.xlu0 }
 0x178   :  { %12836 = vmatmul.mubr.msk.f32.gmra.mrb[106].mxu0 %vm474_vm1, %v437_v63  ;;  %v469_v25 = vpop.trf.xlu1 }
 0x179   :  { %1505 = vxpose.xlu0.b32.cont [6/12] (short) (narrow) %v12684_v59, 32  ;;  %12838 = vmatprep.mubr.msk.f32.mxu0 %vm474_vm1, %v458_v39 }
 0x17b   :  { %v12687_v6 = vpop.f32.mrb[6].mxu0 }
 0x17c   :  { %v931_v8 = vpop.f32.mrb[7].mxu0  ;;  %12839 = vmatmul.mubr.msk.f32.gmra.mrb[108].mxu0 %vm474_vm1, %v459_v41 }
 0x17d   :  { %1506 = vxpose.xlu0.b32.cont [7/12] (short) (narrow) %v931_v8, 32  ;;  %12841 = vmatprep.mubr.msk.f32.mxu0 %vm474_vm1, %v460_v43  ;;  %v142_v8 = vld [vmem:[%s15800_s1 + $0x40] sm:$0xff] }
 0x180   :  { %12842 = vmatmul.mubr.msk.f32.gmra.mrb[110].mxu0 %vm474_vm1, %v461_v46 }
 0x181   :  { %1507 = vxpose.xlu0.b32.cont [8/12] (short) (narrow) %v12687_v6, 32  ;;  %12844 = vmatprep.mubr.msk.f32.mxu0 %vm474_vm1, %v462_v48 }
 0x183   :  { %v12690_v13 = vpop.f32.mrb[8].mxu0 }
 0x184   :  { %v941_v14 = vpop.f32.mrb[9].mxu0  ;;  %12845 = vmatmul.mubr.msk.f32.gmra.mrb[112].mxu0 %vm474_vm1, %v463_v53 }
 0x185   :  { %1508 = vxpose.xlu0.b32.cont [9/12] (short) (narrow) %v941_v14, 32  ;;  %12847 = vmatprep.mubr.msk.f32.mxu0 %vm474_vm1, %v464_v58  ;;  %v13746_v58 = vpack.c.bf16 %v139_v57, %v138_v56 }
 0x187   :  { %13747 = vmatprep.subr.bf16.mxu1 %v13746_v58 }
 0x188   :  { %12848 = vmatmul.mubr.msk.f32.gmra.mrb[114].mxu0 %vm474_vm1, %v465_v62  ;;  %v141_v62 = vld [vmem:[%s15800_s1 + $0x38] sm:$0xff]  ;;  %13749 = vmatpush3.bf16.msra.mxu1 %v13746_v58 }
 0x189   :  { %1509 = vxpose.xlu0.b32.cont [10/12] (short) (narrow) %v12690_v13, 32  ;;  %12850 = vmatprep.mubr.msk.f32.mxu0 %vm474_vm1, %v466_v7  ;;  %v13750_v63 = vpack.c.bf16 %v141_v62, %v140_v61 }
 0x18b   :  { %v12693_v19 = vpop.f32.mrb[10].mxu0  ;;  %13751 = vmatprep.subr.bf16.mxu1 %v13750_v63 }
 0x18c   :  { %v951_v24 = vpop.f32.mrb[11].mxu0  ;;  %12851 = vmatmul.mubr.msk.f32.gmra.mrb[116].mxu0 %vm474_vm1, %v467_v12  ;;  %v143_v12 = vld [vmem:[%s15800_s1 + $0x48] sm:$0xff]  ;;  %13753 = vmatpush3.bf16.msra.mxu1 %v13750_v63 }
 0x18d   :  { %1510 = vxpose.xlu0.b32.cont [11/12] (short) (narrow) %v951_v24, 32  ;;  %12853 = vmatprep.mubr.msk.f32.mxu0 %vm474_vm1, %v468_v18  ;;  %v13754_v13 = vpack.c.bf16 %v143_v12, %v142_v8  ;;  %v145_v24 = vld [vmem:[%s15800_s1 + $0x58] sm:$0xff] }
 0x18f   :  { %v12696_v26 = vpop.f32.mrb[12].mxu0  ;;  %13755 = vmatprep.subr.bf16.mxu1 %v13754_v13 }
 0x190   :  { %v961_v27 = vpop.f32.mrb[13].mxu0  ;;  %12854 = vmatmul.mubr.msk.f32.gmra.mrb[118].mxu0 %vm474_vm1, %v469_v25  ;;  %13757 = vmatpush3.bf16.msra.mxu1 %v13754_v13 }
 0x191   :  { %1532 = vxpose.xlu1.b32.start [1/12] (short) (narrow) %v961_v27, 32  ;;  %1511 = vxpose.xlu0.b32.end [12/12] (short) (narrow) %v12693_v19, 32  ;;  %v144_v19 = vld [vmem:[%s15800_s1 + $0x50] sm:$0xff] }
 0x192   :  { %v13758_v25 = vpack.c.bf16 %v145_v24, %v144_v19 }
 0x193   :  { %v12699_v28 = vpop.f32.mrb[14].mxu0 }
 0x194   :  { %v971_v29 = vpop.f32.mrb[15].mxu0  ;;  %13759 = vmatprep.subr.bf16.mxu1 %v13758_v25 }
 0x195   :  { %1533 = vxpose.xlu1.b32.cont [2/12] (short) (narrow) %v12696_v26, 32  ;;  %13761 = vmatpush3.bf16.msra.mxu1 %v13758_v25 }
 0x197   :  { %v12702_v30 = vpop.f32.mrb[16].mxu0 }
 0x198   :  { %v981_v31 = vpop.f32.mrb[17].mxu0 }
 0x199   :  { %1534 = vxpose.xlu1.b32.cont [3/12] (short) (narrow) %v971_v29, 32  ;;  %v147_v29 = vld [vmem:[%s15800_s1 + $0x68] sm:$0xff] }
 0x19b   :  { %v12705_v32 = vpop.f32.mrb[18].mxu0 }
 0x19c   :  { %v991_v33 = vpop.f32.mrb[19].mxu0 }
 0x19d   :  { %1535 = vxpose.xlu1.b32.cont [4/12] (short) (narrow) %v12699_v28, 32  ;;  %v146_v28 = vld [vmem:[%s15800_s1 + $0x60] sm:$0xff] }
 0x19f   :  { %v12708_v34 = vpop.f32.mrb[20].mxu0 }
 0x1a0   :  { %v1001_v35 = vpop.f32.mrb[21].mxu0 }
 0x1a1   :  { %1536 = vxpose.xlu1.b32.cont [5/12] (short) (narrow) %v981_v31, 32 }
 0x1a3   :  { %v12711_v36 = vpop.f32.mrb[22].mxu0 }
 0x1a4   :  { %v1011_v37 = vpop.f32.mrb[23].mxu0 }
 0x1a5   :  { %1537 = vxpose.xlu1.b32.cont [6/12] (short) (narrow) %v12702_v30, 32  ;;  %v13762_v30 = vpack.c.bf16 %v147_v29, %v146_v28 }
 0x1a7   :  { %v12714_v38 = vpop.f32.mrb[24].mxu0  ;;  %13763 = vmatprep.subr.bf16.mxu1 %v13762_v30 }
 0x1a8   :  { %v1021_v39 = vpop.f32.mrb[25].mxu0  ;;  %13765 = vmatpush3.bf16.msra.mxu1 %v13762_v30 }
 0x1a9   :  { %1538 = vxpose.xlu1.b32.cont [7/12] (short) (narrow) %v991_v33, 32  ;;  %1564 = vxpose.xlu0.b32.start [1/12] (short) (narrow) %v1021_v39, 32  ;;  %v148_v33 = vld [vmem:[%s15800_s1 + $0x70] sm:$0xff] }
 0x1ab   :  { %v12717_v40 = vpop.f32.mrb[26].mxu0 }
 0x1ac   :  { %v1031_v41 = vpop.f32.mrb[27].mxu0 }
 0x1ad   :  { %1539 = vxpose.xlu1.b32.cont [8/12] (short) (narrow) %v12705_v32, 32  ;;  %1565 = vxpose.xlu0.b32.cont [2/12] (short) (narrow) %v12714_v38, 32 }
 0x1af   :  { %v12720_v42 = vpop.f32.mrb[28].mxu0 }
 0x1b0   :  { %v1041_v43 = vpop.f32.mrb[29].mxu0 }
 0x1b1   :  { %1540 = vxpose.xlu1.b32.cont [9/12] (short) (narrow) %v1001_v35, 32  ;;  %1566 = vxpose.xlu0.b32.cont [3/12] (short) (narrow) %v1031_v41, 32 }
 0x1b3   :  { %v12723_v44 = vpop.f32.mrb[30].mxu0 }
 0x1b4   :  { %v1051_v45 = vpop.f32.mrb[31].mxu0 }
 0x1b5   :  { %1541 = vxpose.xlu1.b32.cont [10/12] (short) (narrow) %v12708_v34, 32  ;;  %1567 = vxpose.xlu0.b32.cont [4/12] (short) (narrow) %v12717_v40, 32  ;;  %v149_v34 = vld [vmem:[%s15800_s1 + $0x78] sm:$0xff] }
 0x1b6   :  { %v13766_v35 = vpack.c.bf16 %v149_v34, %v148_v33 }
 0x1b7   :  { %v12726_v46 = vpop.f32.mrb[32].mxu0 }
 0x1b8   :  { %v1061_v47 = vpop.f32.mrb[33].mxu0  ;;  %13767 = vmatprep.subr.bf16.mxu1 %v13766_v35 }
 0x1b9   :  { %1542 = vxpose.xlu1.b32.cont [11/12] (short) (narrow) %v1011_v37, 32  ;;  %1568 = vxpose.xlu0.b32.cont [5/12] (short) (narrow) %v1041_v43, 32 }
 0x1ba   :  { %13769 = vmatpush3.bf16.msra.mxu1 %v13766_v35 }
 0x1bb   :  { %v12729_v48 = vpop.f32.mrb[34].mxu0 }
 0x1bc   :  { %v1071_v49 = vpop.f32.mrb[35].mxu0 }
 0x1bd   :  { %1543 = vxpose.xlu1.b32.end [12/12] (short) (narrow) %v12711_v36, 32  ;;  %1569 = vxpose.xlu0.b32.cont [6/12] (short) (narrow) %v12720_v42, 32 }
 0x1bf   :  { %v12732_v50 = vpop.f32.mrb[36].mxu0 }
 0x1c0   :  { %v1081_v51 = vpop.f32.mrb[37].mxu0 }
 0x1c1   :  { %1570 = vxpose.xlu0.b32.cont [7/12] (short) (narrow) %v1051_v45, 32  ;;  %1596 = vxpose.xlu1.b32.start [1/12] (short) (narrow) %v1081_v51, 32 }
 0x1c3   :  { %v12735_v52 = vpop.f32.mrb[38].mxu0 }
 0x1c4   :  { %v1091_v53 = vpop.f32.mrb[39].mxu0 }
 0x1c5   :  { %1571 = vxpose.xlu0.b32.cont [8/12] (short) (narrow) %v12723_v44, 32  ;;  %1597 = vxpose.xlu1.b32.cont [2/12] (short) (narrow) %v12732_v50, 32 }
 0x1c7   :  { %v12738_v54 = vpop.f32.mrb[40].mxu0 }
 0x1c8   :  { %v1101_v55 = vpop.f32.mrb[41].mxu0 }
 0x1c9   :  { %1572 = vxpose.xlu0.b32.cont [9/12] (short) (narrow) %v1061_v47, 32  ;;  %1598 = vxpose.xlu1.b32.cont [3/12] (short) (narrow) %v1091_v53, 32 }
 0x1cb   :  { %v12741_v59 = vpop.f32.mrb[42].mxu0 }
 0x1cc   :  { %v1111_v60 = vpop.f32.mrb[43].mxu0 }
 0x1cd   :  { %1573 = vxpose.xlu0.b32.cont [10/12] (short) (narrow) %v12726_v46, 32  ;;  %1599 = vxpose.xlu1.b32.cont [4/12] (short) (narrow) %v12735_v52, 32 }
 0x1cf   :  { %v12744_v6 = vpop.f32.mrb[44].mxu0 }
 0x1d0   :  { %v1121_v7 = vpop.f32.mrb[45].mxu0 }
 0x1d1   :  { %1574 = vxpose.xlu0.b32.cont [11/12] (short) (narrow) %v1071_v49, 32  ;;  %1600 = vxpose.xlu1.b32.cont [5/12] (short) (narrow) %v1101_v55, 32 }
 0x1d3   :  { %v12747_v14 = vpop.f32.mrb[46].mxu0 }
 0x1d4   :  { %v1131_v18 = vpop.f32.mrb[47].mxu0 }
 0x1d5   :  { %1575 = vxpose.xlu0.b32.end [12/12] (short) (narrow) %v12729_v48, 32  ;;  %1601 = vxpose.xlu1.b32.cont [6/12] (short) (narrow) %v12738_v54, 32 }
 0x1d7   :  { %v12750_v26 = vpop.f32.mrb[48].mxu0 }
 0x1d8   :  { %v1141_v27 = vpop.f32.mrb[49].mxu0 }
 0x1d9   :  { %1602 = vxpose.xlu1.b32.cont [7/12] (short) (narrow) %v1111_v60, 32  ;;  %1628 = vxpose.xlu0.b32.start [1/12] (short) (narrow) %v1141_v27, 32 }
 0x1db   :  { %v12753_v31 = vpop.f32.mrb[50].mxu0 }
 0x1dc   :  { %v1151_v32 = vpop.f32.mrb[51].mxu0 }
 0x1dd   :  { %1603 = vxpose.xlu1.b32.cont [8/12] (short) (narrow) %v12741_v59, 32  ;;  %1629 = vxpose.xlu0.b32.cont [2/12] (short) (narrow) %v12750_v26, 32 }
 0x1df   :  { %v12756_v36 = vpop.f32.mrb[52].mxu0 }
 0x1e0   :  { %v1161_v37 = vpop.f32.mrb[53].mxu0 }
 0x1e1   :  { %1604 = vxpose.xlu1.b32.cont [9/12] (short) (narrow) %v1121_v7, 32  ;;  %1630 = vxpose.xlu0.b32.cont [3/12] (short) (narrow) %v1151_v32, 32 }
 0x1e3   :  { %v12759_v38 = vpop.f32.mrb[54].mxu0 }
 0x1e4   :  { %v1171_v39 = vpop.f32.mrb[55].mxu0 }
 0x1e5   :  { %1605 = vxpose.xlu1.b32.cont [10/12] (short) (narrow) %v12744_v6, 32  ;;  %1631 = vxpose.xlu0.b32.cont [4/12] (short) (narrow) %v12753_v31, 32  ;;  %v1516_v40 = vpop.trf.xlu0 }
 0x1e6   :  { %12880 = vmatprep.mubr.msk.f32.mxu1 %vm29_vm0, %v1516_v40 }
 0x1e7   :  { %v12762_v41 = vpop.f32.mrb[56].mxu0 }
 0x1e8   :  { %v1181_v42 = vpop.f32.mrb[57].mxu0 }
 0x1e9   :  { %1606 = vxpose.xlu1.b32.cont [11/12] (short) (narrow) %v1131_v18, 32  ;;  %1632 = vxpose.xlu0.b32.cont [5/12] (short) (narrow) %v1161_v37, 32  ;;  %v1517_v43 = vpop.trf.xlu0 }
 0x1ea   :  { %12881 = vmatmul.mubr.msk.f32.vlgmr.msra.gmra.mrb[0].mxu1 %vm29_vm0, %v1517_v43 }
 0x1eb   :  { %v12765_v44 = vpop.f32.mrb[58].mxu0 }
 0x1ec   :  { %v1191_v45 = vpop.f32.mrb[59].mxu0 }
 0x1ed   :  { %1607 = vxpose.xlu1.b32.end [12/12] (short) (narrow) %v12747_v14, 32  ;;  %1633 = vxpose.xlu0.b32.cont [6/12] (short) (narrow) %v12756_v36, 32  ;;  %v1518_v46 = vpop.trf.xlu0 }
 0x1ee   :  { %12883 = vmatprep.mubr.msk.f32.mxu1 %vm29_vm0, %v1518_v46 }
 0x1ef   :  { %v12768_v47 = vpop.f32.mrb[60].mxu0 }
 0x1f0   :  { %v1201_v48 = vpop.f32.mrb[61].mxu0 }
 0x1f1   :  { %1634 = vxpose.xlu0.b32.cont [7/12] (short) (narrow) %v1171_v39, 32  ;;  %1660 = vxpose.xlu1.b32.start [1/12] (short) (narrow) %v1201_v48, 32  ;;  %v1519_v49 = vpop.trf.xlu0  ;;  %v2471_v39 = vld [vmem:[%s15800_s1 + $0x88] sm:$0xff] }
 0x1f2   :  { %12884 = vmatmul.mubr.msk.f32.gmra.mrb[2].mxu1 %vm29_vm0, %v1519_v49 }
 0x1f3   :  { %v12771_v50 = vpop.f32.mrb[62].mxu0 }
 0x1f4   :  { %v1211_v51 = vpop.f32.mrb[63].mxu0 }
 0x1f5   :  { %1635 = vxpose.xlu0.b32.cont [8/12] (short) (narrow) %v12759_v38, 32  ;;  %1661 = vxpose.xlu1.b32.cont [2/12] (short) (narrow) %v12768_v47, 32  ;;  %v2470_v38 = vld [vmem:[%s15800_s1 + $0x80] sm:$0xff] }
 0x1f7   :  { %v12774_v52 = vpop.f32.mrb[64].mxu0 }
 0x1f8   :  { %v1221_v53 = vpop.f32.mrb[65].mxu0 }
 0x1f9   :  { %1636 = vxpose.xlu0.b32.cont [9/12] (short) (narrow) %v1181_v42, 32  ;;  %1662 = vxpose.xlu1.b32.cont [3/12] (short) (narrow) %v1211_v51, 32 }
 0x1fb   :  { %v12777_v54 = vpop.f32.mrb[66].mxu0 }
 0x1fc   :  { %v1231_v55 = vpop.f32.mrb[67].mxu0 }
 0x1fd   :  { %1637 = vxpose.xlu0.b32.cont [10/12] (short) (narrow) %v12762_v41, 32  ;;  %1663 = vxpose.xlu1.b32.cont [4/12] (short) (narrow) %v12771_v50, 32  ;;  %v13770_v41 = vpack.c.bf16 %v2471_v39, %v2470_v38 }
 0x1ff   :  { %v12780_v56 = vpop.f32.mrb[68].mxu0  ;;  %13771 = vmatprep.subr.bf16.mxu1 %v13770_v41 }
 0x200   :  { %v1241_v57 = vpop.f32.mrb[69].mxu0  ;;  %13773 = vmatpush3.bf16.msra.mxu1 %v13770_v41 }
 0x201   :  { %1638 = vxpose.xlu0.b32.cont [11/12] (short) (narrow) %v1191_v45, 32  ;;  %1664 = vxpose.xlu1.b32.cont [5/12] (short) (narrow) %v1221_v53, 32 }
 0x203   :  { %v12783_v58 = vpop.f32.mrb[70].mxu0 }
 0x204   :  { %v1251_v59 = vpop.f32.mrb[71].mxu0 }
 0x205   :  { %1639 = vxpose.xlu0.b32.end [12/12] (short) (narrow) %v12765_v44, 32  ;;  %1665 = vxpose.xlu1.b32.cont [6/12] (short) (narrow) %v12774_v52, 32 }
 0x207   :  { %v12786_v60 = vpop.f32.mrb[72].mxu0 }
 0x208   :  { %v1261_v61 = vpop.f32.mrb[73].mxu0 }
 0x209   :  { %1666 = vxpose.xlu1.b32.cont [7/12] (short) (narrow) %v1231_v55, 32  ;;  %1692 = vxpose.xlu0.b32.start [1/12] (short) (narrow) %v1261_v61, 32 }
 0x20b   :  { %v12789_v62 = vpop.f32.mrb[74].mxu0 }
 0x20c   :  { %v1271_v63 = vpop.f32.mrb[75].mxu0 }
 0x20d   :  { %1667 = vxpose.xlu1.b32.cont [8/12] (short) (narrow) %v12777_v54, 32  ;;  %1693 = vxpose.xlu0.b32.cont [2/12] (short) (narrow) %v12786_v60, 32 }
 0x20f   :  { %v12792_v6 = vpop.f32.mrb[76].mxu0 }
 0x210   :  { %v1281_v7 = vpop.f32.mrb[77].mxu0 }
 0x211   :  { %1668 = vxpose.xlu1.b32.cont [9/12] (short) (narrow) %v1241_v57, 32  ;;  %1694 = vxpose.xlu0.b32.cont [3/12] (short) (narrow) %v1271_v63, 32  ;;  %v1548_v8 = vpop.trf.xlu1 }
 0x212   :  { %12886 = vmatprep.mubr.msk.f32.mxu1 %vm29_vm0, %v1548_v8 }
 0x213   :  { %v12795_v12 = vpop.f32.mrb[78].mxu0 }
 0x214   :  { %v1291_v13 = vpop.f32.mrb[79].mxu0 }
 0x215   :  { %1669 = vxpose.xlu1.b32.cont [10/12] (short) (narrow) %v12780_v56, 32  ;;  %1695 = vxpose.xlu0.b32.cont [4/12] (short) (narrow) %v12789_v62, 32  ;;  %v1549_v14 = vpop.trf.xlu1 }
 0x216   :  { %12887 = vmatmul.mubr.msk.f32.gmra.mrb[4].mxu1 %vm29_vm0, %v1549_v14 }
 0x217   :  { %v12798_v18 = vpop.f32.mrb[80].mxu0 }
 0x218   :  { %v1301_v19 = vpop.f32.mrb[81].mxu0 }
 0x219   :  { %1670 = vxpose.xlu1.b32.cont [11/12] (short) (narrow) %v1251_v59, 32  ;;  %1696 = vxpose.xlu0.b32.cont [5/12] (short) (narrow) %v1281_v7, 32  ;;  %v1550_v24 = vpop.trf.xlu1 }
 0x21a   :  { %12889 = vmatprep.mubr.msk.f32.mxu1 %vm29_vm0, %v1550_v24 }
 0x21b   :  { %v12801_v25 = vpop.f32.mrb[82].mxu0 }
 0x21c   :  { %v1311_v26 = vpop.f32.mrb[83].mxu0 }
 0x21d   :  { %1671 = vxpose.xlu1.b32.end [12/12] (short) (narrow) %v12783_v58, 32  ;;  %1697 = vxpose.xlu0.b32.cont [6/12] (short) (narrow) %v12792_v6, 32  ;;  %v1551_v27 = vpop.trf.xlu1 }
 0x21e   :  { %12890 = vmatmul.mubr.msk.f32.gmra.mrb[6].mxu1 %vm29_vm0, %v1551_v27 }
 0x21f   :  { %v12804_v28 = vpop.f32.mrb[84].mxu0 }
 0x220   :  { %v1321_v29 = vpop.f32.mrb[85].mxu0 }
 0x221   :  { %1698 = vxpose.xlu0.b32.cont [7/12] (short) (narrow) %v1291_v13, 32  ;;  %1724 = vxpose.xlu1.b32.start [1/12] (short) (narrow) %v1321_v29, 32 }
 0x223   :  { %v12807_v30 = vpop.f32.mrb[86].mxu0 }
 0x224   :  { %v1331_v31 = vpop.f32.mrb[87].mxu0 }
 0x225   :  { %1699 = vxpose.xlu0.b32.cont [8/12] (short) (narrow) %v12795_v12, 32  ;;  %1725 = vxpose.xlu1.b32.cont [2/12] (short) (narrow) %v12804_v28, 32 }
 0x227   :  { %v12810_v32 = vpop.f32.mrb[88].mxu0 }
 0x228   :  { %v1341_v33 = vpop.f32.mrb[89].mxu0 }
 0x229   :  { %1700 = vxpose.xlu0.b32.cont [9/12] (short) (narrow) %v1301_v19, 32  ;;  %1726 = vxpose.xlu1.b32.cont [3/12] (short) (narrow) %v1331_v31, 32  ;;  %v1580_v34 = vpop.trf.xlu0  ;;  %v2473_v19 = vld [vmem:[%s15800_s1 + $0x98] sm:$0xff] }
 0x22a   :  { %12892 = vmatprep.mubr.msk.f32.mxu1 %vm29_vm0, %v1580_v34 }
 0x22b   :  { %v12813_v35 = vpop.f32.mrb[90].mxu0 }
 0x22c   :  { %v1351_v36 = vpop.f32.mrb[91].mxu0 }
 0x22d   :  { %1701 = vxpose.xlu0.b32.cont [10/12] (short) (narrow) %v12798_v18, 32  ;;  %1727 = vxpose.xlu1.b32.cont [4/12] (short) (narrow) %v12807_v30, 32  ;;  %v1581_v37 = vpop.trf.xlu0  ;;  %v2472_v18 = vld [vmem:[%s15800_s1 + $0x90] sm:$0xff] }
 0x22e   :  { %12893 = vmatmul.mubr.msk.f32.gmra.mrb[8].mxu1 %vm29_vm0, %v1581_v37  ;;  %v13774_v24 = vpack.c.bf16 %v2473_v19, %v2472_v18 }
 0x22f   :  { %v12816_v40 = vpop.f32.mrb[92].mxu0 }
 0x230   :  { %v1361_v42 = vpop.f32.mrb[93].mxu0  ;;  %13775 = vmatprep.subr.bf16.mxu1 %v13774_v24 }
 0x231   :  { %1702 = vxpose.xlu0.b32.cont [11/12] (short) (narrow) %v1311_v26, 32  ;;  %1728 = vxpose.xlu1.b32.cont [5/12] (short) (narrow) %v1341_v33, 32  ;;  %v1582_v43 = vpop.trf.xlu0 }
 0x232   :  { %12895 = vmatprep.mubr.msk.f32.mxu1 %vm29_vm0, %v1582_v43  ;;  %13777 = vmatpush3.bf16.msra.mxu1 %v13774_v24 }
 0x233   :  { %v12819_v44 = vpop.f32.mrb[94].mxu0 }
 0x234   :  { %v1371_v45 = vpop.f32.mrb[95].mxu0 }
 0x235   :  { %1703 = vxpose.xlu0.b32.end [12/12] (short) (narrow) %v12801_v25, 32  ;;  %1729 = vxpose.xlu1.b32.cont [6/12] (short) (narrow) %v12810_v32, 32  ;;  %v1583_v46 = vpop.trf.xlu0 }
 0x236   :  { %12896 = vmatmul.mubr.msk.f32.gmra.mrb[10].mxu1 %vm29_vm0, %v1583_v46 }
 0x237   :  { %v12822_v47 = vpop.f32.mrb[96].mxu0 }
 0x238   :  { %v1381_v48 = vpop.f32.mrb[97].mxu0 }
 0x239   :  { %1730 = vxpose.xlu1.b32.cont [7/12] (short) (narrow) %v1351_v36, 32  ;;  %1756 = vxpose.xlu0.b32.start [1/12] (short) (narrow) %v1381_v48, 32 }
 0x23b   :  { %v12825_v49 = vpop.f32.mrb[98].mxu0 }
 0x23c   :  { %v1391_v50 = vpop.f32.mrb[99].mxu0 }
 0x23d   :  { %1731 = vxpose.xlu1.b32.cont [8/12] (short) (narrow) %v12813_v35, 32  ;;  %1757 = vxpose.xlu0.b32.cont [2/12] (short) (narrow) %v12822_v47, 32 }
 0x23f   :  { %v12828_v51 = vpop.f32.mrb[100].mxu0 }
 0x240   :  { %v1401_v52 = vpop.f32.mrb[101].mxu0 }
 0x241   :  { %1732 = vxpose.xlu1.b32.cont [9/12] (short) (narrow) %v1361_v42, 32  ;;  %1758 = vxpose.xlu0.b32.cont [3/12] (short) (narrow) %v1391_v50, 32  ;;  %v1612_v53 = vpop.trf.xlu1 }
 0x242   :  { %12898 = vmatprep.mubr.msk.f32.mxu1 %vm29_vm0, %v1612_v53 }
 0x243   :  { %v12831_v54 = vpop.f32.mrb[102].mxu0 }
 0x244   :  { %v1411_v55 = vpop.f32.mrb[103].mxu0 }
 0x245   :  { %1733 = vxpose.xlu1.b32.cont [10/12] (short) (narrow) %v12816_v40, 32  ;;  %1759 = vxpose.xlu0.b32.cont [4/12] (short) (narrow) %v12825_v49, 32  ;;  %v1613_v56 = vpop.trf.xlu1 }
 0x246   :  { %12899 = vmatmul.mubr.msk.f32.gmra.mrb[12].mxu1 %vm29_vm0, %v1613_v56 }
 0x247   :  { %v12834_v57 = vpop.f32.mrb[104].mxu0 }
 0x248   :  { %v1421_v58 = vpop.f32.mrb[105].mxu0 }
 0x249   :  { %1734 = vxpose.xlu1.b32.cont [11/12] (short) (narrow) %v1371_v45, 32  ;;  %1760 = vxpose.xlu0.b32.cont [5/12] (short) (narrow) %v1401_v52, 32  ;;  %v1614_v59 = vpop.trf.xlu1 }
 0x24a   :  { %12901 = vmatprep.mubr.msk.f32.mxu1 %vm29_vm0, %v1614_v59 }
 0x24b   :  { %v12837_v60 = vpop.f32.mrb[106].mxu0 }
 0x24c   :  { %v1431_v61 = vpop.f32.mrb[107].mxu0 }
 0x24d   :  { %1735 = vxpose.xlu1.b32.end [12/12] (short) (narrow) %v12819_v44, 32  ;;  %1761 = vxpose.xlu0.b32.cont [6/12] (short) (narrow) %v12828_v51, 32  ;;  %v1615_v62 = vpop.trf.xlu1 }
 0x24e   :  { %12902 = vmatmul.mubr.msk.f32.gmra.mrb[14].mxu1 %vm29_vm0, %v1615_v62 }
 0x24f   :  { %v12840_v63 = vpop.f32.mrb[108].mxu0 }
 0x250   :  { %v1441_v6 = vpop.f32.mrb[109].mxu0 }
 0x251   :  { %1762 = vxpose.xlu0.b32.cont [7/12] (short) (narrow) %v1411_v55, 32  ;;  %1788 = vxpose.xlu1.b32.start [1/12] (short) (narrow) %v1441_v6, 32 }
 0x253   :  { %v12843_v7 = vpop.f32.mrb[110].mxu0 }
 0x254   :  { %v1451_v8 = vpop.f32.mrb[111].mxu0 }
 0x255   :  { %1763 = vxpose.xlu0.b32.cont [8/12] (short) (narrow) %v12831_v54, 32  ;;  %1789 = vxpose.xlu1.b32.cont [2/12] (short) (narrow) %v12840_v63, 32 }
 0x257   :  { %v12846_v12 = vpop.f32.mrb[112].mxu0 }
 0x258   :  { %v1461_v13 = vpop.f32.mrb[113].mxu0 }
 0x259   :  { %1764 = vxpose.xlu0.b32.cont [9/12] (short) (narrow) %v1421_v58, 32  ;;  %1790 = vxpose.xlu1.b32.cont [3/12] (short) (narrow) %v1451_v8, 32  ;;  %v1644_v14 = vpop.trf.xlu0 }
 0x25a   :  { %12904 = vmatprep.mubr.msk.f32.mxu1 %vm29_vm0, %v1644_v14 }
 0x25b   :  { %v12849_v25 = vpop.f32.mrb[114].mxu0 }
 0x25c   :  { %v1471_v26 = vpop.f32.mrb[115].mxu0 }
 0x25d   :  { %1765 = vxpose.xlu0.b32.cont [10/12] (short) (narrow) %v12834_v57, 32  ;;  %1791 = vxpose.xlu1.b32.cont [4/12] (short) (narrow) %v12843_v7, 32  ;;  %v1645_v27 = vpop.trf.xlu0 }
 0x25e   :  { %12905 = vmatmul.mubr.msk.f32.gmra.mrb[16].mxu1 %vm29_vm0, %v1645_v27 }
 0x25f   :  { %v12852_v28 = vpop.f32.mrb[116].mxu0 }
 0x260   :  { %v1481_v29 = vpop.f32.mrb[117].mxu0 }
 0x261   :  { %1766 = vxpose.xlu0.b32.cont [11/12] (short) (narrow) %v1431_v61, 32  ;;  %1792 = vxpose.xlu1.b32.cont [5/12] (short) (narrow) %v1461_v13, 32  ;;  %v1646_v30 = vpop.trf.xlu0 }
 0x262   :  { %12907 = vmatprep.mubr.msk.f32.mxu1 %vm29_vm0, %v1646_v30 }
 0x263   :  { %v12855_v31 = vpop.f32.mrb[118].mxu0 }
 0x264   :  { %v1491_v32 = vpop.f32.mrb[119].mxu0 }
 0x265   :  { %1767 = vxpose.xlu0.b32.end [12/12] (short) (narrow) %v12837_v60, 32  ;;  %1793 = vxpose.xlu1.b32.cont [6/12] (short) (narrow) %v12846_v12, 32  ;;  %v1647_v33 = vpop.trf.xlu0 }
 0x266   :  { %12908 = vmatmul.mubr.msk.f32.gmra.mrb[18].mxu1 %vm29_vm0, %v1647_v33 }
 0x269   :  { %2474 = vxpose.xlu0.b32.start [1/4] (short) (narrow) %v14134_v0, 96  ;;  %1794 = vxpose.xlu1.b32.cont [7/12] (short) (narrow) %v1471_v26, 32 }
 0x26d   :  { %2475 = vxpose.xlu0.b32.cont [2/4] (short) (narrow) %v14139_v1, 96  ;;  %1795 = vxpose.xlu1.b32.cont [8/12] (short) (narrow) %v12849_v25, 32 }
 0x271   :  { %2476 = vxpose.xlu0.b32.cont [3/4] (short) (narrow) %v14144_v2, 96  ;;  %1796 = vxpose.xlu1.b32.cont [9/12] (short) (narrow) %v1481_v29, 32  ;;  %v1676_v34 = vpop.trf.xlu1 }
 0x272   :  { %12910 = vmatprep.mubr.msk.f32.mxu1 %vm29_vm0, %v1676_v34 }
 0x275   :  { %2477 = vxpose.xlu0.b32.end [4/4] (short) (narrow) %v14155_v3, 96  ;;  %1797 = vxpose.xlu1.b32.cont [10/12] (short) (narrow) %v12852_v28, 32  ;;  %v1677_v35 = vpop.trf.xlu1 }
 0x276   :  { %12911 = vmatmul.mubr.msk.f32.gmra.mrb[20].mxu1 %vm29_vm0, %v1677_v35 }
 0x279   :  { %1798 = vxpose.xlu1.b32.cont [11/12] (short) (narrow) %v1491_v32, 32  ;;  %v1678_v36 = vpop.trf.xlu1 }
 0x27a   :  { %12913 = vmatprep.mubr.msk.f32.mxu1 %vm29_vm0, %v1678_v36 }
 0x27d   :  { %1799 = vxpose.xlu1.b32.end [12/12] (short) (narrow) %v12855_v31, 32  ;;  %v1679_v0 = vpop.trf.xlu1 }
 0x27e   :  { %12914 = vmatmul.mubr.msk.f32.gmra.mrb[22].mxu1 %vm29_vm0, %v1679_v0 }
 0x281   :  { %2506 = vxpose.xlu1.b32.start [1/4] (short) (narrow) %v14160_v4, 96 }
 0x285   :  { %2507 = vxpose.xlu1.b32.cont [2/4] (short) (narrow) %v14165_v5, 96 }
 0x289   :  { %2508 = vxpose.xlu1.b32.cont [3/4] (short) (narrow) %v14182_v9, 96  ;;  %v1708_v1 = vpop.trf.xlu0 }
 0x28a   :  { %12916 = vmatprep.mubr.msk.f32.mxu1 %vm29_vm0, %v1708_v1 }
 0x28d   :  { %2509 = vxpose.xlu1.b32.end [4/4] (short) (narrow) %v14187_v10, 96  ;;  %v1709_v2 = vpop.trf.xlu0 }
 0x28e   :  { %12917 = vmatmul.mubr.msk.f32.gmra.mrb[24].mxu1 %vm29_vm0, %v1709_v2 }
 0x291   :  { %v1710_v3 = vpop.trf.xlu0 }
 0x292   :  { %12919 = vmatprep.mubr.msk.f32.mxu1 %vm29_vm0, %v1710_v3 }
 0x295   :  { %v1711_v37 = vpop.trf.xlu0 }
 0x296   :  { %2538 = vxpose.xlu0.b32.start [1/4] (short) (narrow) %v14192_v11, 96  ;;  %12920 = vmatmul.mubr.msk.f32.gmra.mrb[26].mxu1 %vm29_vm0, %v1711_v37 }
 0x29a   :  { %2539 = vxpose.xlu0.b32.cont [2/4] (short) (narrow) %v14209_v15, 96 }
 0x29e   :  { %2540 = vxpose.xlu0.b32.cont [3/4] (short) (narrow) %v14214_v16, 96 }
 0x2a1   :  { %v1740_v4 = vpop.trf.xlu1 }
 0x2a2   :  { %2541 = vxpose.xlu0.b32.end [4/4] (short) (narrow) %v14219_v17, 96  ;;  %12922 = vmatprep.mubr.msk.f32.mxu1 %vm29_vm0, %v1740_v4 }
 0x2a5   :  { %v1741_v5 = vpop.trf.xlu1 }
 0x2a6   :  { %12923 = vmatmul.mubr.msk.f32.gmra.mrb[28].mxu1 %vm29_vm0, %v1741_v5 }
 0x2a9   :  { %v1742_v9 = vpop.trf.xlu1 }
 0x2aa   :  { %12925 = vmatprep.mubr.msk.f32.mxu1 %vm29_vm0, %v1742_v9 }
 0x2ad   :  { %v1743_v10 = vpop.trf.xlu1 }
 0x2ae   :  { %12926 = vmatmul.mubr.msk.f32.gmra.mrb[30].mxu1 %vm29_vm0, %v1743_v10  ;;  %2570 = vxpose.xlu1.b32.start [1/4] (short) (narrow) %v14237_v20, 96 }
 0x2b2   :  { %2571 = vxpose.xlu1.b32.cont [2/4] (short) (narrow) %v14242_v21, 96 }
 0x2b6   :  { %2572 = vxpose.xlu1.b32.cont [3/4] (short) (narrow) %v14247_v22, 96 }
 0x2b9   :  { %v1772_v11 = vpop.trf.xlu0 }
 0x2ba   :  { %12928 = vmatprep.mubr.msk.f32.mxu1 %vm29_vm0, %v1772_v11  ;;  %2573 = vxpose.xlu1.b32.end [4/4] (short) (narrow) %v14261_v23, 96 }
 0x2bd   :  { %v1773_v15 = vpop.trf.xlu0  ;;  %v12882_v38 = vpop.f32.mrb[0].mxu1 }
 0x2be   :  { %12929 = vmatmul.mubr.msk.f32.gmra.mrb[32].mxu1 %vm29_vm0, %v1773_v15  ;;  %v2006_v20 = vpop.f32.mrb[1].mxu1  ;;  %v14565_v54 = vmul.f32 %v12882_v38, %v12882_v38 }
 0x2bf   :  { %v14568_v55 = vmul.f32 %v2006_v20, %v2006_v20 }
 0x2c1   :  { %v1774_v16 = vpop.trf.xlu0 }
 0x2c2   :  { %12931 = vmatprep.mubr.msk.f32.mxu1 %vm29_vm0, %v1774_v16 }
 0x2c5   :  { %v1775_v17 = vpop.trf.xlu0  ;;  %v12885_v39 = vpop.f32.mrb[2].mxu1 }
 0x2c6   :  { %12932 = vmatmul.mubr.msk.f32.gmra.mrb[34].mxu1 %vm29_vm0, %v1775_v17  ;;  %v2016_v21 = vpop.f32.mrb[3].mxu1  ;;  %v14583_v18 = vmul.f32 %v12885_v39, %v12885_v39 }
 0x2c7   :  { %v14586_v19 = vmul.f32 %v2016_v21, %v2016_v21 }
 0x2d1   :  { %v1804_v40 = vpop.trf.xlu1 }
 0x2d2   :  { %12934 = vmatprep.mubr.msk.f32.mxu1 %vm29_vm0, %v1804_v40 }
 0x2d5   :  { %v1805_v22 = vpop.trf.xlu1 }
 0x2d6   :  { %12935 = vmatmul.mubr.msk.f32.gmra.mrb[36].mxu1 %vm29_vm0, %v1805_v22 }
 0x2d9   :  { %v1806_v23 = vpop.trf.xlu1 }
 0x2da   :  { %12937 = vmatprep.mubr.msk.f32.mxu1 %vm29_vm0, %v1806_v23 }
 0x2dd   :  { %v1807_v41 = vpop.trf.xlu1 }
 0x2de   :  { %12938 = vmatmul.mubr.msk.f32.gmra.mrb[38].mxu1 %vm29_vm0, %v1807_v41 }
 0x2e9   :  { %v2490_v42 = vpop.trf.xlu0  ;;  %v14551_v43 = vpop.f32.mrb[4].mxu1 }
 0x2ea   :  { %12948 = vmatprep.mubr.msk.f32.mxu1 %vm474_vm1, %v2490_v42  ;;  %v14554_v44 = vpop.f32.mrb[5].mxu1 }
 0x2eb   :  { %v14615_v22 = vmul.f32 %v14554_v44, %v14554_v44 }
 0x2ed   :  { %v2491_v45 = vpop.trf.xlu0 }
 0x2ee   :  { %12949 = vmatmul.mubr.msk.f32.vlgmr.msra.gmra.mrb[40].mxu1 %vm474_vm1, %v2491_v45 }
 0x2f1   :  { %v2492_v46 = vpop.trf.xlu0  ;;  %v14557_v47 = vpop.f32.mrb[6].mxu1 }
 0x2f2   :  { %12951 = vmatprep.mubr.msk.f32.mxu1 %vm474_vm1, %v2492_v46  ;;  %v14560_v48 = vpop.f32.mrb[7].mxu1 }
 0x2f5   :  { %v2493_v49 = vpop.trf.xlu0 }
 0x2f6   :  { %12952 = vmatmul.mubr.msk.f32.gmra.mrb[42].mxu1 %vm474_vm1, %v2493_v49 }
 0x2f9   :  { %v2494_v50 = vpop.trf.xlu0 }
 0x2fa   :  { %12954 = vmatprep.mubr.msk.f32.mxu1 %vm474_vm1, %v2494_v50 }
 0x2fd   :  { %v2495_v51 = vpop.trf.xlu0 }
 0x2fe   :  { %12955 = vmatmul.mubr.msk.f32.gmra.mrb[44].mxu1 %vm474_vm1, %v2495_v51 }
 0x301   :  { %v2522_v52 = vpop.trf.xlu1  ;;  %v2496_v53 = vpop.trf.xlu0 }
 0x302   :  { %12957 = vmatprep.mubr.msk.f32.mxu1 %vm474_vm1, %v2496_v53  ;;  %v12894_v56 = vpop.f32.mrb[8].mxu1 }
 0x303   :  { %v14570_v57 = vmul.f32 %v12894_v56, %v12894_v56  ;;  %v14572_v58 = vmul.f32 %v12894_v56, %v12882_v38  ;;  %v2046_v59 = vpop.f32.mrb[9].mxu1 }
 0x304   :  { %v14574_v60 = vmul.f32 %v2046_v59, %v2046_v59  ;;  %v14576_v61 = vmul.f32 %v2046_v59, %v2006_v20 }
 0x305   :  { %v2523_v62 = vpop.trf.xlu1  ;;  %v2497_v63 = vpop.trf.xlu0  ;;  %v2230_v6 = vadd.f32 %v14570_v57, %v14565_v54  ;;  %v2302_v1 = vmul.f32 2.0, %v14572_v58 }
 0x306   :  { %12958 = vmatmul.mubr.msk.f32.gmra.mrb[46].mxu1 %vm474_vm1, %v2497_v63  ;;  %v2229_v7 = vadd.f32 %v14574_v60, %v14568_v55  ;;  %v2301_v3 = vmul.f32 2.0, %v14576_v61 }
 0x307   :  { %v2238_v8 = vadd.f32 0.0001, %v2230_v6  ;;  %v2310_v11 = vadd.f32 0.0001, %v2302_v1 }
 0x308   :  { %v2237_v12 = vadd.f32 0.0001, %v2229_v7  ;;  %v2309_v16 = vadd.f32 0.0001, %v2301_v3 }
 0x309   :  { %v2524_v13 = vpop.trf.xlu1  ;;  %v2498_v14 = vpop.trf.xlu0  ;;  %14033 = vrcp.f32 %v2238_v8 }
 0x30a   :  { %12960 = vmatprep.mubr.msk.f32.mxu1 %vm474_vm1, %v2498_v14  ;;  %14035 = vrcp.f32 %v2237_v12  ;;  %v12897_v24 = vpop.f32.mrb[10].mxu1 }
 0x30b   :  { %v14588_v25 = vmul.f32 %v12897_v24, %v12897_v24  ;;  %v14590_v26 = vmul.f32 %v12897_v24, %v12885_v39  ;;  %v2056_v27 = vpop.f32.mrb[11].mxu1 }
 0x30c   :  { %v14592_v28 = vmul.f32 %v2056_v27, %v2056_v27  ;;  %v14594_v29 = vmul.f32 %v2056_v27, %v2016_v21  ;;  %v14610_v21 = vmul.f32 %v14551_v43, %v14551_v43 }
 0x30d   :  { %v2525_v30 = vpop.trf.xlu1  ;;  %v2499_v31 = vpop.trf.xlu0  ;;  %v2232_v32 = vadd.f32 %v14588_v25, %v14583_v18  ;;  %v2304_v41 = vmul.f32 2.0, %v14590_v26 }
 0x30e   :  { %12961 = vmatmul.mubr.msk.f32.gmra.mrb[48].mxu1 %vm474_vm1, %v2499_v31  ;;  %v2231_v33 = vadd.f32 %v14592_v28, %v14586_v19  ;;  %v2303_v49 = vmul.f32 2.0, %v14594_v29 }
 0x30f   :  { %v2240_v34 = vadd.f32 0.0001, %v2232_v32 }
 0x310   :  { %v2239_v35 = vadd.f32 0.0001, %v2231_v33  ;;  %v2311_v14 = vadd.f32 0.0001, %v2303_v49 }
 0x311   :  { %v2526_v36 = vpop.trf.xlu1  ;;  %v2500_v0 = vpop.trf.xlu0  ;;  %14037 = vrcp.f32 %v2240_v34 }
 0x312   :  { %12963 = vmatprep.mubr.msk.f32.mxu1 %vm474_vm1, %v2500_v0  ;;  %14039 = vrcp.f32 %v2239_v35 }
 0x313   :  { %v14034_v2 = vpop.eup %14033 }
 0x314   :  { %v14036_v37 = vpop.eup %14035  ;;  %v2366_v4 = vmul.f32 %v14034_v2, %v2238_v8 }
 0x315   :  { %v2527_v5 = vpop.trf.xlu1  ;;  %v2501_v9 = vpop.trf.xlu0  ;;  %v2365_v10 = vmul.f32 %v14036_v37, %v2237_v12  ;;  %v2312_v12 = vadd.f32 0.0001, %v2304_v41 }
 0x316   :  { %12964 = vmatmul.mubr.msk.f32.gmra.mrb[50].mxu1 %vm474_vm1, %v2501_v9  ;;  %v2374_v15 = vsub.f32 2.0, %v2366_v4 }
 0x317   :  { %12966 = vmatprep.mubr.msk.f32.mxu1 %vm474_vm1, %v2522_v52  ;;  %v2373_v17 = vsub.f32 2.0, %v2365_v10 }
 0x318   :  { %v2382_v38 = vmul.f32 %v14034_v2, %v2374_v15 }
 0x319   :  { %v2528_v20 = vpop.trf.xlu1  ;;  %v14606_v39 = vpop.trf.xlu0  ;;  %v2381_v40 = vmul.f32 %v14036_v37, %v2373_v17 }
 0x31a   :  { %12967 = vmatmul.mubr.msk.f32.gmra.mrb[52].mxu1 %vm474_vm1, %v2523_v62  ;;  %v14617_v23 = vmul.f32 %v2382_v38, %v2310_v11  ;;  %v12900_v42 = vpop.f32.mrb[12].mxu1 }
 0x31b   :  { %v14038_v45 = vpop.eup %14037  ;;  %12969 = vmatprep.mubr.msk.f32.mxu1 %vm474_vm1, %v2524_v13  ;;  %v14621_v46 = vmul.f32 %v2381_v40, %v2309_v16  ;;  %v14624_v50 = vmul.f32 %v12900_v42, %v12900_v42  ;;  %v14627_v51 = vmul.f32 %v12900_v42, %v14551_v43  ;;  %v2066_v52 = vpop.f32.mrb[13].mxu1 }
 0x31c   :  { %v14040_v53 = vpop.eup %14039  ;;  %v2368_v56 = vmul.f32 %v14038_v45, %v2240_v34  ;;  %v14629_v59 = vmul.f32 %v2066_v52, %v2066_v52  ;;  %v14632_v62 = vmul.f32 %v2066_v52, %v14554_v44  ;;  %v14642_v34 = vmul.f32 %v14557_v47, %v14557_v47 }
 0x31d   :  { %v2529_v63 = vpop.trf.xlu1  ;;  %v2555_v6 = vpop.trf.xlu0  ;;  %v2367_v7 = vmul.f32 %v14040_v53, %v2239_v35  ;;  %v2234_v8 = vadd.f32 %v14624_v50, %v14610_v21 }
 0x31e   :  { %12970 = vmatmul.mubr.msk.f32.gmra.mrb[54].mxu1 %vm474_vm1, %v2525_v30  ;;  %v2376_v13 = vsub.f32 2.0, %v2368_v56  ;;  %v2233_v43 = vadd.f32 %v14629_v59, %v14615_v22  ;;  %v14647_v30 = vmul.f32 %v14560_v48, %v14560_v48  ;;  %v2305_v40 = vmul.f32 2.0, %v14632_v62 }
 0x31f   :  { %12972 = vmatprep.mubr.msk.f32.mxu1 %vm474_vm1, %v2526_v36  ;;  %v2375_v24 = vsub.f32 2.0, %v2367_v7  ;;  %v2242_v27 = vadd.f32 0.0001, %v2234_v8 }
 0x320   :  { %v2384_v44 = vmul.f32 %v14038_v45, %v2376_v13  ;;  %v2241_v31 = vadd.f32 0.0001, %v2233_v43 }
 0x321   :  { %v2530_v32 = vpop.trf.xlu1  ;;  %v2556_v33 = vpop.trf.xlu0  ;;  %v2383_v35 = vmul.f32 %v14040_v53, %v2375_v24  ;;  %14041 = vrcp.f32 %v2242_v27 }
 0x322   :  { %12973 = vmatmul.mubr.msk.f32.gmra.mrb[56].mxu1 %vm474_vm1, %v2527_v5  ;;  %v14649_v36 = vmul.f32 %v2384_v44, %v2312_v12  ;;  %14043 = vrcp.f32 %v2241_v31  ;;  %v12903_v0 = vpop.f32.mrb[14].mxu1 }
 0x323   :  { %12975 = vmatprep.mubr.msk.f32.mxu1 %vm474_vm1, %v2528_v20  ;;  %v14652_v1 = vmul.f32 %v2383_v35, %v2311_v14  ;;  %v14654_v2 = vmul.f32 %v12903_v0, %v12903_v0  ;;  %v14657_v3 = vmul.f32 %v12903_v0, %v14557_v47  ;;  %v2076_v37 = vpop.f32.mrb[15].mxu1 }
 0x324   :  { %v14659_v4 = vmul.f32 %v2076_v37, %v2076_v37  ;;  %v14662_v5 = vmul.f32 %v2076_v37, %v14560_v48  ;;  %v2306_v48 = vmul.f32 2.0, %v14627_v51 }
 0x325   :  { %v2531_v9 = vpop.trf.xlu1  ;;  %v2557_v10 = vpop.trf.xlu0  ;;  %v2236_v11 = vadd.f32 %v14654_v2, %v14642_v34  ;;  %v2308_v24 = vmul.f32 2.0, %v14657_v3 }
 0x326   :  { %12976 = vmatmul.mubr.msk.f32.gmra.mrb[58].mxu1 %vm474_vm1, %v2529_v63  ;;  %v2235_v15 = vadd.f32 %v14659_v4, %v14647_v30  ;;  %v2314_v53 = vadd.f32 0.0001, %v2306_v48  ;;  %v2313_v63 = vadd.f32 0.0001, %v2305_v40 }
 0x327   :  { %12978 = vmatprep.mubr.msk.f32.mxu1 %vm474_vm1, %v2530_v32  ;;  %v2244_v47 = vadd.f32 0.0001, %v2236_v11 }
 0x328   :  { %v2243_v16 = vadd.f32 0.0001, %v2235_v15 }
 0x329   :  { %v2532_v17 = vpop.trf.xlu1  ;;  %v2558_v38 = vpop.trf.xlu0  ;;  %14045 = vrcp.f32 %v2244_v47 }
 0x32a   :  { %12979 = vmatmul.mubr.msk.f32.gmra.mrb[60].mxu1 %vm474_vm1, %v2531_v9  ;;  %14047 = vrcp.f32 %v2243_v16 }
 0x32b   :  { %v14042_v20 = vpop.eup %14041  ;;  %12981 = vmatprep.mubr.msk.f32.mxu1 %vm474_vm1, %v2532_v17 }
 0x32c   :  { %v14044_v41 = vpop.eup %14043  ;;  %v2370_v42 = vmul.f32 %v14042_v20, %v2242_v27 }
 0x32d   :  { %v2533_v45 = vpop.trf.xlu1  ;;  %v2559_v49 = vpop.trf.xlu0  ;;  %v2369_v52 = vmul.f32 %v14044_v41, %v2241_v31 }
 0x32e   :  { %12982 = vmatmul.mubr.msk.f32.gmra.mrb[62].mxu1 %vm474_vm1, %v2533_v45  ;;  %v2378_v56 = vsub.f32 2.0, %v2370_v42 }
 0x32f   :  { %12984 = vmatprep.mubr.msk.f32.mxu1 %vm474_vm1, %v14606_v39  ;;  %v2377_v7 = vsub.f32 2.0, %v2369_v52  ;;  %v2307_v39 = vmul.f32 2.0, %v14662_v5 }
 0x330   :  { %v2386_v8 = vmul.f32 %v14042_v20, %v2378_v56 }
 0x331   :  { %v2560_v12 = vpop.trf.xlu0  ;;  %v2586_v13 = vpop.trf.xlu1  ;;  %v2385_v43 = vmul.f32 %v14044_v41, %v2377_v7  ;;  %v2315_v48 = vadd.f32 0.0001, %v2307_v39 }
 0x332   :  { %12985 = vmatmul.mubr.msk.f32.gmra.mrb[64].mxu1 %vm474_vm1, %v2555_v6  ;;  %v14678_v14 = vmul.f32 %v2386_v8, %v2314_v53  ;;  %v14681_v27 = vpop.f32.mrb[16].mxu1 }
 0x333   :  { %v14046_v44 = vpop.eup %14045  ;;  %12987 = vmatprep.mubr.msk.f32.mxu1 %vm474_vm1, %v2556_v33  ;;  %v14684_v31 = vmul.f32 %v2385_v43, %v2313_v63  ;;  %v2246_v32 = vsub.f32 %v14681_v27, %v14565_v54  ;;  %v14689_v35 = vpop.f32.mrb[17].mxu1  ;;  %v2316_v33 = vadd.f32 0.0001, %v2308_v24 }
 0x334   :  { %v14048_v0 = vpop.eup %14047  ;;  %v2372_v6 = vmul.f32 %v14046_v44, %v2244_v47  ;;  %v2245_v37 = vsub.f32 %v14689_v35, %v14568_v55 }
 0x335   :  { %v2561_v9 = vpop.trf.xlu0  ;;  %v2587_v11 = vpop.trf.xlu1  ;;  %v2371_v15 = vmul.f32 %v14048_v0, %v2243_v16 }
 0x336   :  { %12988 = vmatmul.mubr.msk.f32.gmra.mrb[66].mxu1 %vm474_vm1, %v2557_v10  ;;  %v2380_v17 = vsub.f32 2.0, %v2372_v6 }
 0x337   :  { %12990 = vmatprep.mubr.msk.f32.mxu1 %vm474_vm1, %v2558_v38  ;;  %v2379_v20 = vsub.f32 2.0, %v2371_v15 }
 0x338   :  { %v2388_v40 = vmul.f32 %v14046_v44, %v2380_v17 }
 0x339   :  { %v2562_v41 = vpop.trf.xlu0  ;;  %v2588_v42 = vpop.trf.xlu1  ;;  %v2387_v45 = vmul.f32 %v14048_v0, %v2379_v20 }
 0x33a   :  { %12991 = vmatmul.mubr.msk.f32.gmra.mrb[68].mxu1 %vm474_vm1, %v2559_v49  ;;  %v14696_v47 = vmul.f32 %v2388_v40, %v2316_v33  ;;  %v12909_v52 = vpop.f32.mrb[18].mxu1 }
 0x33b   :  { %12993 = vmatprep.mubr.msk.f32.mxu1 %vm474_vm1, %v2560_v12  ;;  %v14699_v16 = vmul.f32 %v2387_v45, %v2315_v48  ;;  %v2248_v10 = vsub.f32 %v12909_v52, %v14583_v18  ;;  %v2096_v53 = vpop.f32.mrb[19].mxu1 }
 0x33c   :  { %v2247_v38 = vsub.f32 %v2096_v53, %v14586_v19 }
 0x33d   :  { %v2563_v56 = vpop.trf.xlu0  ;;  %v2589_v63 = vpop.trf.xlu1 }
 0x33e   :  { %12994 = vmatmul.mubr.msk.f32.gmra.mrb[70].mxu1 %vm474_vm1, %v2561_v9 }
 0x33f   :  { %12996 = vmatprep.mubr.msk.f32.mxu1 %vm474_vm1, %v2562_v41 }
 0x341   :  { %v2564_v7 = vpop.trf.xlu0  ;;  %v2590_v49 = vpop.trf.xlu1 }
 0x342   :  { %12997 = vmatmul.mubr.msk.f32.gmra.mrb[72].mxu1 %vm474_vm1, %v2563_v56 }
 0x343   :  { %12999 = vmatprep.mubr.msk.f32.mxu1 %vm474_vm1, %v2564_v7 }
 0x345   :  { %v2565_v8 = vpop.trf.xlu0  ;;  %v2591_v12 = vpop.trf.xlu1 }
 0x346   :  { %13000 = vmatmul.mubr.msk.f32.gmra.mrb[74].mxu1 %vm474_vm1, %v2565_v8 }
 0x347   :  { %13002 = vmatprep.mubr.msk.f32.mxu1 %vm474_vm1, %v2586_v13 }
 0x349   :  { %v2592_v18 = vpop.trf.xlu1  ;;  %v12912_v19 = vpop.f32.mrb[20].mxu1 }
 0x34a   :  { %13003 = vmatmul.mubr.msk.f32.gmra.mrb[76].mxu1 %vm474_vm1, %v2587_v11  ;;  %v2250_v43 = vsub.f32 %v12912_v19, %v14610_v21  ;;  %v2106_v24 = vpop.f32.mrb[21].mxu1 }
 0x34b   :  { %13005 = vmatprep.mubr.msk.f32.mxu1 %vm474_vm1, %v2588_v42  ;;  %v2249_v44 = vsub.f32 %v2106_v24, %v14615_v22 }
 0x34d   :  { %v2593_v39 = vpop.trf.xlu1 }
 0x34e   :  { %13006 = vmatmul.mubr.msk.f32.gmra.mrb[78].mxu1 %vm474_vm1, %v2589_v63 }
 0x34f   :  { %13008 = vmatprep.mubr.msk.f32.mxu1 %vm474_vm1, %v2590_v49 }
 0x351   :  { %v2594_v0 = vpop.trf.xlu1  ;;  %v12915_v6 = vpop.f32.mrb[22].mxu1 }
 0x352   :  { %13009 = vmatmul.mubr.msk.f32.gmra.mrb[80].mxu1 %vm474_vm1, %v2591_v12  ;;  %v2252_v13 = vsub.f32 %v12915_v6, %v14642_v34  ;;  %v2116_v9 = vpop.f32.mrb[23].mxu1 }
 0x353   :  { %13011 = vmatprep.mubr.msk.f32.mxu1 %vm474_vm1, %v2592_v18  ;;  %v2251_v21 = vsub.f32 %v2116_v9, %v14647_v30 }
 0x355   :  { %v2595_v11 = vpop.trf.xlu1 }
 0x356   :  { %13012 = vmatmul.mubr.msk.f32.gmra.mrb[82].mxu1 %vm474_vm1, %v2593_v39 }
 0x357   :  { %13014 = vmatprep.mubr.msk.f32.mxu1 %vm474_vm1, %v2594_v0 }
 0x359   :  { %v2596_v22 = vpop.trf.xlu1 }
 0x35a   :  { %13015 = vmatmul.mubr.msk.f32.gmra.mrb[84].mxu1 %vm474_vm1, %v2595_v11 }
 0x35b   :  { %13017 = vmatprep.mubr.msk.f32.mxu1 %vm474_vm1, %v2596_v22 }
 0x35d   :  { %v2597_v15 = vpop.trf.xlu1 }
 0x35e   :  { %13018 = vmatmul.mubr.msk.f32.gmra.mrb[86].mxu1 %vm474_vm1, %v2597_v15  ;;  %vm9994_vm1 = vcmask 48128  }
 0x361   :  { %v12918_v33 = vpop.f32.mrb[24].mxu1 }
 0x362   :  { %v2254_v34 = vsub.f32 %v12918_v33, %v14570_v57  ;;  %v2126_v17 = vpop.f32.mrb[25].mxu1 }
 0x363   :  { %v2253_v48 = vsub.f32 %v2126_v17, %v14574_v60 }
 0x364   :  { %v2262_v30 = vadd.f32 %v2254_v34, %v2246_v32 }
 0x365   :  { %v2261_v20 = vadd.f32 %v2253_v48, %v2245_v37 }
 0x366   :  { %v2270_v27 = vadd.f32 0.0009, %v2262_v30 }
 0x367   :  { %v2269_v7 = vadd.f32 0.0009, %v2261_v20 }
 0x368   :  { %14049 = vrcp.f32 %v2270_v27 }
 0x369   :  { %v12921_v40 = vpop.f32.mrb[26].mxu1  ;;  %14051 = vrcp.f32 %v2269_v7 }
 0x36a   :  { %v2256_v41 = vsub.f32 %v12921_v40, %v14588_v25  ;;  %v2136_v42 = vpop.f32.mrb[27].mxu1 }
 0x36b   :  { %v2255_v45 = vsub.f32 %v2136_v42, %v14592_v28 }
 0x36c   :  { %v2264_v52 = vadd.f32 %v2256_v41, %v2248_v10 }
 0x36d   :  { %v2263_v53 = vadd.f32 %v2255_v45, %v2247_v38 }
 0x36e   :  { %v2272_v37 = vadd.f32 0.0009, %v2264_v52 }
 0x36f   :  { %v2271_v49 = vadd.f32 0.0009, %v2263_v53 }
 0x370   :  { %14053 = vrcp.f32 %v2272_v37 }
 0x371   :  { %14055 = vrcp.f32 %v2271_v49 }
 0x379   :  { %v12924_v57 = vpop.f32.mrb[28].mxu1 }
 0x37a   :  { %v2258_v56 = vsub.f32 %v12924_v57, %v14624_v50  ;;  %v2146_v60 = vpop.f32.mrb[29].mxu1  ;;  %v14050_v50 = vpop.eup %14049 }
 0x37b   :  { %v2257_v63 = vsub.f32 %v2146_v60, %v14629_v59  ;;  %v14052_v59 = vpop.eup %14051  ;;  %v2326_v8 = vmul.f32 %v14050_v50, %v2270_v27 }
 0x37c   :  { %v2266_v54 = vadd.f32 %v2258_v56, %v2250_v43  ;;  %v2325_v12 = vmul.f32 %v14052_v59, %v2269_v7  ;;  %v14054_v19 = vpop.eup %14053 }
 0x37d   :  { %v2265_v32 = vadd.f32 %v2257_v63, %v2249_v44  ;;  %v2334_v43 = vsub.f32 2.0, %v2326_v8  ;;  %v2328_v6 = vmul.f32 %v14054_v19, %v2272_v37 }
 0x37f   :  { %v2342_v22 = vmul.f32 %v14050_v50, %v2334_v43  ;;  %v2336_v48 = vsub.f32 2.0, %v2328_v6 }
 0x381   :  { %v12927_v55 = vpop.f32.mrb[30].mxu1 }
 0x382   :  { %v2260_v25 = vsub.f32 %v12927_v55, %v14654_v2  ;;  %v2156_v35 = vpop.f32.mrb[31].mxu1  ;;  %v2333_v2 = vsub.f32 2.0, %v2325_v12 }
 0x383   :  { %v2259_v28 = vsub.f32 %v2156_v35, %v14659_v4  ;;  %v14056_v4 = vpop.eup %14055 }
 0x384   :  { %v2268_v10 = vadd.f32 %v2260_v25, %v2252_v13  ;;  %v2274_v13 = vadd.f32 0.0009, %v2266_v54  ;;  %v2327_v15 = vmul.f32 %v14056_v4, %v2271_v49  ;;  %v2341_v34 = vmul.f32 %v14052_v59, %v2333_v2 }
 0x385   :  { %v2267_v38 = vadd.f32 %v2259_v28, %v2251_v21  ;;  %v2273_v21 = vadd.f32 0.0009, %v2265_v32 }
 0x386   :  { %14057 = vrcp.f32 %v2274_v13  ;;  %v2335_v42 = vsub.f32 2.0, %v2327_v15  ;;  %v2276_v63 = vadd.f32 0.0009, %v2268_v10 }
 0x387   :  { %14059 = vrcp.f32 %v2273_v21  ;;  %v2275_v27 = vadd.f32 0.0009, %v2267_v38 }
 0x388   :  { %v2343_v25 = vmul.f32 %v14056_v4, %v2335_v42  ;;  %14061 = vrcp.f32 %v2276_v63 }
 0x389   :  { %14063 = vrcp.f32 %v2275_v27 }
 0x390   :  { %v14058_v38 = vpop.eup %14057 }
 0x391   :  { %v12930_v18 = vpop.f32.mrb[32].mxu1  ;;  %v14060_v59 = vpop.eup %14059 }
 0x392   :  { %v2278_v24 = vsub.f32 %v12930_v18, %v14572_v58  ;;  %v2166_v44 = vpop.f32.mrb[33].mxu1  ;;  %v14062_v6 = vpop.eup %14061 }
 0x393   :  { %v2277_v39 = vsub.f32 %v2166_v44, %v14576_v61  ;;  %v2329_v44 = vmul.f32 %v14060_v59, %v2273_v21 }
 0x394   :  { %v2286_v0 = vmul.f32 2.0, %v2278_v24 }
 0x395   :  { %v2285_v9 = vmul.f32 2.0, %v2277_v39 }
 0x396   :  { %v2294_v11 = vadd.f32 0.0009, %v2286_v0 }
 0x397   :  { %v2293_v33 = vadd.f32 0.0009, %v2285_v9  ;;  %v2337_v9 = vsub.f32 2.0, %v2329_v44 }
 0x398   :  { %v2350_v17 = vmul.f32 %v2342_v22, %v2294_v11  ;;  %v14064_v22 = vpop.eup %14063 }
 0x399   :  { %v2349_v30 = vmul.f32 %v2341_v34, %v2293_v33  ;;  %v12933_v58 = vpop.f32.mrb[34].mxu1  ;;  %v2332_v34 = vmul.f32 %v14062_v6, %v2276_v63 }
 0x39a   :  { %v2398_v20 = vmul.f32 %v14617_v23, %v2350_v17  ;;  %v2431_v61 = vsel %vm29_vm0, %v2350_v17, 0.0  ;;  %v2280_v40 = vsub.f32 %v12933_v58, %v14590_v26  ;;  %v2176_v41 = vpop.f32.mrb[35].mxu1  ;;  %v2344_v26 = vmul.f32 %v14054_v19, %v2336_v48  ;;  %v2460_v58 = vld [vmem:[%s15800_s1 + $0xb0] sm:$0xff] }
 0x39b   :  { %v2397_v45 = vmul.f32 %v14621_v46, %v2349_v30  ;;  %v2430_v52 = vsel %vm29_vm0, %v2349_v30, 0.0  ;;  %v2279_v53 = vsub.f32 %v2176_v41, %v14594_v29  ;;  %v2458_v46 = vld [vmem:[%s15800_s1 + $0xa0] sm:$0xff]  ;;  %v2459_v29 = vld [vmem:[%s15800_s1 + $0xa8] sm:$0xff]  ;;  %v2330_v19 = vmul.f32 %v14058_v38, %v2274_v13 }
 0x39c   :  { %v2407_v57 = vsel %vm29_vm0, %v2398_v20, 0.0  ;;  %v2432_v56 = vadd.f32 %v2431_v61, %v2430_v52  ;;  %v2288_v60 = vmul.f32 2.0, %v2280_v40  ;;  %v13778_v28 = vpack.c.bf16 %v2459_v29, %v2458_v46 }
 0x39d   :  { %v2406_v54 = vsel %vm29_vm0, %v2397_v45, 0.0  ;;  %v2287_v23 = vmul.f32 2.0, %v2279_v53  ;;  %v2338_v4 = vsub.f32 2.0, %v2330_v19  ;;  %v2331_v48 = vmul.f32 %v14064_v22, %v2275_v27 }
 0x39e   :  { %v2408_v32 = vadd.f32 %v2407_v57, %v2406_v54  ;;  %v2296_v7 = vadd.f32 0.0009, %v2288_v60  ;;  %13779 = vmatprep.subr.bf16.mxu1 %v13778_v28  ;;  %v2345_v30 = vmul.f32 %v14060_v59, %v2337_v9  ;;  %v2340_v41 = vsub.f32 2.0, %v2332_v34  ;;  %v2469_v9 = vld [vmem:[%s15800_s1 + $0xf8] sm:$0xff] }
 0x39f   :  { %v2295_v55 = vadd.f32 0.0009, %v2287_v23  ;;  %13781 = vmatpush3.bf16.msra.mxu1 %v13778_v28  ;;  %v2346_v17 = vmul.f32 %v14058_v38, %v2338_v4  ;;  %v2339_v53 = vsub.f32 2.0, %v2331_v48 }
 0x3a0   :  { %v2352_v35 = vmul.f32 %v2344_v26, %v2296_v7 }
 0x3a1   :  { %v2351_v37 = vmul.f32 %v2343_v25, %v2295_v55 }
 0x3a2   :  { %v2400_v10 = vmul.f32 %v14649_v36, %v2352_v35  ;;  %v2435_v12 = vsel %vm29_vm0, %v2352_v35, 0.0 }
 0x3a3   :  { %v2399_v49 = vmul.f32 %v14652_v1, %v2351_v37  ;;  %v2433_v50 = vsel %vm29_vm0, %v2351_v37, 0.0 }
 0x3a4   :  { %v2434_v8 = vadd.f32 %v2433_v50, %v2432_v56  ;;  %v2411_v2 = vsel %vm29_vm0, %v2400_v10, 0.0 }
 0x3a5   :  { %v2409_v18 = vsel %vm29_vm0, %v2399_v49, 0.0 }
 0x3a6   :  { %v2410_v43 = vadd.f32 %v2409_v18, %v2408_v32  ;;  %v2436_v24 = vadd.f32 %v2435_v12, %v2434_v8  ;;  %v2462_v8 = vld [vmem:[%s15800_s1 + $0xc0] sm:$0xff] }
 0x3a8   :  { %v2412_v36 = vadd.f32 %v2411_v2, %v2410_v43  ;;  %v2464_v2 = vld [vmem:[%s15800_s1 + $0xd0] sm:$0xff] }
 0x3a9   :  { %v12936_v39 = vpop.f32.mrb[36].mxu1 }
 0x3aa   :  { %v2282_v1 = vsub.f32 %v12936_v39, %v14627_v51  ;;  %v2186_v0 = vpop.f32.mrb[37].mxu1  ;;  %v2461_v51 = vld [vmem:[%s15800_s1 + $0xb8] sm:$0xff]  ;;  %v2466_v39 = vld [vmem:[%s15800_s1 + $0xe0] sm:$0xff] }
 0x3ab   :  { %v2281_v11 = vsub.f32 %v2186_v0, %v14632_v62  ;;  %v13782_v61 = vpack.c.bf16 %v2461_v51, %v2460_v58 }
 0x3ac   :  { %v2290_v15 = vmul.f32 2.0, %v2282_v1  ;;  %v2467_v1 = vld [vmem:[%s15800_s1 + $0xe8] sm:$0xff] }
 0x3ad   :  { %v2289_v33 = vmul.f32 2.0, %v2281_v11  ;;  %13783 = vmatprep.subr.bf16.mxu1 %v13782_v61  ;;  %v13794_v0 = vpack.c.bf16 %v2467_v1, %v2466_v39 }
 0x3ae   :  { %v2298_v13 = vadd.f32 0.0009, %v2290_v15  ;;  %13785 = vmatpush3.bf16.msra.mxu1 %v13782_v61 }
 0x3af   :  { %v2297_v21 = vadd.f32 0.0009, %v2289_v33 }
 0x3b0   :  { %v2354_v20 = vmul.f32 %v2346_v17, %v2298_v13 }
 0x3b1   :  { %v2353_v62 = vmul.f32 %v2345_v30, %v2297_v21  ;;  %v12939_v40 = vpop.f32.mrb[38].mxu1 }
 0x3b2   :  { %v2402_v42 = vmul.f32 %v14678_v14, %v2354_v20  ;;  %v2284_v45 = vsub.f32 %v12939_v40, %v14657_v3  ;;  %v2196_v52 = vpop.f32.mrb[39].mxu1  ;;  %v2439_v23 = vsel %vm29_vm0, %v2354_v20, 0.0  ;;  %v2348_v3 = vmul.f32 %v14062_v6, %v2340_v41  ;;  %v2468_v6 = vld [vmem:[%s15800_s1 + $0xf0] sm:$0xff] }
 0x3b3   :  { %v2401_v57 = vmul.f32 %v14684_v31, %v2353_v62  ;;  %v2437_v56 = vsel %vm29_vm0, %v2353_v62, 0.0  ;;  %v2283_v60 = vsub.f32 %v2196_v52, %v14662_v5  ;;  %v2347_v31 = vmul.f32 %v14064_v22, %v2339_v53 }
 0x3b4   :  { %v2438_v63 = vadd.f32 %v2437_v56, %v2436_v24  ;;  %v2292_v54 = vmul.f32 2.0, %v2284_v45  ;;  %v2415_v55 = vsel %vm29_vm0, %v2402_v42, 0.0  ;;  %v13798_v11 = vpack.c.bf16 %v2469_v9, %v2468_v6  ;;  %v3368_v6 = vld [vmem:[%s15800_s1 + $0x108] sm:$0xff] }
 0x3b5   :  { %v2413_v27 = vsel %vm29_vm0, %v2401_v57, 0.0  ;;  %v2291_v32 = vmul.f32 2.0, %v2283_v60 }
 0x3b6   :  { %v2414_v14 = vadd.f32 %v2413_v27, %v2412_v36  ;;  %v2300_v7 = vadd.f32 0.0009, %v2292_v54  ;;  %v2440_v26 = vadd.f32 %v2439_v23, %v2438_v63  ;;  %v2465_v36 = vld [vmem:[%s15800_s1 + $0xd8] sm:$0xff] }
 0x3b7   :  { %v2299_v25 = vadd.f32 0.0009, %v2291_v32  ;;  %v13790_v4 = vpack.c.bf16 %v2465_v36, %v2464_v2 }
 0x3b8   :  { %v2356_v46 = vmul.f32 %v2348_v3, %v2300_v7  ;;  %v2416_v29 = vadd.f32 %v2415_v55, %v2414_v14 }
 0x3b9   :  { %v2355_v35 = vmul.f32 %v2347_v31, %v2299_v25 }
 0x3ba   :  { %v2404_v5 = vmul.f32 %v14696_v47, %v2356_v46  ;;  %v2443_v49 = vsel %vm29_vm0, %v2356_v46, 0.0  ;;  %v2463_v47 = vld [vmem:[%s15800_s1 + $0xc8] sm:$0xff] }
 0x3bb   :  { %v2403_v28 = vmul.f32 %v14699_v16, %v2355_v35  ;;  %v2441_v37 = vsel %vm29_vm0, %v2355_v35, 0.0  ;;  %v13786_v12 = vpack.c.bf16 %v2463_v47, %v2462_v8 }
 0x3bc   :  { %v2442_v10 = vadd.f32 %v2441_v37, %v2440_v26  ;;  %v2419_v16 = vsel %vm29_vm0, %v2404_v5, 0.0 }
 0x3bd   :  { %v2417_v38 = vsel %vm29_vm0, %v2403_v28, 0.0  ;;  %13787 = vmatprep.subr.bf16.mxu1 %v13786_v12 }
 0x3be   :  { %v2418_v50 = vadd.f32 %v2417_v38, %v2416_v29  ;;  %v14781_v59 = vadd.f32 %v2443_v49, %v2442_v10  ;;  %13789 = vmatpush3.bf16.msra.mxu1 %v13786_v12 }
 0x3bf   :  { %13791 = vmatprep.subr.bf16.mxu1 %v13790_v4 }
 0x3c0   :  { %v14790_v18 = vadd.f32 %v2419_v16, %v2418_v50 }
 0x3c1   :  { %v12950_v19 = vpop.f32.mrb[40].mxu1 }
 0x3c2   :  { %v2812_v43 = vpop.f32.mrb[41].mxu1  ;;  %13793 = vmatpush3.bf16.msra.mxu1 %v13790_v4 }
 0x3c3   :  { %3051 = vxpose.xlu0.b32.start [1/12] (short) (narrow) %v2812_v43, 16  ;;  %13795 = vmatprep.subr.bf16.mxu1 %v13794_v0 }
 0x3c6   :  { %13797 = vmatpush3.bf16.msra.mxu1 %v13794_v0  ;;  %v3367_v0 = vld [vmem:[%s15800_s1 + $0x100] sm:$0xff] }
 0x3c7   :  { %3052 = vxpose.xlu0.b32.cont [2/12] (short) (narrow) %v12950_v19, 16  ;;  %13799 = vmatprep.subr.bf16.mxu1 %v13798_v11  ;;  %v13802_v9 = vpack.c.bf16 %v3368_v6, %v3367_v0 }
 0x3c9   :  { %v12953_v24 = vpop.f32.mrb[42].mxu1 }
 0x3ca   :  { %v2822_v44 = vpop.f32.mrb[43].mxu1  ;;  %13801 = vmatpush3.bf16.msra.mxu1 %v13798_v11 }
 0x3cb   :  { %3053 = vxpose.xlu0.b32.cont [3/12] (short) (narrow) %v2822_v44, 16  ;;  %13803 = vmatprep.subr.bf16.mxu1 %v13802_v9 }
 0x3cf   :  { %3054 = vxpose.xlu0.b32.cont [4/12] (short) (narrow) %v12953_v24, 16 }
 0x3d1   :  { %v12956_v22 = vpop.f32.mrb[44].mxu1 }
 0x3d2   :  { %v2832_v15 = vpop.f32.mrb[45].mxu1 }
 0x3d3   :  { %3055 = vxpose.xlu0.b32.cont [5/12] (short) (narrow) %v2832_v15, 16 }
 0x3d7   :  { %3056 = vxpose.xlu0.b32.cont [6/12] (short) (narrow) %v12956_v22, 16 }
 0x3d9   :  { %v12959_v33 = vpop.f32.mrb[46].mxu1 }
 0x3da   :  { %v2842_v34 = vpop.f32.mrb[47].mxu1 }
 0x3db   :  { %3057 = vxpose.xlu0.b32.cont [7/12] (short) (narrow) %v2842_v34, 16 }
 0x3df   :  { %3058 = vxpose.xlu0.b32.cont [8/12] (short) (narrow) %v12959_v33, 16 }
 0x3e1   :  { %v12962_v13 = vpop.f32.mrb[48].mxu1 }
 0x3e2   :  { %v2852_v17 = vpop.f32.mrb[49].mxu1 }
 0x3e3   :  { %3059 = vxpose.xlu0.b32.cont [9/12] (short) (narrow) %v2852_v17, 16 }
 0x3e7   :  { %3060 = vxpose.xlu0.b32.cont [10/12] (short) (narrow) %v12962_v13, 16 }
 0x3e9   :  { %v12965_v48 = vpop.f32.mrb[50].mxu1 }
 0x3ea   :  { %v2862_v21 = vpop.f32.mrb[51].mxu1 }
 0x3eb   :  { %3061 = vxpose.xlu0.b32.cont [11/12] (short) (narrow) %v2862_v21, 16 }
 0x3ed   :  { %v12968_v30 = vpop.f32.mrb[52].mxu1 }
 0x3ee   :  { %v2872_v58 = vpop.f32.mrb[53].mxu1 }
 0x3ef   :  { %3062 = vxpose.xlu0.b32.end [12/12] (short) (narrow) %v12965_v48, 16  ;;  %3083 = vxpose.xlu1.b32.start [1/12] (short) (narrow) %v2872_v58, 16 }
 0x3f1   :  { %v12971_v51 = vpop.f32.mrb[54].mxu1 }
 0x3f2   :  { %v2882_v20 = vpop.f32.mrb[55].mxu1 }
 0x3f3   :  { %3084 = vxpose.xlu1.b32.cont [2/12] (short) (narrow) %v12968_v30, 16 }
 0x3f5   :  { %v12974_v61 = vpop.f32.mrb[56].mxu1 }
 0x3f6   :  { %v2892_v62 = vpop.f32.mrb[57].mxu1 }
 0x3f7   :  { %3085 = vxpose.xlu1.b32.cont [3/12] (short) (narrow) %v2882_v20, 16 }
 0x3f9   :  { %v12977_v40 = vpop.f32.mrb[58].mxu1 }
 0x3fa   :  { %v2902_v41 = vpop.f32.mrb[59].mxu1 }
 0x3fb   :  { %3086 = vxpose.xlu1.b32.cont [4/12] (short) (narrow) %v12971_v51, 16 }
 0x3fd   :  { %v12980_v42 = vpop.f32.mrb[60].mxu1 }
 0x3fe   :  { %v2912_v45 = vpop.f32.mrb[61].mxu1 }
 0x3ff   :  { %3087 = vxpose.xlu1.b32.cont [5/12] (short) (narrow) %v2892_v62, 16 }
 0x401   :  { %v12983_v52 = vpop.f32.mrb[62].mxu1 }
 0x402   :  { %v2922_v53 = vpop.f32.mrb[63].mxu1 }
 0x403   :  { %3088 = vxpose.xlu1.b32.cont [6/12] (short) (narrow) %v12974_v61, 16 }
 0x405   :  { %v12986_v57 = vpop.f32.mrb[64].mxu1 }
 0x406   :  { %v2932_v56 = vpop.f32.mrb[65].mxu1 }
 0x407   :  { %3089 = vxpose.xlu1.b32.cont [7/12] (short) (narrow) %v2902_v41, 16  ;;  %3115 = vxpose.xlu0.b32.start [1/12] (short) (narrow) %v2932_v56, 16 }
 0x409   :  { %v12989_v60 = vpop.f32.mrb[66].mxu1 }
 0x40a   :  { %v2942_v63 = vpop.f32.mrb[67].mxu1 }
 0x40b   :  { %3090 = vxpose.xlu1.b32.cont [8/12] (short) (narrow) %v12977_v40, 16  ;;  %3116 = vxpose.xlu0.b32.cont [2/12] (short) (narrow) %v12986_v57, 16 }
 0x40d   :  { %v12992_v54 = vpop.f32.mrb[68].mxu1 }
 0x40e   :  { %v2952_v23 = vpop.f32.mrb[69].mxu1 }
 0x40f   :  { %3091 = vxpose.xlu1.b32.cont [9/12] (short) (narrow) %v2912_v45, 16  ;;  %3117 = vxpose.xlu0.b32.cont [3/12] (short) (narrow) %v2942_v63, 16 }
 0x411   :  { %v12995_v27 = vpop.f32.mrb[70].mxu1 }
 0x412   :  { %v2962_v32 = vpop.f32.mrb[71].mxu1 }
 0x413   :  { %3092 = vxpose.xlu1.b32.cont [10/12] (short) (narrow) %v12980_v42, 16  ;;  %3118 = vxpose.xlu0.b32.cont [4/12] (short) (narrow) %v12989_v60, 16 }
 0x415   :  { %v12998_v14 = vpop.f32.mrb[72].mxu1 }
 0x416   :  { %v2972_v7 = vpop.f32.mrb[73].mxu1 }
 0x417   :  { %3093 = vxpose.xlu1.b32.cont [11/12] (short) (narrow) %v2922_v53, 16  ;;  %3119 = vxpose.xlu0.b32.cont [5/12] (short) (narrow) %v2952_v23, 16 }
 0x419   :  { %v13001_v3 = vpop.f32.mrb[74].mxu1 }
 0x41a   :  { %v2982_v26 = vpop.f32.mrb[75].mxu1 }
 0x41b   :  { %3094 = vxpose.xlu1.b32.end [12/12] (short) (narrow) %v12983_v52, 16  ;;  %3120 = vxpose.xlu0.b32.cont [6/12] (short) (narrow) %v12992_v54, 16 }
 0x41d   :  { %v13004_v55 = vpop.f32.mrb[76].mxu1 }
 0x41e   :  { %v2992_v25 = vpop.f32.mrb[77].mxu1 }
 0x41f   :  { %3121 = vxpose.xlu0.b32.cont [7/12] (short) (narrow) %v2962_v32, 16  ;;  %3147 = vxpose.xlu1.b32.start [1/12] (short) (narrow) %v2992_v25, 16 }
 0x421   :  { %v13007_v31 = vpop.f32.mrb[78].mxu1 }
 0x422   :  { %v3002_v46 = vpop.f32.mrb[79].mxu1 }
 0x423   :  { %3122 = vxpose.xlu0.b32.cont [8/12] (short) (narrow) %v12995_v27, 16  ;;  %3148 = vxpose.xlu1.b32.cont [2/12] (short) (narrow) %v13004_v55, 16 }
 0x425   :  { %v13010_v29 = vpop.f32.mrb[80].mxu1 }
 0x426   :  { %v3012_v35 = vpop.f32.mrb[81].mxu1 }
 0x427   :  { %3123 = vxpose.xlu0.b32.cont [9/12] (short) (narrow) %v2972_v7, 16  ;;  %3149 = vxpose.xlu1.b32.cont [3/12] (short) (narrow) %v3002_v46, 16 }
 0x429   :  { %v13013_v5 = vpop.f32.mrb[82].mxu1 }
 0x42a   :  { %v3022_v28 = vpop.f32.mrb[83].mxu1 }
 0x42b   :  { %3124 = vxpose.xlu0.b32.cont [10/12] (short) (narrow) %v12998_v14, 16  ;;  %3150 = vxpose.xlu1.b32.cont [4/12] (short) (narrow) %v13007_v31, 16 }
 0x42d   :  { %v13016_v37 = vpop.f32.mrb[84].mxu1 }
 0x42e   :  { %v3032_v10 = vpop.f32.mrb[85].mxu1 }
 0x42f   :  { %3125 = vxpose.xlu0.b32.cont [11/12] (short) (narrow) %v2982_v26, 16  ;;  %3151 = vxpose.xlu1.b32.cont [5/12] (short) (narrow) %v3012_v35, 16 }
 0x431   :  { %v13019_v38 = vpop.f32.mrb[86].mxu1 }
 0x432   :  { %v3042_v49 = vpop.f32.mrb[87].mxu1 }
 0x433   :  { %3126 = vxpose.xlu0.b32.end [12/12] (short) (narrow) %v13001_v3, 16  ;;  %3152 = vxpose.xlu1.b32.cont [6/12] (short) (narrow) %v13010_v29, 16 }
 0x437   :  { %3153 = vxpose.xlu1.b32.cont [7/12] (short) (narrow) %v3022_v28, 16 }
 0x43b   :  { %3154 = vxpose.xlu1.b32.cont [8/12] (short) (narrow) %v13013_v5, 16 }
 0x43f   :  { %3155 = vxpose.xlu1.b32.cont [9/12] (short) (narrow) %v3032_v10, 16 }
 0x443   :  { %3156 = vxpose.xlu1.b32.cont [10/12] (short) (narrow) %v13016_v37, 16  ;;  %v3067_v50 = vpop.trf.xlu0 }
 0x444   :  { %13044 = vmatprep.mubr.msk.f32.mxu1 %vm29_vm0, %v3067_v50  ;;  %v3362_v50 = vld [vmem:[%s15800_s1 + $0x118] sm:$0xff] }
 0x447   :  { %3157 = vxpose.xlu1.b32.cont [11/12] (short) (narrow) %v3042_v49, 16  ;;  %v3068_v8 = vpop.trf.xlu0  ;;  %v3361_v49 = vld [vmem:[%s15800_s1 + $0x110] sm:$0xff] }
 0x448   :  { %13045 = vmatmul.mubr.msk.f32.vlgmr.msra.gmra.mrb[88].mxu1 %vm29_vm0, %v3068_v8  ;;  %v13806_v8 = vpack.c.bf16 %v3362_v50, %v3361_v49  ;;  %v3363_v50 = vld [vmem:[%s15800_s1 + $0x120] sm:$0xff] }
 0x449   :  { %13805 = vmatpush3.bf16.msra.mxu1 %v13802_v9 }
 0x44a   :  { %13807 = vmatprep.subr.bf16.mxu0 %v13806_v8 }
 0x44b   :  { %3158 = vxpose.xlu1.b32.end [12/12] (short) (narrow) %v13019_v38, 16  ;;  %13809 = vmatpush3.bf16.msra.mxu0 %v13806_v8  ;;  %v3364_v8 = vld [vmem:[%s15800_s1 + $0x128] sm:$0xff] }
 0x46f   :  { %v3099_v47 = vpop.trf.xlu1 }
 0x470   :  { %13047 = vmatprep.mubr.msk.f32.mxu1 %vm29_vm0, %v3099_v47 }
 0x473   :  { %v3100_v16 = vpop.trf.xlu1 }
 0x474   :  { %13048 = vmatmul.mubr.msk.f32.gmra.mrb[90].mxu1 %vm29_vm0, %v3100_v16 }
 0x487   :  { %v3131_v12 = vpop.trf.xlu0 }
 0x488   :  { %13050 = vmatprep.mubr.msk.f32.mxu1 %vm29_vm0, %v3131_v12 }
 0x48b   :  { %v3132_v19 = vpop.trf.xlu0 }
 0x48c   :  { %13051 = vmatmul.mubr.msk.f32.gmra.mrb[92].mxu1 %vm29_vm0, %v3132_v19 }
 0x49f   :  { %v3163_v43 = vpop.trf.xlu1 }
 0x4a0   :  { %13053 = vmatprep.mubr.msk.f32.mxu1 %vm29_vm0, %v3163_v43 }
 0x4a3   :  { %v3164_v24 = vpop.trf.xlu1 }
 0x4a4   :  { %13054 = vmatmul.mubr.msk.f32.gmra.mrb[94].mxu1 %vm29_vm0, %v3164_v24  ;;  %vm9342_vm0 = vcmask 118784  }
 0x51b   :  { %v14818_v44 = vpop.f32.mrb[88].mxu1 }
 0x51c   :  { %3310 = vst.msk [vmem:[#allocation2 + $0x8] sm:$0xff] %vm3308_vm2, %v14818_v44  ;;  %v3318_v2 = vmul.f32 %v14818_v44, %v14818_v44  ;;  %v14824_v36 = vpop.f32.mrb[89].mxu1 }
 0x51d   :  { %3309 = vst.msk [vmem:[#allocation2] sm:$0xff] %vm3308_vm2, %v14824_v36  ;;  %v3317_v39 = vmul.f32 %v14824_v36, %v14824_v36 }
 0x51e   :  { %3322 = vst.msk [vmem:[#allocation2 + $0x88] sm:$0xff] %vm3308_vm2, %v3318_v2 }
 0x51f   :  { %3321 = vst.msk [vmem:[#allocation2 + $0x80] sm:$0xff] %vm3308_vm2, %v3317_v39 }
 0x523   :  { %v3342_v1 = vld [vmem:[#allocation2 + $0x8] sm:$0xff] }
 0x524   :  { %v3341_v4 = vld [vmem:[#allocation2] sm:$0xff] }
 0x525   :  { %3369 = vxpose.xlu0.b32.start [1/2] (short) (narrow) %v3341_v4, 48  ;;  %v3350_v56 = vld [vmem:[#allocation2 + $0x88] sm:$0xff] }
 0x526   :  { %v3349_v53 = vld [vmem:[#allocation2 + $0x80] sm:$0xff] }
 0x529   :  { %3370 = vxpose.xlu0.b32.end [2/2] (short) (narrow) %v3342_v1, 48 }
 0x547   :  { %v14838_v11 = vpop.f32.mrb[90].mxu1 }
 0x548   :  { %3312 = vst.msk [vmem:[#allocation2 + $0x28] sm:$0xff] %vm3308_vm2, %v14838_v11  ;;  %v3320_v22 = vmul.f32 %v14838_v11, %v14838_v11  ;;  %v14844_v15 = vpop.f32.mrb[91].mxu1 }
 0x549   :  { %3311 = vst.msk [vmem:[#allocation2 + $0x20] sm:$0xff] %vm3308_vm2, %v14844_v15  ;;  %v3319_v33 = vmul.f32 %v14844_v15, %v14844_v15 }
 0x54a   :  { %3324 = vst.msk [vmem:[#allocation2 + $0xa8] sm:$0xff] %vm3308_vm2, %v3320_v22 }
 0x54b   :  { %3323 = vst.msk [vmem:[#allocation2 + $0xa0] sm:$0xff] %vm3308_vm2, %v3319_v33 }
 0x54f   :  { %v3344_v13 = vld [vmem:[#allocation2 + $0x28] sm:$0xff] }
 0x550   :  { %v3343_v34 = vld [vmem:[#allocation2 + $0x20] sm:$0xff] }
 0x551   :  { %3401 = vxpose.xlu1.b32.start [1/2] (short) (narrow) %v3343_v34, 48  ;;  %v3352_v27 = vld [vmem:[#allocation2 + $0xa8] sm:$0xff] }
 0x552   :  { %v3351_v54 = vld [vmem:[#allocation2 + $0xa0] sm:$0xff] }
 0x555   :  { %3402 = vxpose.xlu1.b32.end [2/2] (short) (narrow) %v3344_v13, 48 }
 0x55f   :  { %v14852_v17 = vpop.f32.mrb[92].mxu1 }
 0x560   :  { %3314 = vst.msk [vmem:[#allocation2 + $0x48] sm:$0xff] %vm3308_vm2, %v14852_v17  ;;  %v3326_v48 = vmul.f32 %v14852_v17, %v14852_v17  ;;  %v3334_v21 = vmul.f32 %v14852_v17, %v14818_v44  ;;  %v14860_v30 = vpop.f32.mrb[93].mxu1 }
 0x561   :  { %3313 = vst.msk [vmem:[#allocation2 + $0x40] sm:$0xff] %vm3308_vm2, %v14860_v30  ;;  %v3325_v58 = vmul.f32 %v14860_v30, %v14860_v30  ;;  %v3333_v51 = vmul.f32 %v14860_v30, %v14824_v36 }
 0x562   :  { %3330 = vst.msk [vmem:[#allocation2 + $0xc8] sm:$0xff] %vm3308_vm2, %v3326_v48  ;;  %3338 = vst.msk [vmem:[#allocation2 + $0x108] sm:$0xff] %vm3308_vm2, %v3334_v21 }
 0x563   :  { %3329 = vst.msk [vmem:[#allocation2 + $0xc0] sm:$0xff] %vm3308_vm2, %v3325_v58  ;;  %3337 = vst.msk [vmem:[#allocation2 + $0x100] sm:$0xff] %vm3308_vm2, %v3333_v51 }
 0x567   :  { %v3346_v61 = vld [vmem:[#allocation2 + $0x48] sm:$0xff] }
 0x568   :  { %v3345_v20 = vld [vmem:[#allocation2 + $0x40] sm:$0xff] }
 0x569   :  { %3433 = vxpose.xlu0.b32.start [1/2] (short) (narrow) %v3345_v20, 48  ;;  %v3354_v23 = vld [vmem:[#allocation2 + $0xc8] sm:$0xff] }
 0x56a   :  { %v3353_v63 = vld [vmem:[#allocation2 + $0xc0] sm:$0xff]  ;;  %v3358_v26 = vld [vmem:[#allocation2 + $0x108] sm:$0xff] }
 0x56b   :  { %v3357_v14 = vld [vmem:[#allocation2 + $0x100] sm:$0xff] }
 0x56d   :  { %3434 = vxpose.xlu0.b32.end [2/2] (short) (narrow) %v3346_v61, 48 }
 0x577   :  { %v14872_v62 = vpop.f32.mrb[94].mxu1 }
 0x578   :  { %3316 = vst.msk [vmem:[#allocation2 + $0x68] sm:$0xff] %vm3308_vm2, %v14872_v62  ;;  %v3328_v40 = vmul.f32 %v14872_v62, %v14872_v62  ;;  %v3336_v41 = vmul.f32 %v14872_v62, %v14838_v11  ;;  %v14880_v42 = vpop.f32.mrb[95].mxu1 }
 0x579   :  { %3315 = vst.msk [vmem:[#allocation2 + $0x60] sm:$0xff] %vm3308_vm2, %v14880_v42  ;;  %v3327_v45 = vmul.f32 %v14880_v42, %v14880_v42  ;;  %v3335_v52 = vmul.f32 %v14880_v42, %v14844_v15 }
 0x57a   :  { %3332 = vst.msk [vmem:[#allocation2 + $0xe8] sm:$0xff] %vm3308_vm2, %v3328_v40  ;;  %3340 = vst.msk [vmem:[#allocation2 + $0x128] sm:$0xff] %vm3308_vm2, %v3336_v41 }
 0x57b   :  { %3331 = vst.msk [vmem:[#allocation2 + $0xe0] sm:$0xff] %vm3308_vm2, %v3327_v45  ;;  %3339 = vst.msk [vmem:[#allocation2 + $0x120] sm:$0xff] %vm3308_vm2, %v3335_v52 }
 0x57e   :  { %3497 = vxpose.xlu0.b32.start [1/2] (short) (narrow) %v3349_v53, 48 }
 0x57f   :  { %v3348_v60 = vld [vmem:[#allocation2 + $0x68] sm:$0xff] }
 0x580   :  { %v3347_v57 = vld [vmem:[#allocation2 + $0x60] sm:$0xff] }
 0x581   :  { %3465 = vxpose.xlu1.b32.start [1/2] (short) (narrow) %v3347_v57, 48  ;;  %v3356_v25 = vld [vmem:[#allocation2 + $0xe8] sm:$0xff] }
 0x582   :  { %3498 = vxpose.xlu0.b32.end [2/2] (short) (narrow) %v3350_v56, 48  ;;  %v3355_v3 = vld [vmem:[#allocation2 + $0xe0] sm:$0xff]  ;;  %v3360_v5 = vld [vmem:[#allocation2 + $0x128] sm:$0xff] }
 0x583   :  { %v3359_v35 = vld [vmem:[#allocation2 + $0x120] sm:$0xff] }
 0x585   :  { %3466 = vxpose.xlu1.b32.end [2/2] (short) (narrow) %v3348_v60, 48 }
 0x593   :  { %3561 = vxpose.xlu0.b32.start [1/2] (short) (narrow) %v3353_v63, 48 }
 0x596   :  { %3529 = vxpose.xlu1.b32.start [1/2] (short) (narrow) %v3351_v54, 48 }
 0x597   :  { %3562 = vxpose.xlu0.b32.end [2/2] (short) (narrow) %v3354_v23, 48 }
 0x59a   :  { %3530 = vxpose.xlu1.b32.end [2/2] (short) (narrow) %v3352_v27, 48 }
 0x5a5   :  { %v3385_v32 = vpop.trf.xlu0 }
 0x5a6   :  { %13060 = vmatprep.mubr.msk.f32.mxu1 %vm3689_vm3, %v3385_v32 }
 0x5a8   :  { %3625 = vxpose.xlu0.b32.start [1/2] (short) (narrow) %v3357_v14, 48 }
 0x5a9   :  { %v3386_v7 = vpop.trf.xlu0 }
 0x5aa   :  { %13061 = vmatmul.mubr.msk.f32.vlgmr.msra.gmra.mrb[96].mxu1 %vm3689_vm3, %v3386_v7 }
 0x5ab   :  { %3593 = vxpose.xlu1.b32.start [1/2] (short) (narrow) %v3355_v3, 48 }
 0x5ac   :  { %3626 = vxpose.xlu0.b32.end [2/2] (short) (narrow) %v3358_v26, 48 }
 0x5ad   :  { %v3387_v55 = vpop.trf.xlu0 }
 0x5ae   :  { %13063 = vmatprep.mubr.msk.f32.mxu1 %vm3689_vm3, %v3387_v55 }
 0x5af   :  { %3594 = vxpose.xlu1.b32.end [2/2] (short) (narrow) %v3356_v25, 48 }
 0x5b1   :  { %v3388_v31 = vpop.trf.xlu0 }
 0x5b2   :  { %13064 = vmatmul.mubr.msk.f32.gmra.mrb[98].mxu1 %vm3689_vm3, %v3388_v31 }
 0x5b5   :  { %v3389_v46 = vpop.trf.xlu0 }
 0x5b6   :  { %13066 = vmatprep.mubr.msk.f32.mxu1 %vm3689_vm3, %v3389_v46 }
 0x5b9   :  { %v3390_v29 = vpop.trf.xlu0 }
 0x5ba   :  { %13067 = vmatmul.mubr.msk.f32.gmra.mrb[100].mxu1 %vm3689_vm3, %v3390_v29 }
 0x5c0   :  { %3657 = vxpose.xlu1.b32.start [1/2] (short) (narrow) %v3359_v35, 48 }
 0x5c4   :  { %3658 = vxpose.xlu1.b32.end [2/2] (short) (narrow) %v3360_v5, 48 }
 0x5d1   :  { %v3417_v28 = vpop.trf.xlu1 }
 0x5d2   :  { %13069 = vmatprep.mubr.msk.f32.mxu1 %vm3689_vm3, %v3417_v28 }
 0x5d5   :  { %v3418_v37 = vpop.trf.xlu1 }
 0x5d6   :  { %13070 = vmatmul.mubr.msk.f32.gmra.mrb[102].mxu1 %vm3689_vm3, %v3418_v37 }
 0x5d9   :  { %v3419_v10 = vpop.trf.xlu1 }
 0x5da   :  { %13072 = vmatprep.mubr.msk.f32.mxu1 %vm3689_vm3, %v3419_v10 }
 0x5dd   :  { %v3420_v38 = vpop.trf.xlu1 }
 0x5de   :  { %13073 = vmatmul.mubr.msk.f32.gmra.mrb[104].mxu1 %vm3689_vm3, %v3420_v38 }
 0x5e1   :  { %v3421_v47 = vpop.trf.xlu1 }
 0x5e2   :  { %13075 = vmatprep.mubr.msk.f32.mxu1 %vm3689_vm3, %v3421_v47  ;;  %v13810_v47 = vpack.c.bf16 %v3364_v8, %v3363_v50 }
 0x5e4   :  { %13811 = vmatprep.subr.bf16.mxu0 %v13810_v47 }
 0x5e5   :  { %v3422_v16 = vpop.trf.xlu1  ;;  %13813 = vmatpush3.bf16.msra.mxu0 %v13810_v47 }
 0x5e6   :  { %13076 = vmatmul.mubr.msk.f32.gmra.mrb[106].mxu1 %vm3689_vm3, %v3422_v16 }
 0x5e9   :  { %v3449_v12 = vpop.trf.xlu0 }
 0x5ea   :  { %13078 = vmatprep.mubr.msk.f32.mxu1 %vm3689_vm3, %v3449_v12 }
 0x5ed   :  { %v3450_v19 = vpop.trf.xlu0 }
 0x5ee   :  { %13079 = vmatmul.mubr.msk.f32.gmra.mrb[108].mxu1 %vm3689_vm3, %v3450_v19 }
 0x5f1   :  { %v3451_v43 = vpop.trf.xlu0 }
 0x5f2   :  { %13081 = vmatprep.mubr.msk.f32.mxu1 %vm3689_vm3, %v3451_v43 }
 0x5f5   :  { %v3452_v24 = vpop.trf.xlu0 }
 0x5f6   :  { %13082 = vmatmul.mubr.msk.f32.gmra.mrb[110].mxu1 %vm3689_vm3, %v3452_v24 }
 0x5f9   :  { %v3453_v2 = vpop.trf.xlu0 }
 0x5fa   :  { %13084 = vmatprep.mubr.msk.f32.mxu1 %vm3689_vm3, %v3453_v2 }
 0x5fd   :  { %v3454_v39 = vpop.trf.xlu0 }
 0x5fe   :  { %13085 = vmatmul.mubr.msk.f32.gmra.mrb[112].mxu1 %vm3689_vm3, %v3454_v39 }
 0x601   :  { %v3481_v4 = vpop.trf.xlu1  ;;  %v3513_v1 = vpop.trf.xlu0 }
 0x602   :  { %13087 = vmatprep.mubr.msk.f32.mxu1 %vm3689_vm3, %v3481_v4 }
 0x605   :  { %v3482_v0 = vpop.trf.xlu1  ;;  %v3514_v6 = vpop.trf.xlu0 }
 0x606   :  { %13088 = vmatmul.mubr.msk.f32.gmra.mrb[114].mxu1 %vm3689_vm3, %v3482_v0 }
 0x609   :  { %v3483_v9 = vpop.trf.xlu1  ;;  %v3515_v22 = vpop.trf.xlu0 }
 0x60a   :  { %13090 = vmatprep.mubr.msk.f32.mxu1 %vm3689_vm3, %v3483_v9 }
 0x60d   :  { %v3484_v33 = vpop.trf.xlu1  ;;  %v3516_v34 = vpop.trf.xlu0 }
 0x60e   :  { %13091 = vmatmul.mubr.msk.f32.gmra.mrb[116].mxu1 %vm3689_vm3, %v3484_v33 }
 0x611   :  { %v3485_v13 = vpop.trf.xlu1  ;;  %v3517_v48 = vpop.trf.xlu0 }
 0x612   :  { %13093 = vmatprep.mubr.msk.f32.mxu1 %vm3689_vm3, %v3485_v13  ;;  %v3366_v13 = vld [vmem:[%s15800_s1 + $0x138] sm:$0xff] }
 0x615   :  { %v3486_v21 = vpop.trf.xlu1  ;;  %v3518_v58 = vpop.trf.xlu0 }
 0x616   :  { %13094 = vmatmul.mubr.msk.f32.gmra.mrb[118].mxu1 %vm3689_vm3, %v3486_v21 }
 0x617   :  { %13096 = vmatprep.mubr.msk.f32.mxu1 %vm3689_vm3, %v3513_v1 }
 0x619   :  { %v3545_v51 = vpop.trf.xlu1  ;;  %v3577_v20 = vpop.trf.xlu0 }
 0x61a   :  { %13097 = vmatmul.mubr.msk.f32.gmra.mrb[120].mxu1 %vm3689_vm3, %v3514_v6 }
 0x61b   :  { %13099 = vmatprep.mubr.msk.f32.mxu1 %vm3689_vm3, %v3515_v22 }
 0x61d   :  { %v3546_v61 = vpop.trf.xlu1  ;;  %v3578_v40 = vpop.trf.xlu0 }
 0x61e   :  { %13100 = vmatmul.mubr.msk.f32.gmra.mrb[122].mxu1 %vm3689_vm3, %v3516_v34  ;;  %v3365_v34 = vld [vmem:[%s15800_s1 + $0x130] sm:$0xff] }
 0x61f   :  { %13102 = vmatprep.mubr.msk.f32.mxu1 %vm3689_vm3, %v3517_v48  ;;  %v13814_v48 = vpack.c.bf16 %v3366_v13, %v3365_v34 }
 0x621   :  { %v3547_v41 = vpop.trf.xlu1  ;;  %v3579_v45 = vpop.trf.xlu0  ;;  %13815 = vmatprep.subr.bf16.mxu0 %v13814_v48 }
 0x622   :  { %13103 = vmatmul.mubr.msk.f32.gmra.mrb[124].mxu1 %vm3689_vm3, %v3518_v58  ;;  %13817 = vmatpush3.bf16.msra.mxu0 %v13814_v48 }
 0x623   :  { %13105 = vmatprep.mubr.msk.f32.mxu1 %vm3689_vm3, %v3545_v51 }
 0x625   :  { %v3548_v52 = vpop.trf.xlu1  ;;  %v3580_v53 = vpop.trf.xlu0 }
 0x626   :  { %13106 = vmatmul.mubr.msk.f32.gmra.mrb[126].mxu1 %vm3689_vm3, %v3546_v61 }
 0x627   :  { %13108 = vmatprep.mubr.msk.f32.mxu1 %vm3689_vm3, %v3547_v41 }
 0x629   :  { %v3549_v57 = vpop.trf.xlu1  ;;  %v3581_v56 = vpop.trf.xlu0 }
 0x62a   :  { %13109 = vmatmul.mubr.msk.f32.gmra.mrb[128].mxu1 %vm3689_vm3, %v3548_v52 }
 0x62b   :  { %13111 = vmatprep.mubr.msk.f32.mxu1 %vm3689_vm3, %v3549_v57 }
 0x62d   :  { %v3550_v60 = vpop.trf.xlu1  ;;  %v3582_v63 = vpop.trf.xlu0 }
 0x62e   :  { %13112 = vmatmul.mubr.msk.f32.gmra.mrb[130].mxu1 %vm3689_vm3, %v3550_v60 }
 0x62f   :  { %13114 = vmatprep.mubr.msk.f32.mxu1 %vm3689_vm3, %v3577_v20 }
 0x631   :  { %v3609_v54 = vpop.trf.xlu1  ;;  %v3641_v23 = vpop.trf.xlu0 }
 0x632   :  { %13115 = vmatmul.mubr.msk.f32.gmra.mrb[132].mxu1 %vm3689_vm3, %v3578_v40 }
 0x633   :  { %13117 = vmatprep.mubr.msk.f32.mxu1 %vm3689_vm3, %v3579_v45 }
 0x635   :  { %v3610_v27 = vpop.trf.xlu1  ;;  %v3642_v32 = vpop.trf.xlu0 }
 0x636   :  { %13118 = vmatmul.mubr.msk.f32.gmra.mrb[134].mxu1 %vm3689_vm3, %v3580_v53 }
 0x637   :  { %13120 = vmatprep.mubr.msk.f32.mxu1 %vm3689_vm3, %v3581_v56 }
 0x639   :  { %v3611_v14 = vpop.trf.xlu1  ;;  %v3643_v3 = vpop.trf.xlu0 }
 0x63a   :  { %13121 = vmatmul.mubr.msk.f32.gmra.mrb[136].mxu1 %vm3689_vm3, %v3582_v63 }
 0x63b   :  { %13123 = vmatprep.mubr.msk.f32.mxu1 %vm3689_vm3, %v3609_v54 }
 0x63d   :  { %v3612_v7 = vpop.trf.xlu1  ;;  %v3644_v55 = vpop.trf.xlu0 }
 0x63e   :  { %13124 = vmatmul.mubr.msk.f32.gmra.mrb[138].mxu1 %vm3689_vm3, %v3610_v27 }
 0x63f   :  { %13126 = vmatprep.mubr.msk.f32.mxu1 %vm3689_vm3, %v3611_v14 }
 0x641   :  { %v3613_v26 = vpop.trf.xlu1  ;;  %v3645_v31 = vpop.trf.xlu0 }
 0x642   :  { %13127 = vmatmul.mubr.msk.f32.gmra.mrb[140].mxu1 %vm3689_vm3, %v3612_v7 }
 0x643   :  { %13129 = vmatprep.mubr.msk.f32.mxu1 %vm3689_vm3, %v3613_v26 }
 0x645   :  { %v3614_v25 = vpop.trf.xlu1  ;;  %v3646_v35 = vpop.trf.xlu0 }
 0x646   :  { %13130 = vmatmul.mubr.msk.f32.gmra.mrb[142].mxu1 %vm3689_vm3, %v3614_v25 }
 0x647   :  { %13132 = vmatprep.mubr.msk.f32.mxu1 %vm3689_vm3, %v3641_v23 }
 0x649   :  { %v3673_v46 = vpop.trf.xlu1 }
 0x64a   :  { %13133 = vmatmul.mubr.msk.f32.gmra.mrb[144].mxu1 %vm3689_vm3, %v3642_v32 }
 0x64b   :  { %13135 = vmatprep.mubr.msk.f32.mxu1 %vm3689_vm3, %v3643_v3 }
 0x64d   :  { %v3674_v29 = vpop.trf.xlu1 }
 0x64e   :  { %13136 = vmatmul.mubr.msk.f32.gmra.mrb[146].mxu1 %vm3689_vm3, %v3644_v55 }
 0x64f   :  { %13138 = vmatprep.mubr.msk.f32.mxu1 %vm3689_vm3, %v3645_v31 }
 0x651   :  { %v3675_v5 = vpop.trf.xlu1 }
 0x652   :  { %13139 = vmatmul.mubr.msk.f32.gmra.mrb[148].mxu1 %vm3689_vm3, %v3646_v35 }
 0x653   :  { %13141 = vmatprep.mubr.msk.f32.mxu1 %vm3689_vm3, %v3673_v46 }
 0x655   :  { %v3676_v28 = vpop.trf.xlu1 }
 0x656   :  { %13142 = vmatmul.mubr.msk.f32.gmra.mrb[150].mxu1 %vm3689_vm3, %v3674_v29 }
 0x657   :  { %13144 = vmatprep.mubr.msk.f32.mxu1 %vm3689_vm3, %v3675_v5 }
 0x659   :  { %v3677_v37 = vpop.trf.xlu1 }
 0x65a   :  { %13145 = vmatmul.mubr.msk.f32.gmra.mrb[152].mxu1 %vm3689_vm3, %v3676_v28 }
 0x65b   :  { %13147 = vmatprep.mubr.msk.f32.mxu1 %vm3689_vm3, %v3677_v37 }
 0x65d   :  { %v3678_v10 = vpop.trf.xlu1 }
 0x65e   :  { %13148 = vmatmul.mubr.msk.f32.gmra.mrb[154].mxu1 %vm3689_vm3, %v3678_v10 }
 0x67d   :  { %v13062_v38 = vpop.f32.mrb[96].mxu1 }
 0x67e   :  { %v3936_v49 = vpop.f32.mrb[97].mxu1 }
 0x67f   :  { %4235 = vxpose.xlu0.b32.start [1/6] (short) (narrow) %v3936_v49, 16  ;;  %v4924_v49 = vld [vmem:[%s15800_s1 + $0x148] sm:$0xff] }
 0x683   :  { %4236 = vxpose.xlu0.b32.cont [2/6] (short) (narrow) %v13062_v38, 16  ;;  %v4923_v38 = vld [vmem:[%s15800_s1 + $0x140] sm:$0xff] }
 0x684   :  { %v13818_v8 = vpack.c.bf16 %v4924_v49, %v4923_v38 }
 0x685   :  { %v13065_v16 = vpop.f32.mrb[98].mxu1 }
 0x686   :  { %v3946_v12 = vpop.f32.mrb[99].mxu1  ;;  %13819 = vmatprep.subr.bf16.mxu0 %v13818_v8 }
 0x687   :  { %4237 = vxpose.xlu0.b32.cont [3/6] (short) (narrow) %v3946_v12, 16 }
 0x68b   :  { %4238 = vxpose.xlu0.b32.cont [4/6] (short) (narrow) %v13065_v16, 16 }
 0x68d   :  { %v13068_v19 = vpop.f32.mrb[100].mxu1 }
 0x68e   :  { %v3956_v43 = vpop.f32.mrb[101].mxu1 }
 0x68f   :  { %4239 = vxpose.xlu0.b32.cont [5/6] (short) (narrow) %v3956_v43, 16 }
 0x693   :  { %4240 = vxpose.xlu0.b32.end [6/6] (short) (narrow) %v13068_v19, 16 }
 0x6a9   :  { %v13071_v24 = vpop.f32.mrb[102].mxu1 }
 0x6aa   :  { %v3966_v2 = vpop.f32.mrb[103].mxu1 }
 0x6ab   :  { %4267 = vxpose.xlu1.b32.start [1/6] (short) (narrow) %v3966_v2, 16 }
 0x6af   :  { %4268 = vxpose.xlu1.b32.cont [2/6] (short) (narrow) %v13071_v24, 16 }
 0x6b1   :  { %v13074_v39 = vpop.f32.mrb[104].mxu1 }
 0x6b2   :  { %v3976_v4 = vpop.f32.mrb[105].mxu1 }
 0x6b3   :  { %4269 = vxpose.xlu1.b32.cont [3/6] (short) (narrow) %v3976_v4, 16 }
 0x6b7   :  { %4270 = vxpose.xlu1.b32.cont [4/6] (short) (narrow) %v13074_v39, 16 }
 0x6b9   :  { %v13077_v1 = vpop.f32.mrb[106].mxu1 }
 0x6ba   :  { %v3986_v0 = vpop.f32.mrb[107].mxu1 }
 0x6bb   :  { %4271 = vxpose.xlu1.b32.cont [5/6] (short) (narrow) %v3986_v0, 16 }
 0x6bf   :  { %4272 = vxpose.xlu1.b32.end [6/6] (short) (narrow) %v13077_v1, 16 }
 0x6c1   :  { %v13080_v6 = vpop.f32.mrb[108].mxu1 }
 0x6c2   :  { %v3996_v9 = vpop.f32.mrb[109].mxu1 }
 0x6c3   :  { %4299 = vxpose.xlu0.b32.start [1/6] (short) (narrow) %v3996_v9, 16 }
 0x6c7   :  { %4300 = vxpose.xlu0.b32.cont [2/6] (short) (narrow) %v13080_v6, 16 }
 0x6c9   :  { %v13083_v22 = vpop.f32.mrb[110].mxu1 }
 0x6ca   :  { %v4006_v33 = vpop.f32.mrb[111].mxu1 }
 0x6cb   :  { %4301 = vxpose.xlu0.b32.cont [3/6] (short) (narrow) %v4006_v33, 16 }
 0x6cf   :  { %4302 = vxpose.xlu0.b32.cont [4/6] (short) (narrow) %v13083_v22, 16 }
 0x6d1   :  { %v13086_v21 = vpop.f32.mrb[112].mxu1 }
 0x6d2   :  { %v4016_v58 = vpop.f32.mrb[113].mxu1 }
 0x6d3   :  { %4303 = vxpose.xlu0.b32.cont [5/6] (short) (narrow) %v4016_v58, 16 }
 0x6d7   :  { %4304 = vxpose.xlu0.b32.end [6/6] (short) (narrow) %v13086_v21, 16 }
 0x6d9   :  { %v13089_v51 = vpop.f32.mrb[114].mxu1 }
 0x6da   :  { %v4026_v20 = vpop.f32.mrb[115].mxu1 }
 0x6db   :  { %4331 = vxpose.xlu1.b32.start [1/6] (short) (narrow) %v4026_v20, 16 }
 0x6df   :  { %4332 = vxpose.xlu1.b32.cont [2/6] (short) (narrow) %v13089_v51, 16 }
 0x6e1   :  { %v13092_v61 = vpop.f32.mrb[116].mxu1 }
 0x6e2   :  { %v4036_v40 = vpop.f32.mrb[117].mxu1 }
 0x6e3   :  { %4333 = vxpose.xlu1.b32.cont [3/6] (short) (narrow) %v4036_v40, 16 }
 0x6e7   :  { %4334 = vxpose.xlu1.b32.cont [4/6] (short) (narrow) %v13092_v61, 16 }
 0x6e9   :  { %v13095_v41 = vpop.f32.mrb[118].mxu1 }
 0x6ea   :  { %v4046_v45 = vpop.f32.mrb[119].mxu1 }
 0x6eb   :  { %4335 = vxpose.xlu1.b32.cont [5/6] (short) (narrow) %v4046_v45, 16 }
 0x6ed   :  { %v13098_v52 = vpop.f32.mrb[120].mxu1 }
 0x6ee   :  { %v4056_v53 = vpop.f32.mrb[121].mxu1 }
 0x6ef   :  { %4336 = vxpose.xlu1.b32.end [6/6] (short) (narrow) %v13095_v41, 16  ;;  %4363 = vxpose.xlu0.b32.start [1/6] (short) (narrow) %v4056_v53, 16 }
 0x6f1   :  { %v13101_v57 = vpop.f32.mrb[122].mxu1 }
 0x6f2   :  { %v4066_v56 = vpop.f32.mrb[123].mxu1 }
 0x6f3   :  { %4364 = vxpose.xlu0.b32.cont [2/6] (short) (narrow) %v13098_v52, 16 }
 0x6f5   :  { %v13104_v60 = vpop.f32.mrb[124].mxu1 }
 0x6f6   :  { %v4076_v63 = vpop.f32.mrb[125].mxu1 }
 0x6f7   :  { %4365 = vxpose.xlu0.b32.cont [3/6] (short) (narrow) %v4066_v56, 16 }
 0x6f9   :  { %v13107_v54 = vpop.f32.mrb[126].mxu1 }
 0x6fa   :  { %v4086_v23 = vpop.f32.mrb[127].mxu1 }
 0x6fb   :  { %4366 = vxpose.xlu0.b32.cont [4/6] (short) (narrow) %v13101_v57, 16  ;;  %4395 = vxpose.xlu1.b32.start [1/6] (short) (narrow) %v4086_v23, 16 }
 0x6fd   :  { %v13110_v27 = vpop.f32.mrb[128].mxu1 }
 0x6fe   :  { %v4096_v32 = vpop.f32.mrb[129].mxu1 }
 0x6ff   :  { %4367 = vxpose.xlu0.b32.cont [5/6] (short) (narrow) %v4076_v63, 16  ;;  %4396 = vxpose.xlu1.b32.cont [2/6] (short) (narrow) %v13107_v54, 16  ;;  %v4251_v14 = vpop.trf.xlu0 }
 0x700   :  { %13162 = vmatprep.mubr.msk.f32.mxu0 %vm3308_vm2, %v4251_v14 }
 0x701   :  { %v13113_v7 = vpop.f32.mrb[130].mxu1 }
 0x702   :  { %v4106_v3 = vpop.f32.mrb[131].mxu1 }
 0x703   :  { %4368 = vxpose.xlu0.b32.end [6/6] (short) (narrow) %v13104_v60, 16  ;;  %4397 = vxpose.xlu1.b32.cont [3/6] (short) (narrow) %v4096_v32, 16  ;;  %v4252_v26 = vpop.trf.xlu0 }
 0x704   :  { %13163 = vmatmul.mubr.msk.f32.vlgmr.msra.gmra.mrb[120].mxu0 %vm3308_vm2, %v4252_v26 }
 0x705   :  { %v13116_v55 = vpop.f32.mrb[132].mxu1  ;;  %13821 = vmatpush3.bf16.msra.mxu0 %v13818_v8 }
 0x706   :  { %v4116_v25 = vpop.f32.mrb[133].mxu1 }
 0x707   :  { %4398 = vxpose.xlu1.b32.cont [4/6] (short) (narrow) %v13110_v27, 16  ;;  %4427 = vxpose.xlu0.b32.start [1/6] (short) (narrow) %v4116_v25, 16 }
 0x709   :  { %v13119_v31 = vpop.f32.mrb[134].mxu1 }
 0x70a   :  { %v4126_v46 = vpop.f32.mrb[135].mxu1 }
 0x70b   :  { %4399 = vxpose.xlu1.b32.cont [5/6] (short) (narrow) %v4106_v3, 16  ;;  %4428 = vxpose.xlu0.b32.cont [2/6] (short) (narrow) %v13116_v55, 16 }
 0x70d   :  { %v13122_v29 = vpop.f32.mrb[136].mxu1 }
 0x70e   :  { %v4136_v35 = vpop.f32.mrb[137].mxu1 }
 0x70f   :  { %4400 = vxpose.xlu1.b32.end [6/6] (short) (narrow) %v13113_v7, 16  ;;  %4429 = vxpose.xlu0.b32.cont [3/6] (short) (narrow) %v4126_v46, 16 }
 0x711   :  { %v13125_v5 = vpop.f32.mrb[138].mxu1 }
 0x712   :  { %v4146_v28 = vpop.f32.mrb[139].mxu1 }
 0x713   :  { %4430 = vxpose.xlu0.b32.cont [4/6] (short) (narrow) %v13119_v31, 16  ;;  %4459 = vxpose.xlu1.b32.start [1/6] (short) (narrow) %v4146_v28, 16 }
 0x715   :  { %v13128_v37 = vpop.f32.mrb[140].mxu1 }
 0x716   :  { %v4156_v10 = vpop.f32.mrb[141].mxu1 }
 0x717   :  { %4431 = vxpose.xlu0.b32.cont [5/6] (short) (narrow) %v4136_v35, 16  ;;  %4460 = vxpose.xlu1.b32.cont [2/6] (short) (narrow) %v13125_v5, 16 }
 0x719   :  { %v13131_v50 = vpop.f32.mrb[142].mxu1 }
 0x71a   :  { %v4166_v47 = vpop.f32.mrb[143].mxu1 }
 0x71b   :  { %4432 = vxpose.xlu0.b32.end [6/6] (short) (narrow) %v13122_v29, 16  ;;  %4461 = vxpose.xlu1.b32.cont [3/6] (short) (narrow) %v4156_v10, 16 }
 0x71d   :  { %v13134_v16 = vpop.f32.mrb[144].mxu1 }
 0x71e   :  { %v4176_v12 = vpop.f32.mrb[145].mxu1 }
 0x71f   :  { %4462 = vxpose.xlu1.b32.cont [4/6] (short) (narrow) %v13128_v37, 16  ;;  %4491 = vxpose.xlu0.b32.start [1/6] (short) (narrow) %v4176_v12, 16 }
 0x721   :  { %v13137_v19 = vpop.f32.mrb[146].mxu1 }
 0x722   :  { %v4186_v43 = vpop.f32.mrb[147].mxu1 }
 0x723   :  { %4463 = vxpose.xlu1.b32.cont [5/6] (short) (narrow) %v4166_v47, 16  ;;  %4492 = vxpose.xlu0.b32.cont [2/6] (short) (narrow) %v13134_v16, 16 }
 0x725   :  { %v13140_v24 = vpop.f32.mrb[148].mxu1 }
 0x726   :  { %v4196_v2 = vpop.f32.mrb[149].mxu1 }
 0x727   :  { %4464 = vxpose.xlu1.b32.end [6/6] (short) (narrow) %v13131_v50, 16  ;;  %4493 = vxpose.xlu0.b32.cont [3/6] (short) (narrow) %v4186_v43, 16 }
 0x729   :  { %v13143_v39 = vpop.f32.mrb[150].mxu1 }
 0x72a   :  { %v4206_v4 = vpop.f32.mrb[151].mxu1 }
 0x72b   :  { %4494 = vxpose.xlu0.b32.cont [4/6] (short) (narrow) %v13137_v19, 16  ;;  %4523 = vxpose.xlu1.b32.start [1/6] (short) (narrow) %v4206_v4, 16  ;;  %v4283_v1 = vpop.trf.xlu1 }
 0x72c   :  { %13165 = vmatprep.mubr.msk.f32.mxu0 %vm3308_vm2, %v4283_v1 }
 0x72d   :  { %v13146_v0 = vpop.f32.mrb[152].mxu1 }
 0x72e   :  { %v4216_v6 = vpop.f32.mrb[153].mxu1 }
 0x72f   :  { %4495 = vxpose.xlu0.b32.cont [5/6] (short) (narrow) %v4196_v2, 16  ;;  %4524 = vxpose.xlu1.b32.cont [2/6] (short) (narrow) %v13143_v39, 16  ;;  %v4284_v9 = vpop.trf.xlu1 }
 0x730   :  { %13166 = vmatmul.mubr.msk.f32.gmra.mrb[122].mxu0 %vm3308_vm2, %v4284_v9 }
 0x731   :  { %v13149_v22 = vpop.f32.mrb[154].mxu1 }
 0x732   :  { %v4226_v33 = vpop.f32.mrb[155].mxu1 }
 0x733   :  { %4496 = vxpose.xlu0.b32.end [6/6] (short) (narrow) %v13140_v24, 16  ;;  %4525 = vxpose.xlu1.b32.cont [3/6] (short) (narrow) %v4216_v6, 16 }
 0x737   :  { %4925 = vxpose.xlu0.b32.start [1/2] (short) (narrow) %v14824_v36, 48  ;;  %4526 = vxpose.xlu1.b32.cont [4/6] (short) (narrow) %v13146_v0, 16 }
 0x73b   :  { %4926 = vxpose.xlu0.b32.end [2/2] (short) (narrow) %v14818_v44, 48  ;;  %4527 = vxpose.xlu1.b32.cont [5/6] (short) (narrow) %v4226_v33, 16 }
 0x73f   :  { %4528 = vxpose.xlu1.b32.end [6/6] (short) (narrow) %v13149_v22, 16 }
 0x743   :  { %4957 = vxpose.xlu1.b32.start [1/2] (short) (narrow) %v14844_v15, 48  ;;  %v4315_v34 = vpop.trf.xlu0 }
 0x744   :  { %13168 = vmatprep.mubr.msk.f32.mxu0 %vm3308_vm2, %v4315_v34 }
 0x747   :  { %4958 = vxpose.xlu1.b32.end [2/2] (short) (narrow) %v14838_v11, 48  ;;  %v4316_v13 = vpop.trf.xlu0 }
 0x748   :  { %13169 = vmatmul.mubr.msk.f32.gmra.mrb[124].mxu0 %vm3308_vm2, %v4316_v13 }
 0x74c   :  { %4989 = vxpose.xlu0.b32.start [1/2] (short) (narrow) %v14860_v30, 48 }
 0x750   :  { %4990 = vxpose.xlu0.b32.end [2/2] (short) (narrow) %v14852_v17, 48 }
 0x758   :  { %5021 = vxpose.xlu1.b32.start [1/2] (short) (narrow) %v14880_v42, 48 }
 0x75b   :  { %v4347_v36 = vpop.trf.xlu1 }
 0x75c   :  { %5022 = vxpose.xlu1.b32.end [2/2] (short) (narrow) %v14872_v62, 48  ;;  %13171 = vmatprep.mubr.msk.f32.mxu0 %vm3308_vm2, %v4347_v36 }
 0x75f   :  { %v4348_v44 = vpop.trf.xlu1 }
 0x760   :  { %13172 = vmatmul.mubr.msk.f32.gmra.mrb[126].mxu0 %vm3308_vm2, %v4348_v44 }
 0x76f   :  { %v4379_v15 = vpop.trf.xlu0 }
 0x770   :  { %13174 = vmatprep.mubr.msk.f32.mxu0 %vm3308_vm2, %v4379_v15 }
 0x773   :  { %v4380_v11 = vpop.trf.xlu0 }
 0x774   :  { %13175 = vmatmul.mubr.msk.f32.gmra.mrb[128].mxu0 %vm3308_vm2, %v4380_v11 }
 0x77b   :  { %v4411_v48 = vpop.trf.xlu1 }
 0x77c   :  { %13177 = vmatprep.mubr.msk.f32.mxu0 %vm3308_vm2, %v4411_v48 }
 0x77f   :  { %v4412_v17 = vpop.trf.xlu1 }
 0x780   :  { %13178 = vmatmul.mubr.msk.f32.gmra.mrb[130].mxu0 %vm3308_vm2, %v4412_v17 }
 0x787   :  { %v4443_v30 = vpop.trf.xlu0 }
 0x788   :  { %13180 = vmatprep.mubr.msk.f32.mxu0 %vm3308_vm2, %v4443_v30 }
 0x78b   :  { %v4444_v62 = vpop.trf.xlu0 }
 0x78c   :  { %13181 = vmatmul.mubr.msk.f32.gmra.mrb[132].mxu0 %vm3308_vm2, %v4444_v62 }
 0x793   :  { %v4475_v42 = vpop.trf.xlu1 }
 0x794   :  { %13183 = vmatprep.mubr.msk.f32.mxu0 %vm3308_vm2, %v4475_v42 }
 0x797   :  { %v4476_v21 = vpop.trf.xlu1 }
 0x798   :  { %13184 = vmatmul.mubr.msk.f32.gmra.mrb[134].mxu0 %vm3308_vm2, %v4476_v21 }
 0x79f   :  { %v4507_v58 = vpop.trf.xlu0 }
 0x7a0   :  { %13186 = vmatprep.mubr.msk.f32.mxu0 %vm3308_vm2, %v4507_v58 }
 0x7a3   :  { %v4508_v51 = vpop.trf.xlu0 }
 0x7a4   :  { %13187 = vmatmul.mubr.msk.f32.gmra.mrb[136].mxu0 %vm3308_vm2, %v4508_v51 }
 0x7ab   :  { %v4539_v20 = vpop.trf.xlu1 }
 0x7ac   :  { %13189 = vmatprep.mubr.msk.f32.mxu0 %vm3308_vm2, %v4539_v20 }
 0x7af   :  { %v4540_v61 = vpop.trf.xlu1 }
 0x7b0   :  { %13190 = vmatmul.mubr.msk.f32.gmra.mrb[138].mxu0 %vm3308_vm2, %v4540_v61 }
 0x7b7   :  { %v4941_v40 = vpop.trf.xlu0 }
 0x7b8   :  { %13196 = vmatprep.mubr.msk.f32.mxu0 %vm3689_vm3, %v4941_v40 }
 0x7bb   :  { %v4942_v41 = vpop.trf.xlu0 }
 0x7bc   :  { %13197 = vmatmul.mubr.msk.f32.vlgmr.msra.gmra.mrb[140].mxu0 %vm3689_vm3, %v4942_v41 }
 0x7bf   :  { %v4943_v45 = vpop.trf.xlu0 }
 0x7c0   :  { %13199 = vmatprep.mubr.msk.f32.mxu0 %vm3689_vm3, %v4943_v45 }
 0x7c3   :  { %v4973_v52 = vpop.trf.xlu1  ;;  %v4944_v53 = vpop.trf.xlu0 }
 0x7c4   :  { %13200 = vmatmul.mubr.msk.f32.gmra.mrb[142].mxu0 %vm3689_vm3, %v4944_v53 }
 0x7c7   :  { %v4974_v57 = vpop.trf.xlu1  ;;  %v4945_v56 = vpop.trf.xlu0 }
 0x7c8   :  { %13202 = vmatprep.mubr.msk.f32.mxu0 %vm3689_vm3, %v4945_v56 }
 0x7cb   :  { %v4975_v60 = vpop.trf.xlu1  ;;  %v4946_v63 = vpop.trf.xlu0 }
 0x7cc   :  { %13203 = vmatmul.mubr.msk.f32.gmra.mrb[144].mxu0 %vm3689_vm3, %v4946_v63 }
 0x7cd   :  { %13205 = vmatprep.mubr.msk.f32.mxu0 %vm3689_vm3, %v4973_v52 }
 0x7cf   :  { %v4976_v54 = vpop.trf.xlu1  ;;  %v5005_v23 = vpop.trf.xlu0 }
 0x7d0   :  { %13206 = vmatmul.mubr.msk.f32.gmra.mrb[146].mxu0 %vm3689_vm3, %v4974_v57 }
 0x7d1   :  { %13208 = vmatprep.mubr.msk.f32.mxu0 %vm3689_vm3, %v4975_v60 }
 0x7d3   :  { %v4977_v27 = vpop.trf.xlu1  ;;  %v5006_v32 = vpop.trf.xlu0 }
 0x7d4   :  { %13209 = vmatmul.mubr.msk.f32.gmra.mrb[148].mxu0 %vm3689_vm3, %v4976_v54 }
 0x7d5   :  { %13211 = vmatprep.mubr.msk.f32.mxu0 %vm3689_vm3, %v4977_v27 }
 0x7d7   :  { %v4978_v14 = vpop.trf.xlu1  ;;  %v5007_v7 = vpop.trf.xlu0 }
 0x7d8   :  { %13212 = vmatmul.mubr.msk.f32.gmra.mrb[150].mxu0 %vm3689_vm3, %v4978_v14  ;;  %v13164_v3 = vpop.f32.mrb[120].mxu0 }
 0x7d9   :  { %13214 = vmatprep.mubr.msk.f32.mxu0 %vm3689_vm3, %v5005_v23  ;;  %v4681_v26 = vpop.f32.mrb[121].mxu0  ;;  %v15028_v49 = vmul.f32 %v13164_v3, %v13164_v3 }
 0x7da   :  { %v15030_v50 = vmul.f32 %v4681_v26, %v4681_v26 }
 0x7db   :  { %v5008_v55 = vpop.trf.xlu0  ;;  %v5037_v25 = vpop.trf.xlu1 }
 0x7dc   :  { %13215 = vmatmul.mubr.msk.f32.gmra.mrb[152].mxu0 %vm3689_vm3, %v5006_v32 }
 0x7dd   :  { %13217 = vmatprep.mubr.msk.f32.mxu0 %vm3689_vm3, %v5007_v7 }
 0x7df   :  { %v5009_v31 = vpop.trf.xlu0  ;;  %v5038_v46 = vpop.trf.xlu1 }
 0x7e0   :  { %13218 = vmatmul.mubr.msk.f32.gmra.mrb[154].mxu0 %vm3689_vm3, %v5008_v55 }
 0x7e1   :  { %13220 = vmatprep.mubr.msk.f32.mxu0 %vm3689_vm3, %v5009_v31 }
 0x7e3   :  { %v5010_v29 = vpop.trf.xlu0  ;;  %v5039_v35 = vpop.trf.xlu1 }
 0x7e4   :  { %13221 = vmatmul.mubr.msk.f32.gmra.mrb[156].mxu0 %vm3689_vm3, %v5010_v29 }
 0x7e5   :  { %13223 = vmatprep.mubr.msk.f32.mxu0 %vm3689_vm3, %v5037_v25 }
 0x7e7   :  { %v5040_v5 = vpop.trf.xlu1 }
 0x7e8   :  { %13224 = vmatmul.mubr.msk.f32.gmra.mrb[158].mxu0 %vm3689_vm3, %v5038_v46 }
 0x7e9   :  { %13226 = vmatprep.mubr.msk.f32.mxu0 %vm3689_vm3, %v5039_v35 }
 0x7eb   :  { %v5041_v28 = vpop.trf.xlu1 }
 0x7ec   :  { %13227 = vmatmul.mubr.msk.f32.gmra.mrb[160].mxu0 %vm3689_vm3, %v5040_v5 }
 0x7ed   :  { %13229 = vmatprep.mubr.msk.f32.mxu0 %vm3689_vm3, %v5041_v28 }
 0x7ef   :  { %v5042_v37 = vpop.trf.xlu1 }
 0x7f0   :  { %13230 = vmatmul.mubr.msk.f32.gmra.mrb[162].mxu0 %vm3689_vm3, %v5042_v37  ;;  %vm9964_vm3 = vcmask 41984  }
 0x803   :  { %v13167_v10 = vpop.f32.mrb[122].mxu0 }
 0x804   :  { %v4691_v38 = vpop.f32.mrb[123].mxu0  ;;  %v4783_v11 = vmul.f32 %v13167_v10, %v13167_v10 }
 0x805   :  { %v4782_v17 = vmul.f32 %v4691_v38, %v4691_v38 }
 0x81b   :  { %v13170_v8 = vpop.f32.mrb[124].mxu0 }
 0x81c   :  { %v15032_v47 = vmul.f32 %v13170_v8, %v13170_v8  ;;  %v15034_v16 = vmul.f32 %v13170_v8, %v13164_v3  ;;  %v4701_v12 = vpop.f32.mrb[125].mxu0 }
 0x81d   :  { %v15036_v19 = vmul.f32 %v4701_v12, %v4701_v12  ;;  %v15038_v43 = vmul.f32 %v4701_v12, %v4681_v26 }
 0x81e   :  { %v4793_v24 = vadd.f32 %v15032_v47, %v15028_v49  ;;  %v4829_v1 = vmul.f32 2.0, %v15034_v16 }
 0x81f   :  { %v4792_v2 = vadd.f32 %v15036_v19, %v15030_v50  ;;  %v4828_v6 = vmul.f32 2.0, %v15038_v43 }
 0x820   :  { %v4797_v39 = vadd.f32 0.0001, %v4793_v24  ;;  %v4833_v34 = vadd.f32 0.0001, %v4829_v1 }
 0x821   :  { %v4796_v4 = vadd.f32 0.0001, %v4792_v2  ;;  %v4832_v36 = vadd.f32 0.0001, %v4828_v6 }
 0x822   :  { %14065 = vrcp.f32 %v4797_v39 }
 0x823   :  { %14067 = vrcp.f32 %v4796_v4 }
 0x82c   :  { %v14066_v0 = vpop.eup %14065 }
 0x82d   :  { %v14068_v9 = vpop.eup %14067  ;;  %v4861_v22 = vmul.f32 %v14066_v0, %v4797_v39 }
 0x82e   :  { %v4860_v33 = vmul.f32 %v14068_v9, %v4796_v4 }
 0x82f   :  { %v4865_v13 = vsub.f32 2.0, %v4861_v22 }
 0x830   :  { %v4864_v44 = vsub.f32 2.0, %v4860_v33 }
 0x831   :  { %v4869_v15 = vmul.f32 %v14066_v0, %v4865_v13 }
 0x832   :  { %v4868_v48 = vmul.f32 %v14068_v9, %v4864_v44 }
 0x833   :  { %v15046_v30 = vmul.f32 %v4869_v15, %v4833_v34  ;;  %v13173_v62 = vpop.f32.mrb[126].mxu0 }
 0x834   :  { %v15048_v42 = vmul.f32 %v4868_v48, %v4832_v36  ;;  %v4787_v21 = vmul.f32 %v13173_v62, %v13173_v62  ;;  %v15050_v58 = vmul.f32 %v13173_v62, %v13167_v10  ;;  %v4711_v51 = vpop.f32.mrb[127].mxu0 }
 0x835   :  { %v4786_v20 = vmul.f32 %v4711_v51, %v4711_v51  ;;  %v15052_v61 = vmul.f32 %v4711_v51, %v4691_v38 }
 0x836   :  { %v4795_v40 = vadd.f32 %v4787_v21, %v4783_v11  ;;  %v4831_v53 = vmul.f32 2.0, %v15050_v58 }
 0x837   :  { %v4794_v41 = vadd.f32 %v4786_v20, %v4782_v17  ;;  %v4830_v56 = vmul.f32 2.0, %v15052_v61 }
 0x838   :  { %v4799_v45 = vadd.f32 0.0001, %v4795_v40  ;;  %v4835_v23 = vadd.f32 0.0001, %v4831_v53  ;;  %v4917_v40 = vld [vmem:[%s15800_s1 + $0x150] sm:$0xff] }
 0x839   :  { %v4798_v52 = vadd.f32 0.0001, %v4794_v41  ;;  %v4834_v14 = vadd.f32 0.0001, %v4830_v56  ;;  %v4918_v41 = vld [vmem:[%s15800_s1 + $0x158] sm:$0xff] }
 0x83a   :  { %14069 = vrcp.f32 %v4799_v45 }
 0x83b   :  { %14071 = vrcp.f32 %v4798_v52 }
 0x844   :  { %v14070_v57 = vpop.eup %14069 }
 0x845   :  { %v14072_v60 = vpop.eup %14071  ;;  %v4863_v63 = vmul.f32 %v14070_v57, %v4799_v45 }
 0x846   :  { %v4862_v54 = vmul.f32 %v14072_v60, %v4798_v52 }
 0x847   :  { %v4867_v27 = vsub.f32 2.0, %v4863_v63  ;;  %v13176_v32 = vpop.f32.mrb[128].mxu0 }
 0x848   :  { %v4866_v7 = vsub.f32 2.0, %v4862_v54  ;;  %v4801_v3 = vsub.f32 %v13176_v32, %v15028_v49  ;;  %v4721_v26 = vpop.f32.mrb[129].mxu0  ;;  %v4921_v32 = vld [vmem:[%s15800_s1 + $0x170] sm:$0xff] }
 0x849   :  { %v4871_v55 = vmul.f32 %v14070_v57, %v4867_v27  ;;  %v4800_v25 = vsub.f32 %v4721_v26, %v15030_v50  ;;  %v4920_v27 = vld [vmem:[%s15800_s1 + $0x168] sm:$0xff]  ;;  %v4922_v26 = vld [vmem:[%s15800_s1 + $0x178] sm:$0xff] }
 0x84a   :  { %v4870_v31 = vmul.f32 %v14072_v60, %v4866_v7 }
 0x84b   :  { %v15058_v46 = vmul.f32 %v4871_v55, %v4835_v23  ;;  %v4919_v23 = vld [vmem:[%s15800_s1 + $0x160] sm:$0xff] }
 0x84c   :  { %v15060_v29 = vmul.f32 %v4870_v31, %v4834_v14  ;;  %v13830_v31 = vpack.c.bf16 %v4922_v26, %v4921_v32  ;;  %v5565_v26 = vld [vmem:[%s15800_s1 + $0x1a8] sm:$0x7] }
 0x853   :  { %v13179_v35 = vpop.f32.mrb[130].mxu0 }
 0x854   :  { %v4803_v5 = vsub.f32 %v13179_v35, %v4783_v11  ;;  %v4731_v28 = vpop.f32.mrb[131].mxu0 }
 0x855   :  { %v4802_v37 = vsub.f32 %v4731_v28, %v4782_v17 }
 0x85f   :  { %v13182_v10 = vpop.f32.mrb[132].mxu0 }
 0x860   :  { %v4805_v38 = vsub.f32 %v13182_v10, %v15032_v47  ;;  %v4741_v8 = vpop.f32.mrb[133].mxu0 }
 0x861   :  { %v4804_v12 = vsub.f32 %v4741_v8, %v15036_v19 }
 0x862   :  { %v4809_v49 = vadd.f32 %v4805_v38, %v4801_v3  ;;  %v13826_v3 = vpack.c.bf16 %v4920_v27, %v4919_v23  ;;  %v14113_v23 = vmov 0.0|0.0   ;;  %v5562_v27 = vld [vmem:[%s15800_s1 + $0x190] sm:$0xff] }
 0x863   :  { %v4808_v24 = vadd.f32 %v4804_v12, %v4800_v25  ;;  %13834 = vmatprep.subr.bf16.mxu1 %v14113_v23 }
 0x864   :  { %v4813_v2 = vadd.f32 0.0009, %v4809_v49 }
 0x865   :  { %v4812_v39 = vadd.f32 0.0009, %v4808_v24 }
 0x866   :  { %14073 = vrcp.f32 %v4813_v2 }
 0x867   :  { %14075 = vrcp.f32 %v4812_v39 }
 0x86b   :  { %v13185_v50 = vpop.f32.mrb[134].mxu0 }
 0x86c   :  { %v4807_v4 = vsub.f32 %v13185_v50, %v4787_v21  ;;  %v4751_v1 = vpop.f32.mrb[135].mxu0 }
 0x86d   :  { %v4806_v0 = vsub.f32 %v4751_v1, %v4786_v20 }
 0x86e   :  { %v4811_v6 = vadd.f32 %v4807_v4, %v4803_v5 }
 0x86f   :  { %v4810_v9 = vadd.f32 %v4806_v0, %v4802_v37 }
 0x870   :  { %v4815_v22 = vadd.f32 0.0009, %v4811_v6  ;;  %v14074_v33 = vpop.eup %14073 }
 0x871   :  { %v4814_v34 = vadd.f32 0.0009, %v4810_v9  ;;  %v14076_v13 = vpop.eup %14075  ;;  %v4841_v47 = vmul.f32 %v14074_v33, %v4813_v2 }
 0x872   :  { %14077 = vrcp.f32 %v4815_v22  ;;  %v4840_v19 = vmul.f32 %v14076_v13, %v4812_v39 }
 0x873   :  { %14079 = vrcp.f32 %v4814_v34  ;;  %v4845_v44 = vsub.f32 2.0, %v4841_v47 }
 0x874   :  { %v4844_v48 = vsub.f32 2.0, %v4840_v19 }
 0x875   :  { %v4849_v20 = vmul.f32 %v14074_v33, %v4845_v44 }
 0x876   :  { %v4848_v53 = vmul.f32 %v14076_v13, %v4844_v48 }
 0x877   :  { %v13188_v36 = vpop.f32.mrb[136].mxu0 }
 0x878   :  { %v4817_v15 = vsub.f32 %v13188_v36, %v15034_v16  ;;  %v4761_v11 = vpop.f32.mrb[137].mxu0  ;;  %v13822_v16 = vpack.c.bf16 %v4918_v41, %v4917_v40 }
 0x879   :  { %v4816_v17 = vsub.f32 %v4761_v11, %v15038_v43 }
 0x87a   :  { %v4821_v62 = vmul.f32 2.0, %v4817_v15  ;;  %13823 = vmatprep.subr.bf16.mxu0 %v13822_v16 }
 0x87b   :  { %v4820_v21 = vmul.f32 2.0, %v4816_v17  ;;  %13825 = vmatpush3.bf16.msra.mxu0 %v13822_v16 }
 0x87c   :  { %v4825_v51 = vadd.f32 0.0009, %v4821_v62  ;;  %v14078_v45 = vpop.eup %14077  ;;  %13827 = vmatprep.subr.bf16.mxu0 %v13826_v3 }
 0x87d   :  { %v4824_v52 = vadd.f32 0.0009, %v4820_v21  ;;  %v14080_v57 = vpop.eup %14079  ;;  %v4843_v43 = vmul.f32 %v14078_v45, %v4815_v22 }
 0x87e   :  { %v4853_v56 = vmul.f32 %v4849_v20, %v4825_v51  ;;  %v4842_v14 = vmul.f32 %v14080_v57, %v4814_v34 }
 0x87f   :  { %v4852_v60 = vmul.f32 %v4848_v53, %v4824_v52  ;;  %v4847_v28 = vsub.f32 2.0, %v4843_v43  ;;  %13829 = vmatpush3.bf16.msra.mxu0 %v13826_v3  ;;  %v5564_v3 = vld [vmem:[%s15800_s1 + $0x1a0] sm:$0xff] }
 0x880   :  { %v4877_v63 = vmul.f32 %v15046_v30, %v4853_v56  ;;  %v4897_v54 = vsel %vm3308_vm2, %v4853_v56, 0.0  ;;  %v4846_v38 = vsub.f32 2.0, %v4842_v14  ;;  %13831 = vmatprep.subr.bf16.mxu0 %v13830_v31 }
 0x881   :  { %v4876_v7 = vmul.f32 %v15048_v42, %v4852_v60  ;;  %v4896_v30 = vsel %vm3308_vm2, %v4852_v60, 0.0  ;;  %v4851_v2 = vmul.f32 %v14078_v45, %v4847_v28 }
 0x882   :  { %v4881_v55 = vsel %vm3308_vm2, %v4877_v63, 0.0  ;;  %v4898_v25 = vadd.f32 %v4897_v54, %v4896_v30  ;;  %v4850_v50 = vmul.f32 %v14080_v57, %v4846_v38 }
 0x883   :  { %v4880_v35 = vsel %vm3308_vm2, %v4876_v7, 0.0  ;;  %v13191_v5 = vpop.f32.mrb[138].mxu0  ;;  %13833 = vmatpush3.bf16.msra.mxu0 %v13830_v31 }
 0x884   :  { %v4819_v37 = vsub.f32 %v13191_v5, %v15050_v58  ;;  %v4771_v10 = vpop.f32.mrb[139].mxu0  ;;  %v4882_v42 = vadd.f32 %v4881_v55, %v4880_v35  ;;  %13842 = vmatprep.subr.bf16.mxu0 %v14113_v23  ;;  %v15134_v55 = vpack.c.bf16 %v5565_v26, %v5564_v3 }
 0x885   :  { %v4818_v8 = vsub.f32 %v4771_v10, %v15052_v61 }
 0x886   :  { %v4823_v12 = vmul.f32 2.0, %v4819_v37 }
 0x887   :  { %v4822_v49 = vmul.f32 2.0, %v4818_v8 }
 0x888   :  { %v4827_v24 = vadd.f32 0.0009, %v4823_v12 }
 0x889   :  { %v4826_v39 = vadd.f32 0.0009, %v4822_v49 }
 0x88a   :  { %v4855_v4 = vmul.f32 %v4851_v2, %v4827_v24 }
 0x88b   :  { %v4854_v1 = vmul.f32 %v4850_v50, %v4826_v39 }
 0x88c   :  { %v4879_v0 = vmul.f32 %v15058_v46, %v4855_v4  ;;  %v4901_v33 = vsel %vm3308_vm2, %v4855_v4, 0.0 }
 0x88d   :  { %v4878_v58 = vmul.f32 %v15060_v29, %v4854_v1  ;;  %v4899_v6 = vsel %vm3308_vm2, %v4854_v1, 0.0 }
 0x88e   :  { %v4900_v9 = vadd.f32 %v4899_v6, %v4898_v25  ;;  %v4885_v19 = vsel %vm3308_vm2, %v4879_v0, 0.0  ;;  %v14115_v25 = vmov 0.0  }
 0x88f   :  { %v13198_v22 = vpop.f32.mrb[140].mxu0  ;;  %v4883_v61 = vsel %vm3308_vm2, %v4878_v58, 0.0  ;;  %13258 = vmatprep.mubr.msk.f32.mxu1 %vm14114_vm6, %v14115_v25 }
 0x890   :  { %v5191_v34 = vpop.f32.mrb[141].mxu0  ;;  %v4884_v13 = vadd.f32 %v4883_v61, %v4882_v42  ;;  %v4902_v47 = vadd.f32 %v4901_v33, %v4900_v9 }
 0x891   :  { %5310 = vxpose.xlu0.b32.start [1/6] (short) (narrow) %v5191_v34, 8 }
 0x892   :  { %v4886_v36 = vadd.f32 %v4885_v19, %v4884_v13 }
 0x895   :  { %5311 = vxpose.xlu0.b32.cont [2/6] (short) (narrow) %v13198_v22, 8 }
 0x897   :  { %v13201_v44 = vpop.f32.mrb[142].mxu0 }
 0x898   :  { %v5201_v46 = vpop.f32.mrb[143].mxu0 }
 0x899   :  { %5312 = vxpose.xlu0.b32.cont [3/6] (short) (narrow) %v5201_v46, 8 }
 0x89d   :  { %5313 = vxpose.xlu0.b32.cont [4/6] (short) (narrow) %v13201_v44, 8 }
 0x89f   :  { %v13204_v29 = vpop.f32.mrb[144].mxu0 }
 0x8a0   :  { %v5211_v15 = vpop.f32.mrb[145].mxu0 }
 0x8a1   :  { %5314 = vxpose.xlu0.b32.cont [5/6] (short) (narrow) %v5211_v15, 8 }
 0x8a3   :  { %v13207_v11 = vpop.f32.mrb[146].mxu0 }
 0x8a4   :  { %v5221_v48 = vpop.f32.mrb[147].mxu0 }
 0x8a5   :  { %5315 = vxpose.xlu0.b32.end [6/6] (short) (narrow) %v13204_v29, 8  ;;  %5342 = vxpose.xlu1.b32.start [1/6] (short) (narrow) %v5221_v48, 8 }
 0x8a7   :  { %v13210_v17 = vpop.f32.mrb[148].mxu0 }
 0x8a8   :  { %v5231_v62 = vpop.f32.mrb[149].mxu0 }
 0x8a9   :  { %5343 = vxpose.xlu1.b32.cont [2/6] (short) (narrow) %v13207_v11, 8 }
 0x8ab   :  { %v13213_v21 = vpop.f32.mrb[150].mxu0 }
 0x8ac   :  { %v5241_v51 = vpop.f32.mrb[151].mxu0 }
 0x8ad   :  { %5344 = vxpose.xlu1.b32.cont [3/6] (short) (narrow) %v5231_v62, 8 }
 0x8af   :  { %v13216_v20 = vpop.f32.mrb[152].mxu0 }
 0x8b0   :  { %v5251_v40 = vpop.f32.mrb[153].mxu0 }
 0x8b1   :  { %5345 = vxpose.xlu1.b32.cont [4/6] (short) (narrow) %v13210_v17, 8  ;;  %5374 = vxpose.xlu0.b32.start [1/6] (short) (narrow) %v5251_v40, 8 }
 0x8b3   :  { %v13219_v41 = vpop.f32.mrb[154].mxu0 }
 0x8b4   :  { %v5261_v45 = vpop.f32.mrb[155].mxu0 }
 0x8b5   :  { %5346 = vxpose.xlu1.b32.cont [5/6] (short) (narrow) %v5241_v51, 8  ;;  %5375 = vxpose.xlu0.b32.cont [2/6] (short) (narrow) %v13216_v20, 8 }
 0x8b7   :  { %v13222_v52 = vpop.f32.mrb[156].mxu0 }
 0x8b8   :  { %v5271_v53 = vpop.f32.mrb[157].mxu0 }
 0x8b9   :  { %5347 = vxpose.xlu1.b32.end [6/6] (short) (narrow) %v13213_v21, 8  ;;  %5376 = vxpose.xlu0.b32.cont [3/6] (short) (narrow) %v5261_v45, 8 }
 0x8bb   :  { %v13225_v16 = vpop.f32.mrb[158].mxu0 }
 0x8bc   :  { %v5281_v57 = vpop.f32.mrb[159].mxu0 }
 0x8bd   :  { %5377 = vxpose.xlu0.b32.cont [4/6] (short) (narrow) %v13219_v41, 8  ;;  %5406 = vxpose.xlu1.b32.start [1/6] (short) (narrow) %v5281_v57, 8 }
 0x8bf   :  { %v13228_v56 = vpop.f32.mrb[160].mxu0 }
 0x8c0   :  { %v5291_v60 = vpop.f32.mrb[161].mxu0 }
 0x8c1   :  { %5378 = vxpose.xlu0.b32.cont [5/6] (short) (narrow) %v5271_v53, 8  ;;  %5407 = vxpose.xlu1.b32.cont [2/6] (short) (narrow) %v13225_v16, 8 }
 0x8c3   :  { %v13231_v43 = vpop.f32.mrb[162].mxu0 }
 0x8c4   :  { %v5301_v63 = vpop.f32.mrb[163].mxu0 }
 0x8c5   :  { %5379 = vxpose.xlu0.b32.end [6/6] (short) (narrow) %v13222_v52, 8  ;;  %5408 = vxpose.xlu1.b32.cont [3/6] (short) (narrow) %v5291_v60, 8 }
 0x8c9   :  { %5409 = vxpose.xlu1.b32.cont [4/6] (short) (narrow) %v13228_v56, 8 }
 0x8cd   :  { %5410 = vxpose.xlu1.b32.cont [5/6] (short) (narrow) %v5301_v63, 8 }
 0x8d1   :  { %5411 = vxpose.xlu1.b32.end [6/6] (short) (narrow) %v13231_v43, 8 }
 0x8f2   :  { %2421 = vadd.xlane.f32.xlu0 %v14790_v18  ;;  %v5563_v18 = vld [vmem:[%s15800_s1 + $0x198] sm:$0xff] }
 0x8f8   :  { %2445 = vadd.xlane.f32.xlu1 %v14781_v59  ;;  %v15109_v59 = vpack.c.bf16 %v5563_v18, %v5562_v27 }
 0x8fa   :  { %13837 = vmatpush3.bf16.xpose.msk.msra.mxu1 %vm15113_vm5, %v15109_v59 }
 0x8fb   :  { %13838 = vmatprep.subr.bf16.mxu1 %v14113_v23 }
 0x8fc   :  { %4887 = vadd.xlane.f32.xlu1 %v4886_v36  ;;  %v27_v36 = vlaneseq }
 0x8fe   :  { %v15148_v44 = vshrl.u32 %v27_v36, 7 }
 0x900   :  { %4903 = vadd.xlane.f32.xlu1 %v4902_v47  ;;  %vm2405_vm7 = vcmp.eq.s32.totalorder %v15148_v44, 0 }
 0x902   :  { %13841 = vmatpush3.bf16.xpose.msk.msra.mxu1 %vm15113_vm5, %v15134_v55 }
 0x903   :  { %13850 = vmatprep.subr.bf16.mxu1 %v14113_v23 }
 0x911   :  { %v5326_v54 = vpop.trf.xlu0 }
 0x912   :  { %13244 = vmatprep.mubr.msk.f32.mxu0 %vm3308_vm2, %v5326_v54 }
 0x925   :  { %v5358_v14 = vpop.trf.xlu1 }
 0x926   :  { %13245 = vmatmul.mubr.msk.f32.vlgmr.msra.gmra.mrb[164].mxu0 %vm3308_vm2, %v5358_v14 }
 0x927   :  { %13845 = vmatpush3.bf16.xpose.msk.msra.mxu0 %vm15113_vm5, %v15109_v59 }
 0x928   :  { %13846 = vmatprep.subr.bf16.mxu0 %v14113_v23 }
 0x92f   :  { %13849 = vmatpush3.bf16.xpose.msk.msra.mxu0 %vm15113_vm5, %v15134_v55 }
 0x930   :  { %13858 = vmatprep.subr.bf16.mxu0 %v14113_v23 }
 0x931   :  { %v5390_v7 = vpop.trf.xlu0 }
 0x932   :  { %13247 = vmatprep.mubr.msk.f32.mxu0 %vm3308_vm2, %v5390_v7  ;;  %v5566_v7 = vld [vmem:[%s15800_s1 + $0x180] sm:$0xff] }
 0x93d   :  { %v5422_v30 = vpop.trf.xlu1 }
 0x93e   :  { %13248 = vmatmul.mubr.msk.f32.gmra.mrb[166].mxu0 %vm3308_vm2, %v5422_v30  ;;  %vm15658_vm2 = vmpackc.low %vm9994_vm1, %vm9994_vm1 }
 0x93f   :  { %13269 = vmatprep.mubr.msk.f32.mxu0 %vm14114_vm6, %v14115_v25 }
 0x97f   :  { %v2422_v31 = vpop.xlane.xlu0 %2421 }
 0x980   :  { %v2423_v35 = vrot.slane %v2422_v31, 4 }
 0x982   :  { %v2424_v5 = vadd.f32 %v2423_v35, %v2422_v31 }
 0x984   :  { %v2425_v28 = vrot.slane %v2424_v5, 2 }
 0x985   :  { %v2446_v37 = vpop.xlane.xlu1 %2445 }
 0x986   :  { %v2447_v10 = vrot.slane %v2446_v37, 4  ;;  %v2426_v42 = vadd.f32 %v2425_v28, %v2424_v5 }
 0x988   :  { %v2448_v38 = vadd.f32 %v2447_v10, %v2446_v37  ;;  %v2427_v8 = vrot.slane %v2426_v42, 1 }
 0x989   :  { %v4888_v12 = vpop.xlane.xlu1 %4887 }
 0x98a   :  { %v2449_v49 = vrot.slane %v2448_v38, 2  ;;  %v4889_v24 = vrot.slane %v4888_v12, 4  ;;  %v2428_v2 = vadd.f32 %v2427_v8, %v2426_v42 }
 0x98c   :  { %v4890_v39 = vadd.f32 %v4889_v24, %v4888_v12  ;;  %14010 = vpush %v2428_v2  ;;  %v2450_v50 = vadd.f32 %v2449_v49, %v2448_v38 }
 0x98d   :  { %v4904_v4 = vpop.xlane.xlu1 %4903 }
 0x98e   :  { %v4891_v1 = vrot.slane %v4890_v39, 2  ;;  %v4905_v0 = vrot.slane %v4904_v4, 4  ;;  %v2451_v58 = vrot.slane %v2450_v50, 1 }
 0x990   :  { %v4906_v6 = vadd.f32 %v4905_v0, %v4904_v4  ;;  %v2452_v9 = vadd.f32 %v2451_v58, %v2450_v50  ;;  %v4892_v22 = vadd.f32 %v4891_v1, %v4890_v39  ;;  %v7206_v0 = vld [vmem:[%s15800_s1 + $0x1b8] sm:$0xff]  ;;  %v7207_v58 = vld [vmem:[%s15800_s1 + $0x1c0] sm:$0xf] }
 0x992   :  { %v4907_v61 = vrot.slane %v4906_v6, 2  ;;  %14012 = vpush %v2452_v9  ;;  %v4893_v33 = vrot.slane %v4892_v22, 1 }
 0x994   :  { %v4894_v34 = vadd.f32 %v4893_v33, %v4892_v22  ;;  %v4908_v13 = vadd.f32 %v4907_v61, %v4906_v6  ;;  %v13915_v6 = vpack.c.bf16 %v7207_v58, %v7206_v0 }
 0x996   :  { %14014 = vpush %v4894_v34  ;;  %v4909_v47 = vrot.slane %v4908_v13, 1 }
 0x998   :  { %v4910_v19 = vadd.f32 %v4909_v47, %v4908_v13 }
 0x99a   :  { %14016 = vpush %v4910_v19 }
 0x9bd   :  { %s14011_s29 = spop %14010 }
 0x9be   :  { %v2454_v46 = vstv %s14011_s29 }
 0x9c3   :  { %s14013_s30 = spop %14012 }
 0x9c4   :  { %v2455_v29 = vstv %s14013_s30 }
 0x9c5   :  { %v2456_v15 = vsel %vm2405_vm7, %v2454_v46, %v2455_v29 }
 0x9c6   :  { %2457 = vst [vmem:[%s15801_s2] sm:$0x3] %v2456_v15 }
 0x9c7   :  { %s14015_s5 = spop %14014 }
 0x9c8   :  { %v4912_v11 = vstv %s14015_s5 }
 0x9cb   :  { %s14017_s6 = spop %14016 }
 0x9cc   :  { %v4913_v48 = vstv %s14017_s6 }
 0x9cd   :  { %v4914_v17 = vsel %vm2405_vm7, %v4912_v11, %v4913_v48 }
 0x9ce   :  { %11846 = vst [vmem:[%s15801_s2 + $0x2] sm:$0x3] %v4914_v17 }
 0x9f9   :  { %v15161_v62 = vpop.f32.mrb[164].mxu0 }
 0x9fa   :  { %5537 = vst.msk [vmem:[#allocation2 + $0x20] sm:$0xff] %vm5535_vm4, %v15161_v62  ;;  %v5541_v21 = vmul.f32 %v15161_v62, %v15161_v62  ;;  %v15167_v51 = vpop.f32.mrb[165].mxu0 }
 0x9fb   :  { %5536 = vst.msk [vmem:[#allocation2] sm:$0xff] %vm5535_vm4, %v15167_v51  ;;  %v5540_v20 = vmul.f32 %v15167_v51, %v15167_v51 }
 0x9fc   :  { %5543 = vst.msk [vmem:[#allocation2 + $0xa0] sm:$0xff] %vm5535_vm4, %v5541_v21 }
 0x9fd   :  { %5542 = vst.msk [vmem:[#allocation2 + $0x80] sm:$0xff] %vm5535_vm4, %v5540_v20 }
 0xa01   :  { %v5553_v40 = vld [vmem:[#allocation2 + $0x20] sm:$0xff] }
 0xa02   :  { %v5552_v41 = vld [vmem:[#allocation2] sm:$0xff]  ;;  %13270 = vmatmul.mubr.msk.f32.vlgmr.msra.gmra.mrb[168].mxu0 %vm5535_vm4, %v5553_v40 }
 0xa03   :  { %13259 = vmatmul.mubr.msk.f32.vlgmr.msra.gmra.mrb[156].mxu1 %vm5535_vm4, %v5552_v41  ;;  %13861 = vmatpush3.bf16.xpose.msk.msra.mxu0 %vm15113_vm5, %v15109_v59  ;;  %v5557_v63 = vld [vmem:[#allocation2 + $0xa0] sm:$0xff] }
 0xa04   :  { %13853 = vmatpush3.bf16.xpose.msk.msra.mxu1 %vm15113_vm5, %v15109_v59  ;;  %13862 = vmatprep.subr.bf16.mxu0 %v14113_v23  ;;  %v5556_v54 = vld [vmem:[#allocation2 + $0x80] sm:$0xff] }
 0xa05   :  { %13854 = vmatprep.subr.bf16.mxu1 %v14113_v23  ;;  %13291 = vmatprep.mubr.msk.f32.mxu0 %vm14114_vm6, %v14115_v25 }
 0xa06   :  { %13280 = vmatprep.mubr.msk.f32.mxu1 %vm14114_vm6, %v14115_v25 }
 0xa0b   :  { %13865 = vmatpush3.bf16.xpose.msk.msra.mxu0 %vm15113_vm5, %v15134_v55 }
 0xa0c   :  { %13857 = vmatpush3.bf16.xpose.msk.msra.mxu1 %vm15113_vm5, %v15134_v55  ;;  %13874 = vmatprep.subr.bf16.mxu0 %v14113_v23 }
 0xa0d   :  { %13866 = vmatprep.subr.bf16.mxu1 %v14113_v23 }
 0xa11   :  { %v15197_v45 = vpop.f32.mrb[166].mxu0 }
 0xa12   :  { %5539 = vst.msk [vmem:[#allocation2 + $0x60] sm:$0xff] %vm5535_vm4, %v15197_v45  ;;  %v5545_v52 = vmul.f32 %v15197_v45, %v15197_v45  ;;  %v5549_v53 = vmul.f32 %v15197_v45, %v15161_v62  ;;  %v15205_v16 = vpop.f32.mrb[167].mxu0 }
 0xa13   :  { %5538 = vst.msk [vmem:[#allocation2 + $0x40] sm:$0xff] %vm5535_vm4, %v15205_v16  ;;  %v5544_v57 = vmul.f32 %v15205_v16, %v15205_v16  ;;  %v5548_v56 = vmul.f32 %v15205_v16, %v15167_v51 }
 0xa14   :  { %5547 = vst.msk [vmem:[#allocation2 + $0xe0] sm:$0xff] %vm5535_vm4, %v5545_v52  ;;  %5551 = vst.msk [vmem:[#allocation2 + $0x120] sm:$0xff] %vm5535_vm4, %v5549_v53 }
 0xa15   :  { %5546 = vst.msk [vmem:[#allocation2 + $0xc0] sm:$0xff] %vm5535_vm4, %v5544_v57  ;;  %5550 = vst.msk [vmem:[#allocation2 + $0x100] sm:$0xff] %vm5535_vm4, %v5548_v56 }
 0xa19   :  { %v5555_v60 = vld [vmem:[#allocation2 + $0x60] sm:$0xff] }
 0xa1a   :  { %13292 = vmatmul.mubr.msk.f32.vlgmr.msra.gmra.mrb[170].mxu0 %vm5535_vm4, %v5555_v60  ;;  %v5554_v43 = vld [vmem:[#allocation2 + $0x40] sm:$0xff] }
 0xa1b   :  { %13877 = vmatpush3.bf16.xpose.msk.msra.mxu0 %vm15113_vm5, %v15109_v59  ;;  %13281 = vmatmul.mubr.msk.f32.vlgmr.msra.gmra.mrb[158].mxu1 %vm5535_vm4, %v5554_v43  ;;  %v5559_v27 = vld [vmem:[#allocation2 + $0xe0] sm:$0xff] }
 0xa1c   :  { %13869 = vmatpush3.bf16.xpose.msk.msra.mxu1 %vm15113_vm5, %v15109_v59  ;;  %13878 = vmatprep.subr.bf16.mxu0 %v14113_v23  ;;  %v5558_v18 = vld [vmem:[#allocation2 + $0xc0] sm:$0xff] }
 0xa1d   :  { %13870 = vmatprep.subr.bf16.mxu1 %v14113_v23  ;;  %13313 = vmatprep.mubr.msk.f32.mxu0 %vm14114_vm6, %v14115_v25  ;;  %v5561_v14 = vld [vmem:[#allocation2 + $0x120] sm:$0xff] }
 0xa1e   :  { %13302 = vmatprep.mubr.msk.f32.mxu1 %vm14114_vm6, %v14115_v25 }
 0xa23   :  { %13881 = vmatpush3.bf16.xpose.msk.msra.mxu0 %vm15113_vm5, %v15134_v55 }
 0xa24   :  { %13873 = vmatpush3.bf16.xpose.msk.msra.mxu1 %vm15113_vm5, %v15134_v55  ;;  %13890 = vmatprep.subr.bf16.mxu0 %v14113_v23 }
 0xa25   :  { %13882 = vmatprep.subr.bf16.mxu1 %v14113_v23 }
 0xa2a   :  { %13314 = vmatmul.mubr.msk.f32.vlgmr.msra.gmra.mrb[172].mxu0 %vm5535_vm4, %v5557_v63 }
 0xa2b   :  { %13303 = vmatmul.mubr.msk.f32.vlgmr.msra.gmra.mrb[160].mxu1 %vm5535_vm4, %v5556_v54  ;;  %13893 = vmatpush3.bf16.xpose.msk.msra.mxu0 %vm15113_vm5, %v15109_v59 }
 0xa2c   :  { %13885 = vmatpush3.bf16.xpose.msk.msra.mxu1 %vm15113_vm5, %v15109_v59  ;;  %13894 = vmatprep.subr.bf16.mxu0 %v14113_v23 }
 0xa2d   :  { %13886 = vmatprep.subr.bf16.mxu1 %v14113_v23  ;;  %13335 = vmatprep.mubr.msk.f32.mxu0 %vm14114_vm6, %v14115_v25 }
 0xa2e   :  { %13324 = vmatprep.mubr.msk.f32.mxu1 %vm14114_vm6, %v14115_v25 }
 0xa33   :  { %13897 = vmatpush3.bf16.xpose.msk.msra.mxu0 %vm15113_vm5, %v15134_v55 }
 0xa34   :  { %13889 = vmatpush3.bf16.xpose.msk.msra.mxu1 %vm15113_vm5, %v15134_v55  ;;  %13906 = vmatprep.subr.bf16.mxu0 %v14113_v23 }
 0xa35   :  { %13898 = vmatprep.subr.bf16.mxu1 %v14113_v23 }
 0xa3a   :  { %13336 = vmatmul.mubr.msk.f32.vlgmr.msra.gmra.mrb[174].mxu0 %vm5535_vm4, %v5559_v27 }
 0xa3b   :  { %13325 = vmatmul.mubr.msk.f32.vlgmr.msra.gmra.mrb[162].mxu1 %vm5535_vm4, %v5558_v18  ;;  %13909 = vmatpush3.bf16.xpose.msk.msra.mxu0 %vm15113_vm5, %v15109_v59 }
 0xa3c   :  { %13901 = vmatpush3.bf16.xpose.msk.msra.mxu1 %vm15113_vm5, %v15109_v59  ;;  %13910 = vmatprep.subr.bf16.mxu0 %v14113_v23  ;;  %v5560_v59 = vld [vmem:[#allocation2 + $0x100] sm:$0xff] }
 0xa3d   :  { %13902 = vmatprep.subr.bf16.mxu1 %v14113_v23  ;;  %13357 = vmatprep.mubr.msk.f32.mxu0 %vm14114_vm6, %v14115_v25 }
 0xa3e   :  { %13346 = vmatprep.mubr.msk.f32.mxu1 %vm14114_vm6, %v14115_v25 }
 0xa43   :  { %13913 = vmatpush3.bf16.xpose.msk.msra.mxu0 %vm15113_vm5, %v15134_v55 }
 0xa44   :  { %13905 = vmatpush3.bf16.xpose.msk.msra.mxu1 %vm15113_vm5, %v15134_v55  ;;  %v5567_v55 = vld [vmem:[%s15800_s1 + $0x188] sm:$0x1] }
 0xa4a   :  { %13358 = vmatmul.mubr.msk.f32.vlgmr.msra.gmra.mrb[176].mxu0 %vm5535_vm4, %v5561_v14 }
 0xa4b   :  { %13347 = vmatmul.mubr.msk.f32.vlgmr.msra.gmra.mrb[164].mxu1 %vm5535_vm4, %v5560_v59  ;;  %13382 = vmatprep.mubr.msk.f32.mxu0 %vm6310_vm8, %v5566_v7 }
 0xa4c   :  { %13362 = vmatprep.mubr.msk.f32.mxu1 %vm6310_vm8, %v5566_v7 }
 0xad5   :  { %v5722_v30 = vpop.f32.mrb[168].mxu0 }
 0xad6   :  { %v5649_v3 = vpop.f32.mrb[156].mxu1  ;;  %v13271_v26 = vpop.f32.mrb[169].mxu0 }
 0xad7   :  { %13360 = vmatprep.subr.mxu1 %v5649_v3  ;;  %v13260_v31 = vpop.f32.mrb[157].mxu1 }
 0xad8   :  { %13361 = vmatpush3.msra.mxu1 %v5649_v3 }
 0xad9   :  { %13365 = vmatprep.subr.mxu1 %v5722_v30  ;;  %13363 = vmatmul.mubr.msk.f32.vlgmr.msra.gmra.mrb[166].mxu1 %vm6310_vm8, %v5567_v55 }
 0xada   :  { %13366 = vmatpush3.msra.mxu1 %v5722_v30  ;;  %13367 = vmatprep.mubr.msk.f32.mxu1 %vm6310_vm8, %v5566_v7 }
 0xadd   :  { %13368 = vmatmul.mubr.msk.f32.vlgmr.msra.gmra.mrb[168].mxu1 %vm6310_vm8, %v5567_v55 }
 0xade   :  { %13372 = vmatprep.mubr.msk.f32.mxu1 %vm6310_vm8, %v5566_v7 }
 0xaed   :  { %v5868_v35 = vpop.f32.mrb[170].mxu0 }
 0xaee   :  { %v5795_v5 = vpop.f32.mrb[158].mxu1  ;;  %v13293_v28 = vpop.f32.mrb[171].mxu0 }
 0xaef   :  { %v13282_v37 = vpop.f32.mrb[159].mxu1  ;;  %13370 = vmatprep.subr.mxu1 %v5795_v5 }
 0xaf0   :  { %13371 = vmatpush3.msra.mxu1 %v5795_v5 }
 0xaf1   :  { %13375 = vmatprep.subr.mxu1 %v5868_v35  ;;  %13373 = vmatmul.mubr.msk.f32.vlgmr.msra.gmra.mrb[170].mxu1 %vm6310_vm8, %v5567_v55 }
 0xaf2   :  { %13376 = vmatpush3.msra.mxu1 %v5868_v35  ;;  %13377 = vmatprep.mubr.msk.f32.mxu1 %vm6310_vm8, %v5566_v7 }
 0xaf5   :  { %13378 = vmatmul.mubr.msk.f32.vlgmr.msra.gmra.mrb[172].mxu1 %vm6310_vm8, %v5567_v55 }
 0xaf6   :  { %13387 = vmatprep.mubr.msk.f32.mxu1 %vm6310_vm8, %v5566_v7 }
 0xafd   :  { %v6014_v10 = vpop.f32.mrb[172].mxu0 }
 0xafe   :  { %v5941_v42 = vpop.f32.mrb[160].mxu1  ;;  %v13315_v38 = vpop.f32.mrb[173].mxu0  ;;  %13385 = vmatprep.subr.mxu1 %v6014_v10 }
 0xaff   :  { %v13304_v8 = vpop.f32.mrb[161].mxu1  ;;  %13380 = vmatprep.subr.mxu0 %v5941_v42  ;;  %13386 = vmatpush3.msra.mxu1 %v6014_v10 }
 0xb00   :  { %13381 = vmatpush3.msra.mxu0 %v5941_v42  ;;  %13388 = vmatmul.mubr.msk.f32.vlgmr.msra.gmra.mrb[174].mxu1 %vm6310_vm8, %v5567_v55 }
 0xb01   :  { %13383 = vmatmul.mubr.msk.f32.vlgmr.msra.gmra.mrb[178].mxu0 %vm6310_vm8, %v5567_v55  ;;  %13397 = vmatprep.mubr.msk.f32.mxu1 %vm6310_vm8, %v5566_v7 }
 0xb02   :  { %13392 = vmatprep.mubr.msk.f32.mxu0 %vm6310_vm8, %v5566_v7 }
 0xb0d   :  { %v6160_v12 = vpop.f32.mrb[174].mxu0 }
 0xb0e   :  { %v6087_v49 = vpop.f32.mrb[162].mxu1  ;;  %v13337_v24 = vpop.f32.mrb[175].mxu0  ;;  %13395 = vmatprep.subr.mxu1 %v6160_v12 }
 0xb0f   :  { %v13326_v2 = vpop.f32.mrb[163].mxu1  ;;  %13390 = vmatprep.subr.mxu0 %v6087_v49  ;;  %13396 = vmatpush3.msra.mxu1 %v6160_v12 }
 0xb10   :  { %13391 = vmatpush3.msra.mxu0 %v6087_v49  ;;  %13398 = vmatmul.mubr.msk.f32.vlgmr.msra.gmra.mrb[176].mxu1 %vm6310_vm8, %v5567_v55 }
 0xb11   :  { %13393 = vmatmul.mubr.msk.f32.vlgmr.msra.gmra.mrb[180].mxu0 %vm6310_vm8, %v5567_v55  ;;  %13407 = vmatprep.mubr.msk.f32.mxu1 %vm6310_vm8, %v5566_v7 }
 0xb12   :  { %13402 = vmatprep.mubr.msk.f32.mxu0 %vm6310_vm8, %v5566_v7 }
 0xb1d   :  { %v6306_v39 = vpop.f32.mrb[176].mxu0 }
 0xb1e   :  { %v6233_v50 = vpop.f32.mrb[164].mxu1  ;;  %v13359_v4 = vpop.f32.mrb[177].mxu0  ;;  %13405 = vmatprep.subr.mxu1 %v6306_v39 }
 0xb1f   :  { %v13348_v1 = vpop.f32.mrb[165].mxu1  ;;  %13400 = vmatprep.subr.mxu0 %v6233_v50  ;;  %13406 = vmatpush3.msra.mxu1 %v6306_v39 }
 0xb20   :  { %13401 = vmatpush3.msra.mxu0 %v6233_v50  ;;  %13408 = vmatmul.mubr.msk.f32.vlgmr.msra.gmra.mrb[178].mxu1 %vm6310_vm8, %v5567_v55 }
 0xb21   :  { %13403 = vmatmul.mubr.msk.f32.vlgmr.msra.gmra.mrb[182].mxu0 %vm6310_vm8, %v5567_v55  ;;  %13918 = vmatprep.subr.bf16.mxu1 %v14113_v23 }
 0xb22   :  { %13914 = vmatprep.subr.bf16.mxu0 %v14113_v23  ;;  %13421 = vmatprep.mubr.msk.f32.mxu1 %vm14114_vm6, %v14115_v25 }
 0xb23   :  { %13414 = vmatprep.mubr.msk.f32.mxu0 %vm14114_vm6, %v14115_v25 }
 0xb26   :  { %13921 = vmatpush3.bf16.xpose.msk.msra.mxu1 %vm15113_vm5, %v13915_v6 }
 0xb27   :  { %13917 = vmatpush3.bf16.xpose.msk.msra.mxu0 %vm15113_vm5, %v13915_v6  ;;  %13926 = vmatprep.subr.bf16.mxu1 %v14113_v23 }
 0xb28   :  { %13922 = vmatprep.subr.bf16.mxu0 %v14113_v23 }
 0xb2d   :  { %13422 = vmatmul.mubr.msk.f32.vlgmr.msra.gmra.mrb[180].mxu1 %vm5535_vm4, %v15161_v62 }
 0xb2e   :  { %13415 = vmatmul.mubr.msk.f32.vlgmr.msra.gmra.mrb[184].mxu0 %vm5535_vm4, %v15167_v51  ;;  %13929 = vmatpush3.bf16.xpose.msk.msra.mxu1 %vm15113_vm5, %v13915_v6 }
 0xb2f   :  { %13925 = vmatpush3.bf16.xpose.msk.msra.mxu0 %vm15113_vm5, %v13915_v6  ;;  %13435 = vmatprep.mubr.msk.f32.mxu1 %vm14114_vm6, %v14115_v25  ;;  %vm10731_vm5 = vcmask 15360  }
 0xb30   :  { %13428 = vmatprep.mubr.msk.f32.mxu0 %vm14114_vm6, %v14115_v25  ;;  %13443 = vmatprep.subr.mxu1 %v14115_v25 }
 0xb31   :  { %13438 = vmatprep.subr.mxu0 %v14115_v25 }
 0xb35   :  { %13436 = vmatmul.mubr.msk.f32.vlgmr.msra.gmra.mrb[182].mxu1 %vm5535_vm4, %v15197_v45 }
 0xb36   :  { %13429 = vmatmul.mubr.msk.f32.vlgmr.msra.gmra.mrb[186].mxu0 %vm5535_vm4, %v15205_v16  ;;  %13445 = vmatprep.mubr.msk.f32.mxu1 %vm14114_vm6, %v14115_v25  ;;  %vm10735_vm4 = vcmask 1041408  }
 0xb37   :  { %13440 = vmatprep.mubr.msk.f32.mxu0 %vm14114_vm6, %v14115_v25 }
 0xbac   :  { %v13364_v32 = vpop.f32.mrb[166].mxu1 }
 0xbad   :  { %v6383_v9 = vpop.f32.mrb[167].mxu1  ;;  %v15349_v33 = vmul.f32 %v13364_v32, %v13364_v32 }
 0xbae   :  { %v15351_v34 = vmul.f32 %v6383_v9, %v6383_v9 }
 0xbb0   :  { %v13369_v22 = vpop.f32.mrb[168].mxu1 }
 0xbb1   :  { %v6458_v61 = vpop.f32.mrb[169].mxu1  ;;  %v15361_v15 = vmul.f32 %v13369_v22, %v13369_v22 }
 0xbb2   :  { %v15365_v48 = vmul.f32 %v6458_v61, %v6458_v61 }
 0xbc4   :  { %v13374_v13 = vpop.f32.mrb[170].mxu1 }
 0xbc5   :  { %v15353_v47 = vmul.f32 %v13374_v13, %v13374_v13  ;;  %v15355_v19 = vmul.f32 %v13374_v13, %v13364_v32  ;;  %v6533_v36 = vpop.f32.mrb[171].mxu1 }
 0xbc6   :  { %v15357_v46 = vmul.f32 %v6533_v36, %v6533_v36  ;;  %v15359_v29 = vmul.f32 %v6533_v36, %v6383_v9 }
 0xbc7   :  { %v7080_v11 = vadd.f32 %v15353_v47, %v15349_v33  ;;  %v7116_v43 = vmul.f32 2.0, %v15355_v19 }
 0xbc8   :  { %v7079_v17 = vadd.f32 %v15357_v46, %v15351_v34  ;;  %v13379_v62 = vpop.f32.mrb[172].mxu1  ;;  %v7115_v14 = vmul.f32 2.0, %v15359_v29 }
 0xbc9   :  { %v7084_v21 = vadd.f32 0.0001, %v7080_v11  ;;  %v7074_v51 = vmul.f32 %v13379_v62, %v13379_v62  ;;  %v15369_v20 = vmul.f32 %v13379_v62, %v13369_v22  ;;  %v6608_v40 = vpop.f32.mrb[173].mxu1  ;;  %v7120_v35 = vadd.f32 0.0001, %v7116_v43 }
 0xbca   :  { %v7083_v41 = vadd.f32 0.0001, %v7079_v17  ;;  %v7073_v45 = vmul.f32 %v6608_v40, %v6608_v40  ;;  %v15371_v52 = vmul.f32 %v6608_v40, %v6458_v61  ;;  %v7119_v10 = vadd.f32 0.0001, %v7115_v14 }
 0xbcb   :  { %14081 = vrcp.f32 %v7084_v21  ;;  %v7082_v53 = vadd.f32 %v7074_v51, %v15361_v15  ;;  %v7118_v28 = vmul.f32 2.0, %v15369_v20 }
 0xbcc   :  { %14083 = vrcp.f32 %v7083_v41  ;;  %v7081_v16 = vadd.f32 %v7073_v45, %v15365_v48  ;;  %v7117_v38 = vmul.f32 2.0, %v15371_v52 }
 0xbcd   :  { %v7086_v57 = vadd.f32 0.0001, %v7082_v53  ;;  %v7122_v50 = vadd.f32 0.0001, %v7118_v28 }
 0xbce   :  { %v7085_v56 = vadd.f32 0.0001, %v7081_v16  ;;  %v7121_v0 = vadd.f32 0.0001, %v7117_v38 }
 0xbcf   :  { %14085 = vrcp.f32 %v7086_v57 }
 0xbd0   :  { %14087 = vrcp.f32 %v7085_v56 }
 0xbd3   :  { %v13389_v60 = vpop.f32.mrb[174].mxu1 }
 0xbd4   :  { %v13384_v63 = vpop.f32.mrb[178].mxu0  ;;  %v7090_v54 = vsub.f32 %v13389_v60, %v15361_v15  ;;  %v6758_v27 = vpop.f32.mrb[175].mxu1 }
 0xbd5   :  { %v14082_v18 = vpop.eup %14081  ;;  %v7088_v59 = vsub.f32 %v13384_v63, %v15349_v33  ;;  %v6683_v7 = vpop.f32.mrb[179].mxu0  ;;  %v7089_v30 = vsub.f32 %v6758_v27, %v15365_v48 }
 0xbd6   :  { %v14084_v3 = vpop.eup %14083  ;;  %v7148_v26 = vmul.f32 %v14082_v18, %v7084_v21  ;;  %v7087_v55 = vsub.f32 %v6683_v7, %v15351_v34 }
 0xbd7   :  { %v7147_v31 = vmul.f32 %v14084_v3, %v7083_v41 }
 0xbd8   :  { %v7152_v5 = vsub.f32 2.0, %v7148_v26 }
 0xbd9   :  { %v14086_v37 = vpop.eup %14085  ;;  %v7151_v42 = vsub.f32 2.0, %v7147_v31 }
 0xbda   :  { %v14088_v8 = vpop.eup %14087  ;;  %v7156_v12 = vmul.f32 %v14082_v18, %v7152_v5  ;;  %v7150_v49 = vmul.f32 %v14086_v37, %v7086_v57 }
 0xbdb   :  { %v7155_v24 = vmul.f32 %v14084_v3, %v7151_v42  ;;  %v7149_v2 = vmul.f32 %v14088_v8, %v7085_v56 }
 0xbdc   :  { %v15383_v39 = vmul.f32 %v7156_v12, %v7120_v35  ;;  %v7154_v4 = vsub.f32 2.0, %v7150_v49 }
 0xbdd   :  { %v15385_v1 = vmul.f32 %v7155_v24, %v7119_v10  ;;  %v7153_v58 = vsub.f32 2.0, %v7149_v2 }
 0xbde   :  { %v7158_v6 = vmul.f32 %v14086_v37, %v7154_v4 }
 0xbdf   :  { %v7157_v32 = vmul.f32 %v14088_v8, %v7153_v58 }
 0xbe0   :  { %v7162_v9 = vmul.f32 %v7158_v6, %v7122_v50 }
 0xbe1   :  { %v7161_v22 = vmul.f32 %v7157_v32, %v7121_v0  ;;  %v7208_v32 = vld [vmem:[%s15800_s1 + $0x1b0] sm:$0xf] }
 0xbe3   :  { %v13399_v61 = vpop.f32.mrb[176].mxu1 }
 0xbe4   :  { %v7094_v33 = vsub.f32 %v13399_v61, %v7074_v51  ;;  %v13394_v34 = vpop.f32.mrb[180].mxu0  ;;  %v6908_v13 = vpop.f32.mrb[177].mxu1 }
 0xbe5   :  { %v7092_v36 = vsub.f32 %v13394_v34, %v15353_v47  ;;  %v7093_v15 = vsub.f32 %v6908_v13, %v7073_v45  ;;  %v6833_v11 = vpop.f32.mrb[181].mxu0 }
 0xbe6   :  { %v7098_v48 = vadd.f32 %v7094_v33, %v7090_v54  ;;  %v7091_v17 = vsub.f32 %v6833_v11, %v15357_v46 }
 0xbe7   :  { %v7096_v62 = vadd.f32 %v7092_v36, %v7088_v59  ;;  %v7097_v21 = vadd.f32 %v7093_v15, %v7089_v30 }
 0xbe8   :  { %v7102_v40 = vadd.f32 0.0009, %v7098_v48  ;;  %v7095_v41 = vadd.f32 %v7091_v17, %v7087_v55 }
 0xbe9   :  { %v7100_v53 = vadd.f32 0.0009, %v7096_v62  ;;  %v7101_v16 = vadd.f32 0.0009, %v7097_v21 }
 0xbea   :  { %14089 = vrcp.f32 %v7102_v40  ;;  %v7099_v57 = vadd.f32 0.0009, %v7095_v41 }
 0xbeb   :  { %14091 = vrcp.f32 %v7100_v53 }
 0xbec   :  { %14093 = vrcp.f32 %v7101_v16 }
 0xbed   :  { %14095 = vrcp.f32 %v7099_v57 }
 0xbf3   :  { %v13409_v51 = vpop.f32.mrb[178].mxu1 }
 0xbf4   :  { %v14090_v56 = vpop.eup %14089  ;;  %v7106_v47 = vsub.f32 %v13409_v51, %v15369_v20  ;;  %v13404_v45 = vpop.f32.mrb[182].mxu0 }
 0xbf5   :  { %v7058_v60 = vpop.f32.mrb[179].mxu1  ;;  %v14092_v43 = vpop.eup %14091  ;;  %v7130_v63 = vmul.f32 %v14090_v56, %v7102_v40  ;;  %v7104_v46 = vsub.f32 %v13404_v45, %v15355_v19  ;;  %v7818_v45 = vld [vmem:[%s15800_s1 + $0x1d8] sm:$0x7f] }
 0xbf6   :  { %v7105_v54 = vsub.f32 %v7058_v60, %v15371_v52  ;;  %v6983_v27 = vpop.f32.mrb[183].mxu0  ;;  %v14094_v18 = vpop.eup %14093  ;;  %v7128_v14 = vmul.f32 %v14092_v43, %v7100_v53  ;;  %v7110_v59 = vmul.f32 2.0, %v7106_v47  ;;  %v7817_v47 = vld [vmem:[%s15800_s1 + $0x1d0] sm:$0xff] }
 0xbf7   :  { %v7103_v7 = vsub.f32 %v6983_v27, %v15359_v29  ;;  %v14096_v30 = vpop.eup %14095  ;;  %v7134_v3 = vsub.f32 2.0, %v7130_v63  ;;  %v7129_v26 = vmul.f32 %v14094_v18, %v7101_v16  ;;  %v7108_v55 = vmul.f32 2.0, %v7104_v46 }
 0xbf8   :  { %v7109_v31 = vmul.f32 2.0, %v7105_v54  ;;  %v7132_v20 = vsub.f32 2.0, %v7128_v14  ;;  %v7127_v35 = vmul.f32 %v14096_v30, %v7099_v57  ;;  %v7114_v5 = vadd.f32 0.0009, %v7110_v59 }
 0xbf9   :  { %v7107_v28 = vmul.f32 2.0, %v7103_v7  ;;  %v7133_v37 = vsub.f32 2.0, %v7129_v26  ;;  %v7138_v10 = vmul.f32 %v14090_v56, %v7134_v3  ;;  %v7112_v19 = vadd.f32 0.0009, %v7108_v55 }
 0xbfa   :  { %v7113_v42 = vadd.f32 0.0009, %v7109_v31  ;;  %v7131_v52 = vsub.f32 2.0, %v7127_v35  ;;  %v7136_v38 = vmul.f32 %v14092_v43, %v7132_v20  ;;  %v15428_v60 = vpack.c.bf16 %v7818_v45, %v7817_v47 }
 0xbfb   :  { %v7111_v8 = vadd.f32 0.0009, %v7107_v28  ;;  %v7142_v12 = vmul.f32 %v7138_v10, %v7114_v5  ;;  %v7137_v49 = vmul.f32 %v14094_v18, %v7133_v37 }
 0xbfc   :  { %v7140_v29 = vmul.f32 %v7136_v38, %v7112_v19  ;;  %v7135_v24 = vmul.f32 %v14096_v30, %v7131_v52 }
 0xbfd   :  { %v7166_v2 = vmul.f32 %v7162_v9, %v7142_v12  ;;  %v7141_v50 = vmul.f32 %v7137_v49, %v7113_v42  ;;  %v7190_v17 = vsel %vm7169_vm9, %v7142_v12, 0.0 }
 0xbfe   :  { %v7164_v4 = vmul.f32 %v15383_v39, %v7140_v29  ;;  %v7186_v0 = vsel %vm7169_vm9, %v7140_v29, 0.0  ;;  %v7139_v58 = vmul.f32 %v7135_v24, %v7111_v8 }
 0xbff   :  { %v7165_v6 = vmul.f32 %v7161_v22, %v7141_v50  ;;  %v7188_v39 = vsel %vm7167_vm10, %v7141_v50, 0.0  ;;  %v7174_v41 = vsel %vm7169_vm9, %v7166_v2, 0.0 }
 0xc00   :  { %v7170_v61 = vsel %vm7169_vm9, %v7164_v4, 0.0  ;;  %v7163_v33 = vmul.f32 %v15385_v1, %v7139_v58  ;;  %v7185_v34 = vsel %vm7167_vm10, %v7139_v58, 0.0  ;;  %v7357_v13 = vpop.f32.mrb[180].mxu1 }
 0xc01   :  { %v7187_v9 = vadd.f32 %v7186_v0, %v7185_v34  ;;  %v7284_v36 = vpop.f32.mrb[184].mxu0  ;;  %v13423_v15 = vpop.f32.mrb[181].mxu1  ;;  %13444 = vmatpush3.msra.mxu1 %v7357_v13  ;;  %v7172_v62 = vsel %vm7167_vm10, %v7165_v6, 0.0 }
 0xc02   :  { %v7168_v11 = vsel %vm7167_vm10, %v7163_v33, 0.0  ;;  %v13416_v22 = vpop.f32.mrb[185].mxu0  ;;  %13439 = vmatpush3.msra.mxu0 %v7284_v36  ;;  %13446 = vmatmul.mubr.msk.f32.vlgmr.msra.gmra.mrb[184].mxu1 %vm6310_vm8, %v7208_v32  ;;  %v7819_v15 = vld [vmem:[%s15800_s1 + $0x1c8] sm:$0x1f] }
 0xc03   :  { %13441 = vmatmul.mubr.msk.f32.vlgmr.msra.gmra.mrb[188].mxu0 %vm6310_vm8, %v7208_v32  ;;  %v7189_v48 = vadd.f32 %v7188_v39, %v7187_v9  ;;  %13453 = vmatprep.subr.mxu1 %v14115_v25  ;;  %v7171_v1 = vadd.f32 %v7170_v61, %v7168_v11 }
 0xc04   :  { %13448 = vmatprep.subr.mxu0 %v14115_v25  ;;  %13455 = vmatprep.mubr.msk.f32.mxu1 %vm14114_vm6, %v14115_v25 }
 0xc05   :  { %v7191_v21 = vadd.f32 %v7190_v17, %v7189_v48  ;;  %v7173_v40 = vadd.f32 %v7172_v62, %v7171_v1  ;;  %13450 = vmatprep.mubr.msk.f32.mxu0 %vm14114_vm6, %v14115_v25 }
 0xc07   :  { %7192 = vadd.xlane.f32.xlu1 %v7191_v21  ;;  %v7175_v53 = vadd.f32 %v7174_v41, %v7173_v40 }
 0xc08   :  { %v7503_v16 = vpop.f32.mrb[182].mxu1 }
 0xc09   :  { %7176 = vadd.xlane.f32.xlu0 %v7175_v53  ;;  %v7430_v57 = vpop.f32.mrb[186].mxu0  ;;  %v13437_v51 = vpop.f32.mrb[183].mxu1  ;;  %13454 = vmatpush3.msra.mxu1 %v7503_v16 }
 0xc0a   :  { %v13430_v56 = vpop.f32.mrb[187].mxu0  ;;  %13449 = vmatpush3.msra.mxu0 %v7430_v57  ;;  %13456 = vmatmul.mubr.msk.f32.vlgmr.msra.gmra.mrb[186].mxu1 %vm6310_vm8, %v7208_v32 }
 0xc0b   :  { %13451 = vmatmul.mubr.msk.f32.vlgmr.msra.gmra.mrb[190].mxu0 %vm6310_vm8, %v7208_v32  ;;  %13934 = vmatprep.subr.bf16.mxu1 %v14113_v23 }
 0xc0c   :  { %13930 = vmatprep.subr.bf16.mxu0 %v14113_v23  ;;  %13469 = vmatprep.mubr.msk.f32.mxu1 %vm14114_vm6, %v14115_v25 }
 0xc0d   :  { %13462 = vmatprep.mubr.msk.f32.mxu0 %vm14114_vm6, %v14115_v25 }
 0xc10   :  { %13937 = vmatpush3.bf16.xpose.msk.msra.mxu1 %vm15432_vm12, %v15428_v60 }
 0xc11   :  { %13933 = vmatpush3.bf16.xpose.msk.msra.mxu0 %vm15432_vm12, %v15428_v60  ;;  %13942 = vmatprep.subr.bf16.mxu1 %v14113_v23 }
 0xc12   :  { %13938 = vmatprep.subr.bf16.mxu0 %v14113_v23 }
 0xc94   :  { %v7193_v63 = vpop.xlane.xlu1 %7192 }
 0xc95   :  { %v7194_v46 = vrot.slane %v7193_v63, 4 }
 0xc96   :  { %v7177_v54 = vpop.xlane.xlu0 %7176 }
 0xc97   :  { %v7195_v27 = vadd.f32 %v7194_v46, %v7193_v63  ;;  %v7178_v18 = vrot.slane %v7177_v54, 4  ;;  %v9372_v46 = vld [vmem:[%s15800_s1 + $0x1e8] sm:$0x3f] }
 0xc99   :  { %v7196_v14 = vrot.slane %v7195_v27, 2  ;;  %v7179_v59 = vadd.f32 %v7178_v18, %v7177_v54 }
 0xc9b   :  { %v7180_v7 = vrot.slane %v7179_v59, 2  ;;  %v7197_v30 = vadd.f32 %v7196_v14, %v7195_v27 }
 0xc9d   :  { %v7181_v3 = vadd.f32 %v7180_v7, %v7179_v59  ;;  %v7198_v26 = vrot.slane %v7197_v30, 1 }
 0xc9f   :  { %v7182_v55 = vrot.slane %v7181_v3, 1  ;;  %v7199_v20 = vadd.f32 %v7198_v26, %v7197_v30 }
 0xca1   :  { %v7183_v31 = vadd.f32 %v7182_v55, %v7181_v3 }
 0xca3   :  { %14018 = vpush %v7183_v31 }
 0xca4   :  { %14020 = vpush %v7199_v20 }
 0xcd4   :  { %s14019_s22 = spop %14018 }
 0xcd5   :  { %v7201_v35 = vstv %s14019_s22  ;;  %s14021_s23 = spop %14020  ;;  %v15444_v5 = vpop.f32.mrb[184].mxu1 }
 0xcd6   :  { %v7202_v28 = vstv %s14021_s23  ;;  %7792 = vst.msk [vmem:[#allocation2 + $0x20] sm:$0xf] %vm7790_vm13, %v15444_v5  ;;  %v7796_v37 = vmul.f32 %v15444_v5, %v15444_v5  ;;  %v15450_v10 = vpop.f32.mrb[188].mxu0  ;;  %v13447_v19 = vpop.f32.mrb[185].mxu1 }
 0xcd7   :  { %v7203_v42 = vsel %vm2405_vm7, %v7201_v35, %v7202_v28  ;;  %7791 = vst.msk [vmem:[#allocation2] sm:$0xf] %vm7790_vm13, %v15450_v10  ;;  %v7795_v52 = vmul.f32 %v15450_v10, %v15450_v10  ;;  %v13442_v38 = vpop.f32.mrb[189].mxu0 }
 0xcd8   :  { %11945 = vst [vmem:[%s15801_s2 + $0x4] sm:$0x3] %v7203_v42  ;;  %7798 = vst.msk [vmem:[#allocation2 + $0xa0] sm:$0xf] %vm7790_vm13, %v7796_v37 }
 0xcd9   :  { %7797 = vst.msk [vmem:[#allocation2 + $0x80] sm:$0xf] %vm7790_vm13, %v7795_v52 }
 0xcdd   :  { %v15463_v8 = vpop.f32.mrb[186].mxu1  ;;  %v7808_v12 = vld [vmem:[#allocation2 + $0x20] sm:$0xf] }
 0xcde   :  { %7794 = vst.msk [vmem:[#allocation2 + $0x60] sm:$0xf] %vm7790_vm13, %v15463_v8  ;;  %v7800_v49 = vmul.f32 %v15463_v8, %v15463_v8  ;;  %v7804_v29 = vmul.f32 %v15463_v8, %v15444_v5  ;;  %v15471_v24 = vpop.f32.mrb[190].mxu0  ;;  %v13457_v2 = vpop.f32.mrb[187].mxu1  ;;  %13470 = vmatmul.mubr.msk.f32.vlgmr.msra.gmra.mrb[188].mxu1 %vm7820_vm11, %v7808_v12  ;;  %v7807_v50 = vld [vmem:[#allocation2] sm:$0xf] }
 0xcdf   :  { %7793 = vst.msk [vmem:[#allocation2 + $0x40] sm:$0xf] %vm7790_vm13, %v15471_v24  ;;  %v7799_v4 = vmul.f32 %v15471_v24, %v15471_v24  ;;  %v7803_v0 = vmul.f32 %v15471_v24, %v15450_v10  ;;  %13945 = vmatpush3.bf16.xpose.msk.msra.mxu1 %vm15432_vm12, %v15428_v60  ;;  %v13452_v58 = vpop.f32.mrb[191].mxu0  ;;  %13463 = vmatmul.mubr.msk.f32.vlgmr.msra.gmra.mrb[192].mxu0 %vm7820_vm11, %v7807_v50  ;;  %v7812_v61 = vld [vmem:[#allocation2 + $0xa0] sm:$0xf] }
 0xce0   :  { %7802 = vst.msk [vmem:[#allocation2 + $0xe0] sm:$0xf] %vm7790_vm13, %v7800_v49  ;;  %7806 = vst.msk [vmem:[#allocation2 + $0x120] sm:$0xf] %vm7790_vm13, %v7804_v29  ;;  %13941 = vmatpush3.bf16.xpose.msk.msra.mxu0 %vm15432_vm12, %v15428_v60  ;;  %13483 = vmatprep.mubr.msk.f32.mxu1 %vm14114_vm6, %v14115_v25  ;;  %v7811_v33 = vld [vmem:[#allocation2 + $0x80] sm:$0xf] }
 0xce1   :  { %7801 = vst.msk [vmem:[#allocation2 + $0xc0] sm:$0xf] %vm7790_vm13, %v7799_v4  ;;  %7805 = vst.msk [vmem:[#allocation2 + $0x100] sm:$0xf] %vm7790_vm13, %v7803_v0  ;;  %13950 = vmatprep.subr.bf16.mxu1 %v14113_v23  ;;  %13476 = vmatprep.mubr.msk.f32.mxu0 %vm14114_vm6, %v14115_v25 }
 0xce2   :  { %13946 = vmatprep.subr.bf16.mxu0 %v14113_v23 }
 0xce5   :  { %v7810_v6 = vld [vmem:[#allocation2 + $0x60] sm:$0xf] }
 0xce6   :  { %13484 = vmatmul.mubr.msk.f32.vlgmr.msra.gmra.mrb[190].mxu1 %vm7820_vm11, %v7810_v6  ;;  %v7809_v32 = vld [vmem:[#allocation2 + $0x40] sm:$0xf] }
 0xce7   :  { %13953 = vmatpush3.bf16.xpose.msk.msra.mxu1 %vm15432_vm12, %v15428_v60  ;;  %13477 = vmatmul.mubr.msk.f32.vlgmr.msra.gmra.mrb[194].mxu0 %vm7820_vm11, %v7809_v32  ;;  %v7814_v34 = vld [vmem:[#allocation2 + $0xe0] sm:$0xf] }
 0xce8   :  { %13949 = vmatpush3.bf16.xpose.msk.msra.mxu0 %vm15432_vm12, %v15428_v60  ;;  %13497 = vmatprep.mubr.msk.f32.mxu1 %vm14114_vm6, %v14115_v25  ;;  %v7813_v13 = vld [vmem:[#allocation2 + $0xc0] sm:$0xf] }
 0xce9   :  { %13490 = vmatprep.mubr.msk.f32.mxu0 %vm14114_vm6, %v14115_v25  ;;  %13958 = vmatprep.subr.bf16.mxu1 %v14113_v23  ;;  %v7816_v9 = vld [vmem:[#allocation2 + $0x120] sm:$0xf] }
 0xcea   :  { %13954 = vmatprep.subr.bf16.mxu0 %v14113_v23  ;;  %v7815_v36 = vld [vmem:[#allocation2 + $0x100] sm:$0xf] }
 0xcee   :  { %13498 = vmatmul.mubr.msk.f32.vlgmr.msra.gmra.mrb[192].mxu1 %vm7820_vm11, %v7812_v61 }
 0xcef   :  { %13491 = vmatmul.mubr.msk.f32.vlgmr.msra.gmra.mrb[196].mxu0 %vm7820_vm11, %v7811_v33  ;;  %13961 = vmatpush3.bf16.xpose.msk.msra.mxu1 %vm15432_vm12, %v15428_v60 }
 0xcf0   :  { %13957 = vmatpush3.bf16.xpose.msk.msra.mxu0 %vm15432_vm12, %v15428_v60  ;;  %13511 = vmatprep.mubr.msk.f32.mxu1 %vm14114_vm6, %v14115_v25 }
 0xcf1   :  { %13504 = vmatprep.mubr.msk.f32.mxu0 %vm14114_vm6, %v14115_v25  ;;  %13966 = vmatprep.subr.bf16.mxu1 %v14113_v23 }
 0xcf2   :  { %13962 = vmatprep.subr.bf16.mxu0 %v14113_v23 }
 0xcf6   :  { %13512 = vmatmul.mubr.msk.f32.vlgmr.msra.gmra.mrb[194].mxu1 %vm7820_vm11, %v7814_v34 }
 0xcf7   :  { %13505 = vmatmul.mubr.msk.f32.vlgmr.msra.gmra.mrb[198].mxu0 %vm7820_vm11, %v7813_v13  ;;  %13969 = vmatpush3.bf16.xpose.msk.msra.mxu1 %vm15432_vm12, %v15428_v60 }
 0xcf8   :  { %13965 = vmatpush3.bf16.xpose.msk.msra.mxu0 %vm15432_vm12, %v15428_v60  ;;  %13525 = vmatprep.mubr.msk.f32.mxu1 %vm14114_vm6, %v14115_v25 }
 0xcf9   :  { %13518 = vmatprep.mubr.msk.f32.mxu0 %vm14114_vm6, %v14115_v25  ;;  %13528 = vmatprep.subr.mxu0 %v14115_v25 }
 0xcfa   :  { %13533 = vmatprep.subr.mxu1 %v14115_v25 }
 0xcfe   :  { %13526 = vmatmul.mubr.msk.f32.vlgmr.msra.gmra.mrb[196].mxu1 %vm7820_vm11, %v7816_v9 }
 0xcff   :  { %13519 = vmatmul.mubr.msk.f32.vlgmr.msra.gmra.mrb[200].mxu0 %vm7820_vm11, %v7815_v36  ;;  %13535 = vmatprep.mubr.msk.f32.mxu1 %vm14114_vm6, %v14115_v25 }
 0xd00   :  { %13530 = vmatprep.mubr.msk.f32.mxu0 %vm14114_vm6, %v14115_v25 }
 0xdb1   :  { %v7969_v39 = vpop.f32.mrb[188].mxu1 }
 0xdb2   :  { %v7896_v11 = vpop.f32.mrb[192].mxu0  ;;  %v13471_v22 = vpop.f32.mrb[189].mxu1  ;;  %13534 = vmatpush3.msk.msra.mxu1 %vm8561_vm14, %v7969_v39 }
 0xdb3   :  { %v13464_v48 = vpop.f32.mrb[193].mxu0  ;;  %13529 = vmatpush3.msk.msra.mxu0 %vm8561_vm14, %v7896_v11  ;;  %13536 = vmatmul.mubr.msk.f32.vlgmr.msra.gmra.mrb[198].mxu1 %vm8557_vm15, %v7819_v15 }
 0xdb4   :  { %13531 = vmatmul.mubr.msk.f32.vlgmr.msra.gmra.mrb[202].mxu0 %vm8557_vm15, %v7819_v15  ;;  %13543 = vmatprep.subr.mxu1 %v14115_v25 }
 0xdb5   :  { %13538 = vmatprep.subr.mxu0 %v14115_v25  ;;  %13545 = vmatprep.mubr.msk.f32.mxu1 %vm14114_vm6, %v14115_v25 }
 0xdb6   :  { %13540 = vmatprep.mubr.msk.f32.mxu0 %vm14114_vm6, %v14115_v25 }
 0xdb9   :  { %v8115_v1 = vpop.f32.mrb[190].mxu1 }
 0xdba   :  { %v8042_v17 = vpop.f32.mrb[194].mxu0  ;;  %v13485_v62 = vpop.f32.mrb[191].mxu1  ;;  %13544 = vmatpush3.msk.msra.mxu1 %vm8561_vm14, %v8115_v1 }
 0xdbb   :  { %v13478_v21 = vpop.f32.mrb[195].mxu0  ;;  %13539 = vmatpush3.msk.msra.mxu0 %vm8561_vm14, %v8042_v17  ;;  %13546 = vmatmul.mubr.msk.f32.vlgmr.msra.gmra.mrb[200].mxu1 %vm8557_vm15, %v7819_v15 }
 0xdbc   :  { %13541 = vmatmul.mubr.msk.f32.vlgmr.msra.gmra.mrb[204].mxu0 %vm8557_vm15, %v7819_v15  ;;  %13553 = vmatprep.subr.mxu1 %v14115_v25 }
 0xdbd   :  { %13548 = vmatprep.subr.mxu0 %v14115_v25  ;;  %13555 = vmatprep.mubr.msk.f32.mxu1 %vm14114_vm6, %v14115_v25 }
 0xdbe   :  { %13550 = vmatprep.mubr.msk.f32.mxu0 %vm14114_vm6, %v14115_v25 }
 0xdc1   :  { %v8261_v40 = vpop.f32.mrb[192].mxu1 }
 0xdc2   :  { %v8188_v41 = vpop.f32.mrb[196].mxu0  ;;  %v13499_v53 = vpop.f32.mrb[193].mxu1  ;;  %13554 = vmatpush3.msk.msra.mxu1 %vm8561_vm14, %v8261_v40 }
 0xdc3   :  { %v13492_v16 = vpop.f32.mrb[197].mxu0  ;;  %13549 = vmatpush3.msk.msra.mxu0 %vm8561_vm14, %v8188_v41  ;;  %13556 = vmatmul.mubr.msk.f32.vlgmr.msra.gmra.mrb[202].mxu1 %vm8557_vm15, %v7819_v15 }
 0xdc4   :  { %13551 = vmatmul.mubr.msk.f32.vlgmr.msra.gmra.mrb[206].mxu0 %vm8557_vm15, %v7819_v15  ;;  %13563 = vmatprep.subr.mxu1 %v14115_v25 }
 0xdc5   :  { %13558 = vmatprep.subr.mxu0 %v14115_v25  ;;  %13565 = vmatprep.mubr.msk.f32.mxu1 %vm14114_vm6, %v14115_v25 }
 0xdc6   :  { %13560 = vmatprep.mubr.msk.f32.mxu0 %vm14114_vm6, %v14115_v25 }
 0xdc9   :  { %v8407_v57 = vpop.f32.mrb[194].mxu1 }
 0xdca   :  { %v8334_v51 = vpop.f32.mrb[198].mxu0  ;;  %v13513_v56 = vpop.f32.mrb[195].mxu1  ;;  %13564 = vmatpush3.msk.msra.mxu1 %vm8561_vm14, %v8407_v57 }
 0xdcb   :  { %v13506_v47 = vpop.f32.mrb[199].mxu0  ;;  %13559 = vmatpush3.msk.msra.mxu0 %vm8561_vm14, %v8334_v51  ;;  %13566 = vmatmul.mubr.msk.f32.vlgmr.msra.gmra.mrb[204].mxu1 %vm8557_vm15, %v7819_v15  ;;  %v9373_v56 = vld [vmem:[%s15800_s1 + $0x1e0] sm:$0x3] }
 0xdcc   :  { %13561 = vmatmul.mubr.msk.f32.vlgmr.msra.gmra.mrb[208].mxu0 %vm8557_vm15, %v7819_v15  ;;  %13573 = vmatprep.subr.mxu1 %v14115_v25 }
 0xdcd   :  { %13568 = vmatprep.subr.mxu0 %v14115_v25  ;;  %13575 = vmatprep.mubr.msk.f32.mxu1 %vm14114_vm6, %v14115_v25 }
 0xdce   :  { %13570 = vmatprep.mubr.msk.f32.mxu0 %vm14114_vm6, %v14115_v25 }
 0xdd1   :  { %v8553_v45 = vpop.f32.mrb[196].mxu1 }
 0xdd2   :  { %v8480_v60 = vpop.f32.mrb[200].mxu0  ;;  %v13527_v43 = vpop.f32.mrb[197].mxu1  ;;  %13574 = vmatpush3.msk.msra.mxu1 %vm8561_vm14, %v8553_v45 }
 0xdd3   :  { %v13520_v63 = vpop.f32.mrb[201].mxu0  ;;  %13569 = vmatpush3.msk.msra.mxu0 %vm8561_vm14, %v8480_v60  ;;  %13576 = vmatmul.mubr.msk.f32.vlgmr.msra.gmra.mrb[206].mxu1 %vm8557_vm15, %v7819_v15 }
 0xdd4   :  { %13571 = vmatmul.mubr.msk.f32.vlgmr.msra.gmra.mrb[210].mxu0 %vm8557_vm15, %v7819_v15  ;;  %13583 = vmatprep.subr.mxu1 %v14115_v25 }
 0xdd5   :  { %13578 = vmatprep.subr.mxu0 %v14115_v25  ;;  %13585 = vmatprep.mubr.msk.f32.mxu1 %vm14114_vm6, %v14115_v25 }
 0xdd6   :  { %13580 = vmatprep.mubr.msk.f32.mxu0 %vm14114_vm6, %v14115_v25 }
 0xdd9   :  { %13584 = vmatpush3.xpose.msk.msra.mxu1 %vm7820_vm11, %v9372_v46 }
 0xdda   :  { %13579 = vmatpush3.xpose.msk.msra.mxu0 %vm7820_vm11, %v9372_v46  ;;  %13593 = vmatprep.subr.mxu1 %v14115_v25 }
 0xddb   :  { %13588 = vmatprep.subr.mxu0 %v14115_v25 }
 0xddc   :  { %13586 = vmatmul.mubr.msk.f32.vlgmr.msra.gmra.mrb[208].mxu1 %vm7820_vm11, %v15444_v5 }
 0xddd   :  { %13581 = vmatmul.mubr.msk.f32.vlgmr.msra.gmra.mrb[212].mxu0 %vm7820_vm11, %v15450_v10  ;;  %13594 = vmatpush3.xpose.msk.msra.mxu1 %vm7820_vm11, %v9372_v46 }
 0xdde   :  { %13589 = vmatpush3.xpose.msk.msra.mxu0 %vm7820_vm11, %v9372_v46  ;;  %13595 = vmatprep.mubr.msk.f32.mxu1 %vm14114_vm6, %v14115_v25 }
 0xddf   :  { %13590 = vmatprep.mubr.msk.f32.mxu0 %vm14114_vm6, %v14115_v25  ;;  %13603 = vmatprep.subr.mxu1 %v14115_v25 }
 0xde0   :  { %13596 = vmatmul.mubr.msk.f32.vlgmr.msra.gmra.mrb[210].mxu1 %vm7820_vm11, %v15463_v8  ;;  %13598 = vmatprep.subr.mxu0 %v14115_v25 }
 0xde1   :  { %13591 = vmatmul.mubr.msk.f32.vlgmr.msra.gmra.mrb[214].mxu0 %vm7820_vm11, %v15471_v24  ;;  %13605 = vmatprep.mubr.msk.f32.mxu1 %vm14114_vm6, %v14115_v25 }
 0xde2   :  { %13600 = vmatprep.mubr.msk.f32.mxu0 %vm14114_vm6, %v14115_v25 }
 0xe86   :  { %v8704_v54 = vpop.f32.mrb[198].mxu1 }
 0xe87   :  { %v8631_v27 = vpop.f32.mrb[202].mxu0  ;;  %v13537_v18 = vpop.f32.mrb[199].mxu1  ;;  %v9293_v59 = vmul.f32 %v8704_v54, %v8704_v54 }
 0xe88   :  { %v13532_v14 = vpop.f32.mrb[203].mxu0  ;;  %v9292_v7 = vmul.f32 %v8631_v27, %v8631_v27 }
 0xe8e   :  { %v8850_v30 = vpop.f32.mrb[200].mxu1 }
 0xe8f   :  { %v9295_v3 = vmul.f32 %v8850_v30, %v8850_v30  ;;  %v9297_v26 = vmul.f32 %v8850_v30, %v8704_v54  ;;  %v8777_v55 = vpop.f32.mrb[204].mxu0  ;;  %v13547_v31 = vpop.f32.mrb[201].mxu1 }
 0xe90   :  { %v9294_v20 = vmul.f32 %v8777_v55, %v8777_v55  ;;  %v9296_v35 = vmul.f32 %v8777_v55, %v8631_v27  ;;  %v13542_v5 = vpop.f32.mrb[205].mxu0 }
 0xe91   :  { %v9299_v28 = vadd.f32 %v9295_v3, %v9293_v59  ;;  %v9317_v58 = vmul.f32 2.0, %v9297_v26 }
 0xe92   :  { %v9298_v37 = vadd.f32 %v9294_v20, %v9292_v7  ;;  %v9316_v33 = vmul.f32 2.0, %v9296_v35 }
 0xe93   :  { %v9301_v10 = vadd.f32 0.0001, %v9299_v28  ;;  %v9319_v11 = vadd.f32 0.0001, %v9317_v58 }
 0xe94   :  { %v9300_v19 = vadd.f32 0.0001, %v9298_v37  ;;  %v9318_v1 = vadd.f32 0.0001, %v9316_v33 }
 0xe95   :  { %14097 = vrcp.f32 %v9301_v10 }
 0xe96   :  { %14099 = vrcp.f32 %v9300_v19  ;;  %v8996_v42 = vpop.f32.mrb[202].mxu1 }
 0xe97   :  { %v8923_v52 = vpop.f32.mrb[206].mxu0  ;;  %v9303_v38 = vsub.f32 %v8996_v42, %v9293_v59  ;;  %v13557_v8 = vpop.f32.mrb[203].mxu1 }
 0xe98   :  { %v9302_v12 = vsub.f32 %v8923_v52, %v9292_v7  ;;  %v13552_v49 = vpop.f32.mrb[207].mxu0 }
 0xe9e   :  { %v9142_v29 = vpop.f32.mrb[204].mxu1 }
 0xe9f   :  { %v14098_v24 = vpop.eup %14097  ;;  %v9305_v2 = vsub.f32 %v9142_v29, %v9295_v3  ;;  %v9069_v50 = vpop.f32.mrb[208].mxu0  ;;  %v9991_v29 = vld [vmem:[%s15800_s1 + $0x1f8] sm:$0xff] }
 0xea0   :  { %v13567_v4 = vpop.f32.mrb[205].mxu1  ;;  %v14100_v0 = vpop.eup %14099  ;;  %v9333_v6 = vmul.f32 %v14098_v24, %v9301_v10  ;;  %v9304_v32 = vsub.f32 %v9069_v50, %v9294_v20 }
 0xea1   :  { %v13562_v61 = vpop.f32.mrb[209].mxu0  ;;  %v9332_v34 = vmul.f32 %v14100_v0, %v9300_v19  ;;  %v9307_v13 = vadd.f32 %v9305_v2, %v9303_v38 }
 0xea2   :  { %v9335_v9 = vsub.f32 2.0, %v9333_v6  ;;  %v9306_v36 = vadd.f32 %v9304_v32, %v9302_v12 }
 0xea3   :  { %v9334_v15 = vsub.f32 2.0, %v9332_v34  ;;  %v9309_v39 = vadd.f32 0.0009, %v9307_v13 }
 0xea4   :  { %v9337_v22 = vmul.f32 %v14098_v24, %v9335_v9  ;;  %v9308_v48 = vadd.f32 0.0009, %v9306_v36  ;;  %v9992_v24 = vld [vmem:[%s15800_s1 + $0x200] sm:$0x1] }
 0xea5   :  { %v9336_v17 = vmul.f32 %v14100_v0, %v9334_v15  ;;  %14101 = vrcp.f32 %v9309_v39  ;;  %v15654_v2 = vpack.c.bf16 %v9992_v24, %v9991_v29 }
 0xea6   :  { %v9339_v62 = vmul.f32 %v9337_v22, %v9319_v11  ;;  %14103 = vrcp.f32 %v9308_v48  ;;  %v9288_v21 = vpop.f32.mrb[206].mxu1 }
 0xea7   :  { %v9338_v40 = vmul.f32 %v9336_v17, %v9318_v1  ;;  %v9311_v41 = vsub.f32 %v9288_v21, %v9297_v26  ;;  %v9215_v53 = vpop.f32.mrb[210].mxu0  ;;  %v13577_v16 = vpop.f32.mrb[207].mxu1 }
 0xea8   :  { %v9310_v57 = vsub.f32 %v9215_v53, %v9296_v35  ;;  %v13572_v51 = vpop.f32.mrb[211].mxu0 }
 0xea9   :  { %v9313_v63 = vmul.f32 2.0, %v9311_v41 }
 0xeaa   :  { %v9312_v18 = vmul.f32 2.0, %v9310_v57 }
 0xeab   :  { %v9315_v3 = vadd.f32 0.0009, %v9313_v63 }
 0xeac   :  { %v9314_v20 = vadd.f32 0.0009, %v9312_v18 }
 0xeaf   :  { %v14102_v47 = vpop.eup %14101  ;;  %v9519_v45 = vpop.f32.mrb[208].mxu1 }
 0xeb0   :  { %v14104_v60 = vpop.eup %14103  ;;  %v9323_v43 = vmul.f32 %v14102_v47, %v9309_v39  ;;  %v9446_v46 = vpop.f32.mrb[212].mxu0  ;;  %13604 = vmatpush3.msk.msra.mxu1 %vm8561_vm14, %v9519_v45 }
 0xeb1   :  { %v13587_v54 = vpop.f32.mrb[209].mxu1  ;;  %v9322_v27 = vmul.f32 %v14104_v60, %v9308_v48  ;;  %v13582_v14 = vpop.f32.mrb[213].mxu0  ;;  %13599 = vmatpush3.msk.msra.mxu0 %vm8561_vm14, %v9446_v46  ;;  %13606 = vmatmul.mubr.msk.f32.vlgmr.msra.gmra.mrb[212].mxu1 %vm8557_vm15, %v9373_v56 }
 0xeb2   :  { %v9325_v59 = vsub.f32 2.0, %v9323_v43  ;;  %13601 = vmatmul.mubr.msk.f32.vlgmr.msra.gmra.mrb[216].mxu0 %vm8557_vm15, %v9373_v56  ;;  %13613 = vmatprep.subr.mxu1 %v14115_v25 }
 0xeb3   :  { %v9324_v7 = vsub.f32 2.0, %v9322_v27  ;;  %v9665_v30 = vpop.f32.mrb[210].mxu1  ;;  %13608 = vmatprep.subr.mxu0 %v14115_v25  ;;  %13615 = vmatprep.mubr.msk.f32.mxu1 %vm14114_vm6, %v14115_v25 }
 0xeb4   :  { %v9327_v26 = vmul.f32 %v14102_v47, %v9325_v59  ;;  %v9592_v55 = vpop.f32.mrb[214].mxu0  ;;  %v13597_v31 = vpop.f32.mrb[211].mxu1  ;;  %13614 = vmatpush3.msk.msra.mxu1 %vm8561_vm14, %v9665_v30  ;;  %13610 = vmatprep.mubr.msk.f32.mxu0 %vm14114_vm6, %v14115_v25 }
 0xeb5   :  { %v9326_v35 = vmul.f32 %v14104_v60, %v9324_v7  ;;  %v13592_v5 = vpop.f32.mrb[215].mxu0  ;;  %13609 = vmatpush3.msk.msra.mxu0 %vm8561_vm14, %v9592_v55  ;;  %13616 = vmatmul.mubr.msk.f32.vlgmr.msra.gmra.mrb[214].mxu1 %vm8557_vm15, %v9373_v56 }
 0xeb6   :  { %v9329_v28 = vmul.f32 %v9327_v26, %v9315_v3  ;;  %13611 = vmatmul.mubr.msk.f32.vlgmr.msra.gmra.mrb[218].mxu0 %vm8557_vm15, %v9373_v56  ;;  %13974 = vmatprep.subr.bf16.mxu1 %v14113_v23  ;;  %v9993_v3 = vld [vmem:[%s15800_s1 + $0x1f0] sm:$0x7] }
 0xeb7   :  { %v9328_v37 = vmul.f32 %v9326_v35, %v9314_v20  ;;  %13970 = vmatprep.subr.bf16.mxu0 %v14113_v23  ;;  %13629 = vmatprep.mubr.msk.f32.mxu1 %vm14114_vm6, %v14115_v25 }
 0xeb8   :  { %v9341_v10 = vmul.f32 %v9339_v62, %v9329_v28  ;;  %v9356_v19 = vsel %vm9342_vm0, %v9329_v28, 0.0  ;;  %13622 = vmatprep.mubr.msk.f32.mxu0 %vm14114_vm6, %v14115_v25 }
 0xeb9   :  { %v9340_v42 = vmul.f32 %v9338_v40, %v9328_v37  ;;  %v9355_v52 = vsel %vm9342_vm0, %v9328_v37, 0.0 }
 0xeba   :  { %v9357_v38 = vadd.f32 %v9356_v19, %v9355_v52  ;;  %v9344_v8 = vsel %vm9342_vm0, %v9341_v10, 0.0 }
 0xebb   :  { %v9343_v12 = vsel %vm9342_vm0, %v9340_v42, 0.0  ;;  %13977 = vmatpush3.bf16.xpose.msk.msra.mxu1 %vm15658_vm2, %v15654_v2 }
 0xebc   :  { %9358 = vadd.xlane.f32.xlu1 %v9357_v38  ;;  %v9345_v49 = vadd.f32 %v9344_v8, %v9343_v12  ;;  %13973 = vmatpush3.bf16.xpose.msk.msra.mxu0 %vm15658_vm2, %v15654_v2 }
 0xebd   :  { %13982 = vmatprep.subr.bf16.mxu1 %v14113_v23  ;;  %13978 = vmatprep.subr.bf16.mxu0 %v14113_v23 }
 0xebe   :  { %9346 = vadd.xlane.f32.xlu0 %v9345_v49 }
 0xf49   :  { %v9359_v4 = vpop.xlane.xlu1 %9358 }
 0xf4a   :  { %v9360_v0 = vrot.slane %v9359_v4, 4 }
 0xf4b   :  { %v9347_v58 = vpop.xlane.xlu0 %9346 }
 0xf4c   :  { %v9361_v6 = vadd.f32 %v9360_v0, %v9359_v4  ;;  %v9348_v32 = vrot.slane %v9347_v58, 4 }
 0xf4e   :  { %v9362_v61 = vrot.slane %v9361_v6, 2  ;;  %v9349_v33 = vadd.f32 %v9348_v32, %v9347_v58 }
 0xf50   :  { %v9350_v34 = vrot.slane %v9349_v33, 2  ;;  %v9363_v13 = vadd.f32 %v9362_v61, %v9361_v6 }
 0xf52   :  { %v9351_v9 = vadd.f32 %v9350_v34, %v9349_v33  ;;  %v9364_v36 = vrot.slane %v9363_v13, 1 }
 0xf54   :  { %v9352_v15 = vrot.slane %v9351_v9, 1  ;;  %v9365_v11 = vadd.f32 %v9364_v36, %v9363_v13 }
 0xf56   :  { %v9353_v39 = vadd.f32 %v9352_v15, %v9351_v9 }
 0xf58   :  { %14022 = vpush %v9353_v39 }
 0xf59   :  { %14024 = vpush %v9365_v11 }
 0xf84   :  { %v9814_v22 = vpop.f32.mrb[212].mxu1 }
 0xf85   :  { %9966 = vst.msk [vmem:[#allocation2 + $0x20] sm:$0x3] %vm9964_vm3, %v9814_v22  ;;  %v9970_v48 = vmul.f32 %v9814_v22, %v9814_v22  ;;  %v9741_v1 = vpop.f32.mrb[216].mxu0  ;;  %v13607_v17 = vpop.f32.mrb[213].mxu1 }
 0xf86   :  { %9965 = vst.msk [vmem:[#allocation2] sm:$0x3] %vm9964_vm3, %v9741_v1  ;;  %v9969_v62 = vmul.f32 %v9741_v1, %v9741_v1  ;;  %v13602_v21 = vpop.f32.mrb[217].mxu0 }
 0xf87   :  { %9972 = vst.msk [vmem:[#allocation2 + $0xa0] sm:$0x3] %vm9964_vm3, %v9970_v48 }
 0xf88   :  { %9971 = vst.msk [vmem:[#allocation2 + $0x80] sm:$0x3] %vm9964_vm3, %v9969_v62  ;;  %v9960_v40 = vpop.f32.mrb[214].mxu1 }
 0xf89   :  { %9968 = vst.msk [vmem:[#allocation2 + $0x60] sm:$0x3] %vm9964_vm3, %v9960_v40  ;;  %v9974_v41 = vmul.f32 %v9960_v40, %v9960_v40  ;;  %v9978_v53 = vmul.f32 %v9960_v40, %v9814_v22  ;;  %s14023_s8 = spop %14022  ;;  %v9887_v16 = vpop.f32.mrb[218].mxu0  ;;  %v13617_v57 = vpop.f32.mrb[215].mxu1 }
 0xf8a   :  { %v9367_v51 = vstv %s14023_s8  ;;  %s14025_s9 = spop %14024  ;;  %9967 = vst.msk [vmem:[#allocation2 + $0x40] sm:$0x3] %vm9964_vm3, %v9887_v16  ;;  %v9973_v56 = vmul.f32 %v9887_v16, %v9887_v16  ;;  %v9977_v47 = vmul.f32 %v9887_v16, %v9741_v1  ;;  %v13612_v45 = vpop.f32.mrb[219].mxu0 }
 0xf8b   :  { %9976 = vst.msk [vmem:[#allocation2 + $0xe0] sm:$0x3] %vm9964_vm3, %v9974_v41  ;;  %9980 = vst.msk [vmem:[#allocation2 + $0x120] sm:$0x3] %vm9964_vm3, %v9978_v53  ;;  %v9368_v60 = vstv %s14025_s9 }
 0xf8c   :  { %v9369_v43 = vsel %vm2405_vm7, %v9367_v51, %v9368_v60  ;;  %9975 = vst.msk [vmem:[#allocation2 + $0xc0] sm:$0x3] %vm9964_vm3, %v9973_v56  ;;  %9979 = vst.msk [vmem:[#allocation2 + $0x100] sm:$0x3] %vm9964_vm3, %v9977_v47  ;;  %v9982_v63 = vld [vmem:[#allocation2 + $0x20] sm:$0x3] }
 0xf8d   :  { %12012 = vst [vmem:[%s15801_s2 + $0x6] sm:$0x3] %v9369_v43  ;;  %13630 = vmatmul.mubr.msk.f32.vlgmr.msra.gmra.mrb[216].mxu1 %vm9994_vm1, %v9982_v63  ;;  %v9981_v46 = vld [vmem:[#allocation2] sm:$0x3] }
 0xf8e   :  { %13985 = vmatpush3.bf16.xpose.msk.msra.mxu1 %vm15658_vm2, %v15654_v2  ;;  %13623 = vmatmul.mubr.msk.f32.vlgmr.msra.gmra.mrb[220].mxu0 %vm9994_vm1, %v9981_v46  ;;  %v9986_v18 = vld [vmem:[#allocation2 + $0xa0] sm:$0x3] }
 0xf8f   :  { %13981 = vmatpush3.bf16.xpose.msk.msra.mxu0 %vm15658_vm2, %v15654_v2  ;;  %13643 = vmatprep.mubr.msk.f32.mxu1 %vm14114_vm6, %v14115_v25  ;;  %v9985_v14 = vld [vmem:[#allocation2 + $0x80] sm:$0x3] }
 0xf90   :  { %13636 = vmatprep.mubr.msk.f32.mxu0 %vm14114_vm6, %v14115_v25  ;;  %13990 = vmatprep.subr.bf16.mxu1 %v14113_v23  ;;  %v9984_v54 = vld [vmem:[#allocation2 + $0x60] sm:$0x3] }
 0xf91   :  { %13986 = vmatprep.subr.bf16.mxu0 %v14113_v23  ;;  %v9983_v27 = vld [vmem:[#allocation2 + $0x40] sm:$0x3] }
 0xf92   :  { %v9988_v59 = vld [vmem:[#allocation2 + $0xe0] sm:$0x3] }
 0xf93   :  { %v9987_v7 = vld [vmem:[#allocation2 + $0xc0] sm:$0x3] }
 0xf94   :  { %v9989_v30 = vld [vmem:[#allocation2 + $0x100] sm:$0x3] }
 0xf95   :  { %13644 = vmatmul.mubr.msk.f32.vlgmr.msra.gmra.mrb[218].mxu1 %vm9994_vm1, %v9984_v54 }
 0xf96   :  { %13637 = vmatmul.mubr.msk.f32.vlgmr.msra.gmra.mrb[222].mxu0 %vm9994_vm1, %v9983_v27  ;;  %13993 = vmatpush3.bf16.xpose.msk.msra.mxu1 %vm15658_vm2, %v15654_v2 }
 0xf97   :  { %13989 = vmatpush3.bf16.xpose.msk.msra.mxu0 %vm15658_vm2, %v15654_v2  ;;  %13657 = vmatprep.mubr.msk.f32.mxu1 %vm14114_vm6, %v14115_v25 }
 0xf98   :  { %13650 = vmatprep.mubr.msk.f32.mxu0 %vm14114_vm6, %v14115_v25  ;;  %13998 = vmatprep.subr.bf16.mxu1 %v14113_v23 }
 0xf99   :  { %13994 = vmatprep.subr.bf16.mxu0 %v14113_v23 }
 0xf9d   :  { %13658 = vmatmul.mubr.msk.f32.vlgmr.msra.gmra.mrb[220].mxu1 %vm9994_vm1, %v9986_v18 }
 0xf9e   :  { %13651 = vmatmul.mubr.msk.f32.vlgmr.msra.gmra.mrb[224].mxu0 %vm9994_vm1, %v9985_v14  ;;  %14001 = vmatpush3.bf16.xpose.msk.msra.mxu1 %vm15658_vm2, %v15654_v2 }
 0xf9f   :  { %13997 = vmatpush3.bf16.xpose.msk.msra.mxu0 %vm15658_vm2, %v15654_v2  ;;  %13671 = vmatprep.mubr.msk.f32.mxu1 %vm14114_vm6, %v14115_v25 }
 0xfa0   :  { %13664 = vmatprep.mubr.msk.f32.mxu0 %vm14114_vm6, %v14115_v25  ;;  %14006 = vmatprep.subr.bf16.mxu1 %v14113_v23 }
 0xfa1   :  { %14002 = vmatprep.subr.bf16.mxu0 %v14113_v23  ;;  %v9990_v23 = vld [vmem:[#allocation2 + $0x120] sm:$0x3] }
 0xfa5   :  { %13672 = vmatmul.mubr.msk.f32.vlgmr.msra.gmra.mrb[222].mxu1 %vm9994_vm1, %v9988_v59 }
 0xfa6   :  { %13665 = vmatmul.mubr.msk.f32.vlgmr.msra.gmra.mrb[226].mxu0 %vm9994_vm1, %v9987_v7  ;;  %14009 = vmatpush3.bf16.xpose.msk.msra.mxu1 %vm15658_vm2, %v15654_v2 }
 0xfa7   :  { %14005 = vmatpush3.bf16.xpose.msk.msra.mxu0 %vm15658_vm2, %v15654_v2  ;;  %13685 = vmatprep.mubr.msk.f32.mxu1 %vm14114_vm6, %v14115_v25 }
 0xfa8   :  { %13678 = vmatprep.mubr.msk.f32.mxu0 %vm14114_vm6, %v14115_v25  ;;  %13688 = vmatprep.subr.mxu0 %v14115_v25 }
 0xfa9   :  { %13693 = vmatprep.subr.mxu1 %v14115_v25 }
 0xfad   :  { %13686 = vmatmul.mubr.msk.f32.vlgmr.msra.gmra.mrb[224].mxu1 %vm9994_vm1, %v9990_v23 }
 0xfae   :  { %13679 = vmatmul.mubr.msk.f32.vlgmr.msra.gmra.mrb[228].mxu0 %vm9994_vm1, %v9989_v30  ;;  %13695 = vmatprep.mubr.msk.f32.mxu1 %vm14114_vm6, %v14115_v25 }
 0xfaf   :  { %13690 = vmatprep.mubr.msk.f32.mxu0 %vm14114_vm6, %v14115_v25 }
0x1060   :  { %v10143_v26 = vpop.f32.mrb[216].mxu1 }
0x1061   :  { %v10070_v55 = vpop.f32.mrb[220].mxu0  ;;  %v13631_v31 = vpop.f32.mrb[217].mxu1  ;;  %13694 = vmatpush3.msk.msra.mxu1 %vm10735_vm4, %v10143_v26 }
0x1062   :  { %v13624_v20 = vpop.f32.mrb[221].mxu0  ;;  %13689 = vmatpush3.msk.msra.mxu0 %vm10735_vm4, %v10070_v55  ;;  %13696 = vmatmul.mubr.msk.f32.vlgmr.msra.gmra.mrb[226].mxu1 %vm10731_vm5, %v9993_v3 }
0x1063   :  { %13691 = vmatmul.mubr.msk.f32.vlgmr.msra.gmra.mrb[230].mxu0 %vm10731_vm5, %v9993_v3  ;;  %13703 = vmatprep.subr.mxu1 %v14115_v25 }
0x1064   :  { %13698 = vmatprep.subr.mxu0 %v14115_v25  ;;  %13705 = vmatprep.mubr.msk.f32.mxu1 %vm14114_vm6, %v14115_v25 }
0x1065   :  { %13700 = vmatprep.mubr.msk.f32.mxu0 %vm14114_vm6, %v14115_v25 }
0x1068   :  { %v10289_v35 = vpop.f32.mrb[218].mxu1 }
0x1069   :  { %v10216_v5 = vpop.f32.mrb[222].mxu0  ;;  %13704 = vmatpush3.msk.msra.mxu1 %vm10735_vm4, %v10289_v35  ;;  %v13645_v28 = vpop.f32.mrb[219].mxu1 }
0x106a   :  { %v13638_v37 = vpop.f32.mrb[223].mxu0  ;;  %13699 = vmatpush3.msk.msra.mxu0 %vm10735_vm4, %v10216_v5  ;;  %13706 = vmatmul.mubr.msk.f32.vlgmr.msra.gmra.mrb[228].mxu1 %vm10731_vm5, %v9993_v3 }
0x106b   :  { %13701 = vmatmul.mubr.msk.f32.vlgmr.msra.gmra.mrb[232].mxu0 %vm10731_vm5, %v9993_v3  ;;  %13713 = vmatprep.subr.mxu1 %v14115_v25 }
0x106c   :  { %13708 = vmatprep.subr.mxu0 %v14115_v25  ;;  %13710 = vmatprep.mubr.msk.f32.mxu0 %vm14114_vm6, %v14115_v25 }
0x106d   :  { %13715 = vmatprep.mubr.msk.f32.mxu1 %vm14114_vm6, %v14115_v25 }
0x1070   :  { %v10435_v10 = vpop.f32.mrb[220].mxu1 }
0x1071   :  { %v10362_v19 = vpop.f32.mrb[224].mxu0  ;;  %v13659_v42 = vpop.f32.mrb[221].mxu1  ;;  %13714 = vmatpush3.msk.msra.mxu1 %vm10735_vm4, %v10435_v10 }
0x1072   :  { %v13652_v52 = vpop.f32.mrb[225].mxu0  ;;  %13709 = vmatpush3.msk.msra.mxu0 %vm10735_vm4, %v10362_v19  ;;  %13716 = vmatmul.mubr.msk.f32.vlgmr.msra.gmra.mrb[230].mxu1 %vm10731_vm5, %v9993_v3 }
0x1073   :  { %13711 = vmatmul.mubr.msk.f32.vlgmr.msra.gmra.mrb[234].mxu0 %vm10731_vm5, %v9993_v3  ;;  %13723 = vmatprep.subr.mxu1 %v14115_v25 }
0x1074   :  { %13718 = vmatprep.subr.mxu0 %v14115_v25  ;;  %13725 = vmatprep.mubr.msk.f32.mxu1 %vm14114_vm6, %v14115_v25 }
0x1075   :  { %13720 = vmatprep.mubr.msk.f32.mxu0 %vm14114_vm6, %v14115_v25 }
0x1078   :  { %v10581_v38 = vpop.f32.mrb[222].mxu1 }
0x1079   :  { %v10508_v8 = vpop.f32.mrb[226].mxu0  ;;  %v13673_v12 = vpop.f32.mrb[223].mxu1  ;;  %13724 = vmatpush3.msk.msra.mxu1 %vm10735_vm4, %v10581_v38 }
0x107a   :  { %v13666_v49 = vpop.f32.mrb[227].mxu0  ;;  %13719 = vmatpush3.msk.msra.mxu0 %vm10735_vm4, %v10508_v8  ;;  %13726 = vmatmul.mubr.msk.f32.vlgmr.msra.gmra.mrb[232].mxu1 %vm10731_vm5, %v9993_v3 }
0x107b   :  { %13721 = vmatmul.mubr.msk.f32.vlgmr.msra.gmra.mrb[236].mxu0 %vm10731_vm5, %v9993_v3  ;;  %13733 = vmatprep.subr.mxu1 %v14115_v25 }
0x107c   :  { %13728 = vmatprep.subr.mxu0 %v14115_v25  ;;  %13735 = vmatprep.mubr.msk.f32.mxu1 %vm14114_vm6, %v14115_v25 }
0x107d   :  { %13730 = vmatprep.mubr.msk.f32.mxu0 %vm14114_vm6, %v14115_v25  ;;  %vm11516_vm6 = vcmask 67584  }
0x1080   :  { %v10727_v29 = vpop.f32.mrb[224].mxu1 }
0x1081   :  { %v10654_v24 = vpop.f32.mrb[228].mxu0  ;;  %v13687_v2 = vpop.f32.mrb[225].mxu1  ;;  %13734 = vmatpush3.msk.msra.mxu1 %vm10735_vm4, %v10727_v29 }
0x1082   :  { %v13680_v50 = vpop.f32.mrb[229].mxu0  ;;  %13729 = vmatpush3.msk.msra.mxu0 %vm10735_vm4, %v10654_v24  ;;  %13736 = vmatmul.mubr.msk.f32.vlgmr.msra.gmra.mrb[234].mxu1 %vm10731_vm5, %v9993_v3 }
0x1083   :  { %13731 = vmatmul.mubr.msk.f32.vlgmr.msra.gmra.mrb[238].mxu0 %vm10731_vm5, %v9993_v3 }
0x1135   :  { %v10878_v4 = vpop.f32.mrb[226].mxu1 }
0x1136   :  { %v10805_v0 = vpop.f32.mrb[230].mxu0  ;;  %v13697_v58 = vpop.f32.mrb[227].mxu1  ;;  %v11467_v32 = vmul.f32 %v10878_v4, %v10878_v4 }
0x1137   :  { %v13692_v6 = vpop.f32.mrb[231].mxu0  ;;  %v11466_v61 = vmul.f32 %v10805_v0, %v10805_v0 }
0x113d   :  { %v11024_v33 = vpop.f32.mrb[228].mxu1 }
0x113e   :  { %v11469_v25 = vmul.f32 %v11024_v33, %v11024_v33  ;;  %v11471_v34 = vmul.f32 %v11024_v33, %v10878_v4  ;;  %v10951_v13 = vpop.f32.mrb[232].mxu0  ;;  %v13707_v9 = vpop.f32.mrb[229].mxu1 }
0x113f   :  { %v11468_v36 = vmul.f32 %v10951_v13, %v10951_v13  ;;  %v11470_v15 = vmul.f32 %v10951_v13, %v10805_v0  ;;  %v13702_v39 = vpop.f32.mrb[233].mxu0 }
0x1140   :  { %v11473_v11 = vadd.f32 %v11469_v25, %v11467_v32  ;;  %v11491_v60 = vmul.f32 2.0, %v11471_v34 }
0x1141   :  { %v11472_v22 = vadd.f32 %v11468_v36, %v11466_v61  ;;  %v11490_v54 = vmul.f32 2.0, %v11470_v15 }
0x1142   :  { %v11475_v48 = vadd.f32 0.0001, %v11473_v11  ;;  %v11493_v30 = vadd.f32 0.0001, %v11491_v60 }
0x1143   :  { %v11474_v1 = vadd.f32 0.0001, %v11472_v22  ;;  %v11492_v55 = vadd.f32 0.0001, %v11490_v54 }
0x1144   :  { %14105 = vrcp.f32 %v11475_v48 }
0x1145   :  { %14107 = vrcp.f32 %v11474_v1  ;;  %v11170_v17 = vpop.f32.mrb[230].mxu1 }
0x1146   :  { %v11097_v62 = vpop.f32.mrb[234].mxu0  ;;  %v11477_v21 = vsub.f32 %v11170_v17, %v11467_v32  ;;  %v13717_v40 = vpop.f32.mrb[231].mxu1 }
0x1147   :  { %v11476_v41 = vsub.f32 %v11097_v62, %v11466_v61  ;;  %v13712_v53 = vpop.f32.mrb[235].mxu0 }
0x114d   :  { %v11316_v16 = vpop.f32.mrb[232].mxu1 }
0x114e   :  { %v14106_v57 = vpop.eup %14105  ;;  %v11479_v51 = vsub.f32 %v11316_v16, %v11469_v25  ;;  %v11243_v56 = vpop.f32.mrb[236].mxu0 }
0x114f   :  { %v13727_v47 = vpop.f32.mrb[233].mxu1  ;;  %v14108_v45 = vpop.eup %14107  ;;  %v11507_v43 = vmul.f32 %v14106_v57, %v11475_v48  ;;  %v11478_v63 = vsub.f32 %v11243_v56, %v11468_v36 }
0x1150   :  { %v13722_v46 = vpop.f32.mrb[237].mxu0  ;;  %v11506_v27 = vmul.f32 %v14108_v45, %v11474_v1  ;;  %v11481_v18 = vadd.f32 %v11479_v51, %v11477_v21 }
0x1151   :  { %v11509_v14 = vsub.f32 2.0, %v11507_v43  ;;  %v11480_v59 = vadd.f32 %v11478_v63, %v11476_v41 }
0x1152   :  { %v11508_v7 = vsub.f32 2.0, %v11506_v27  ;;  %v11483_v23 = vadd.f32 0.0009, %v11481_v18 }
0x1153   :  { %v11511_v3 = vmul.f32 %v14106_v57, %v11509_v14  ;;  %v11482_v26 = vadd.f32 0.0009, %v11480_v59 }
0x1154   :  { %v11510_v31 = vmul.f32 %v14108_v45, %v11508_v7  ;;  %14109 = vrcp.f32 %v11483_v23 }
0x1155   :  { %v11513_v20 = vmul.f32 %v11511_v3, %v11493_v30  ;;  %14111 = vrcp.f32 %v11482_v26  ;;  %v11462_v35 = vpop.f32.mrb[234].mxu1 }
0x1156   :  { %v11512_v5 = vmul.f32 %v11510_v31, %v11492_v55  ;;  %v11485_v28 = vsub.f32 %v11462_v35, %v11471_v34  ;;  %v11389_v37 = vpop.f32.mrb[238].mxu0  ;;  %v13737_v10 = vpop.f32.mrb[235].mxu1 }
0x1157   :  { %v11484_v19 = vsub.f32 %v11389_v37, %v11470_v15  ;;  %v13732_v42 = vpop.f32.mrb[239].mxu0 }
0x1158   :  { %v11487_v12 = vmul.f32 2.0, %v11485_v28 }
0x1159   :  { %v11486_v29 = vmul.f32 2.0, %v11484_v19 }
0x115a   :  { %v11489_v50 = vadd.f32 0.0009, %v11487_v12 }
0x115b   :  { %v11488_v0 = vadd.f32 0.0009, %v11486_v29 }
0x115e   :  { %v14110_v52 = vpop.eup %14109 }
0x115f   :  { %v14112_v38 = vpop.eup %14111  ;;  %v11497_v8 = vmul.f32 %v14110_v52, %v11483_v23 }
0x1160   :  { %v11496_v49 = vmul.f32 %v14112_v38, %v11482_v26 }
0x1161   :  { %v11499_v24 = vsub.f32 2.0, %v11497_v8 }
0x1162   :  { %v11498_v2 = vsub.f32 2.0, %v11496_v49 }
0x1163   :  { %v11501_v4 = vmul.f32 %v14110_v52, %v11499_v24 }
0x1164   :  { %v11500_v58 = vmul.f32 %v14112_v38, %v11498_v2 }
0x1165   :  { %v11503_v6 = vmul.f32 %v11501_v4, %v11489_v50 }
0x1166   :  { %v11502_v32 = vmul.f32 %v11500_v58, %v11488_v0 }
0x1167   :  { %v11515_v61 = vmul.f32 %v11513_v20, %v11503_v6  ;;  %v11530_v33 = vsel %vm11516_vm6, %v11503_v6, 0.0 }
0x1168   :  { %v11514_v25 = vmul.f32 %v11512_v5, %v11502_v32  ;;  %v11529_v34 = vsel %vm11516_vm6, %v11502_v32, 0.0 }
0x1169   :  { %v11531_v13 = vadd.f32 %v11530_v33, %v11529_v34  ;;  %v11518_v9 = vsel %vm11516_vm6, %v11515_v61, 0.0 }
0x116a   :  { %v11517_v36 = vsel %vm11516_vm6, %v11514_v25, 0.0 }
0x116b   :  { %11532 = vadd.xlane.f32.xlu1 %v11531_v13  ;;  %v11519_v15 = vadd.f32 %v11518_v9, %v11517_v36 }
0x116d   :  { %11520 = vadd.xlane.f32.xlu0 %v11519_v15 }
0x11f8   :  { %v11533_v39 = vpop.xlane.xlu1 %11532 }
0x11f9   :  { %v11534_v11 = vrot.slane %v11533_v39, 4 }
0x11fa   :  { %v11521_v22 = vpop.xlane.xlu0 %11520 }
0x11fb   :  { %v11535_v48 = vadd.f32 %v11534_v11, %v11533_v39  ;;  %v11522_v1 = vrot.slane %v11521_v22, 4 }
0x11fd   :  { %v11536_v17 = vrot.slane %v11535_v48, 2  ;;  %v11523_v62 = vadd.f32 %v11522_v1, %v11521_v22 }
0x11ff   :  { %v11537_v21 = vadd.f32 %v11536_v17, %v11535_v48  ;;  %v11524_v40 = vrot.slane %v11523_v62, 2 }
0x1201   :  { %v11525_v41 = vadd.f32 %v11524_v40, %v11523_v62  ;;  %v11538_v53 = vrot.slane %v11537_v21, 1 }
0x1203   :  { %v11526_v16 = vrot.slane %v11525_v41, 1  ;;  %v11539_v51 = vadd.f32 %v11538_v53, %v11537_v21 }
0x1205   :  { %v11527_v57 = vadd.f32 %v11526_v16, %v11525_v41 }
0x1207   :  { %14026 = vpush %v11527_v57 }
0x1208   :  { %14028 = vpush %v11539_v51 }
0x1238   :  { %s14027_s1 = spop %14026 }
0x1239   :  { %v11541_v56 = vstv %s14027_s1  ;;  %s14029_s14 = spop %14028 }
0x123a   :  { %v11542_v47 = vstv %s14029_s14 }
0x123b   :  { %v11543_v45 = vsel %vm2405_vm7, %v11541_v56, %v11542_v47 }
0x123c   :  { %12079 = vst [vmem:[%s15801_s2 + $0x8] sm:$0x3] %v11543_v45 }

</bundles_post_ra>
